<compile_context>
chip_gen: v7x
topology: tpu7x:2x2x1
jax: 0.10.0
libtpu: 0.0.40
codegen_flags: <defaults>
</compile_context>

<pallas_src>
import functools

import jax
import jax.numpy as jnp
from jax.experimental import pallas as pl
from jax.experimental.pallas import tpu as pltpu

NEG_SLOPE = 0.2


def _round_up(x, m):
    return (x + m - 1) // m * m


def _chip_generation():
    try:
        kind = jax.devices()[0].device_kind.lower()
    except Exception:
        return "unknown"
    for tag, name in (("v5", "v5e"), ("v6", "v6e"), ("v7", "v7x")):
        if tag in kind:
            return name
    return "unknown"


def _discriminator_kernel(x_ref, w1_ref, b1_ref, w2_ref, b2_ref, w3_ref, b3_ref,
                          out_ref, *, act_dtype, num_subtiles):
    """One batch tile of Linear->LeakyReLU->Linear->LeakyReLU->Linear(256->1)."""
    tile = x_ref.shape[0]
    sub = tile // num_subtiles

    # Weights are resident across the whole grid (constant index maps).
    w1 = w1_ref[...]                        # (ecg_dim, 512) bf16
    w2 = w2_ref[...]                        # (512, 256)     bf16
    b1 = b1_ref[...].astype(act_dtype)      # (1, 512)
    b2 = b2_ref[...].astype(act_dtype)      # (1, 256)
    w3 = w3_ref[...].astype(act_dtype)      # (1, 256)  head weights (VPU path)
    b3 = b3_ref[...]                        # (1, 1)    f32

    # Two independent sub-tiles per grid step: the scheduler can interleave
    # sub-tile j+1's vmatmul pushes with sub-tile j's VPU epilogue / XLU reduce.
    for j in range(num_subtiles):
        rows = pl.ds(j * sub, sub)
        x = x_ref[rows, :].astype(jnp.bfloat16)

        # Layer 1: MXU (bf16 x bf16 -> f32 acc), epilogue in act_dtype.
        h1 = jnp.dot(x, w1, preferred_element_type=jnp.float32).astype(act_dtype) + b1
        h1 = jnp.where(h1 > 0, h1, NEG_SLOPE * h1)

        # Layer 2.
        h2 = jnp.dot(h1.astype(jnp.bfloat16), w2,
                     preferred_element_type=jnp.float32).astype(act_dtype) + b2
        h2 = jnp.where(h2 > 0, h2, NEG_SLOPE * h2)

        # Layer 3 (out_features == 1): a (sub,256)x(256,1) matmul fills <1% of the
        # MXU -> VPU multiply + lane reduction with f32 accumulation instead.
        head = jnp.sum(h2 * w3, axis=-1, keepdims=True, dtype=jnp.float32) + b3
        out_ref[rows, :] = head.astype(out_ref.dtype)


def _pick_tile(B, ecg_dim, chip, batch_tile):
    b_ceil = _round_up(max(B, 1), 128)
    if batch_tile is not None:
        base = _round_up(batch_tile, 128)
    elif chip == "v6e":
        base = 1024                              # 32 MiB default scoped VMEM: plenty
    elif chip == "v5e":
        base = 256 if ecg_dim >= 1024 else 512   # stay inside 16 MiB default scoped VMEM
    else:                                        # v7x / unknown
        base = 512
    tile = min(base, b_ceil)
    # v7x has two TensorCores: make sure the ("parallel",) batch grid gets >= 2
    # steps whenever the batch allows it, so the second core doesn't idle.
    if batch_tile is None and chip == "v7x" and b_ceil > 128 and pl.cdiv(b_ceil, tile) < 2:
        tile = max(128, _round_up(b_ceil // 2, 128))
    return tile


def discriminator_forward(ecg, params, *, batch_tile=None):
    """ecg: (B, ecg_dim) float32. Returns validity (B, 1) float32.

    params = (w1, b1, w2, b2, w3, b3); weights stored as (in, out), biases (1, out).
    """
    w1, b1, w2, b2, w3, b3 = params
    B, ecg_dim = ecg.shape
    h1_dim, h2_dim, out_dim = w1.shape[1], w2.shape[1], w3.shape[1]
    assert out_dim == 1

    chip = _chip_generation()
    act_dtype = jnp.bfloat16 if chip in ("v6e", "v7x") else jnp.float32
    tile = _pick_tile(B, ecg_dim, chip, batch_tile)
    grid = (pl.cdiv(B, tile),)          # ragged tail handled by Pallas output masking
    num_subtiles = 2 if tile >= 256 else 1

    # Cast the big weight matrices to bf16 once (MXU inputs); the head runs on the
    # VPU so its weights stay f32, reshaped to a lane-dense (1, 256) row.
    w1_bf16 = w1.astype(jnp.bfloat16)
    w2_bf16 = w2.astype(jnp.bfloat16)
    w3_row = w3.reshape(1, h2_dim).astype(jnp.float32)

    kernel = functools.partial(_discriminator_kernel,
                               act_dtype=act_dtype, num_subtiles=num_subtiles)

    # Explicit VMEM budget (review): x block double-buffered, weights resident
    # (single buffer), activation intermediates plus their bf16 recasts, headroom.
    act_bytes = jnp.dtype(act_dtype).itemsize
    vmem_bytes = (
        2 * tile * ecg_dim * 4                          # x block (f32, double-buffered)
        + 2 * tile * 4                                  # out block (double-buffered)
        + ecg_dim * h1_dim * 2 + h1_dim * h2_dim * 2    # resident bf16 weights
        + (h1_dim + 2 * h2_dim + 1) * 4                 # biases + head row
        + tile * (h1_dim + h2_dim) * (act_bytes + 2)    # h1/h2 + bf16 recast copies
        + (4 << 20)                                     # compiler scratch headroom
    )
    vmem_cap = (56 << 20) if chip == "v7x" else (112 << 20)
    vmem_limit = int(min(max(vmem_bytes, 24 << 20), vmem_cap))

    flops = int(2 * B * (ecg_dim * h1_dim + h1_dim * h2_dim + h2_dim)
                + 4 * B * (h1_dim + h2_dim))
    bytes_accessed = int(B * ecg_dim * 4 + B * 4
                         + w1_bf16.size * 2 + w2_bf16.size * 2
                         + (b1.size + b2.size + w3_row.size + b3.size) * 4)

    def run(single_buffer_weights):
        weight_kwargs = ({"pipeline_mode": pl.Buffered(1)}
                         if single_buffer_weights else {})

        def full(shape):  # whole-array block, constant index map (stays resident)
            return pl.BlockSpec(shape, lambda i: (0, 0), **weight_kwargs)

        return pl.pallas_call(
            kernel,
            out_shape=jax.ShapeDtypeStruct((B, 1), jnp.float32),
            grid_spec=pltpu.PrefetchScalarGridSpec(
                num_scalar_prefetch=0,
                grid=grid,
                in_specs=[
                    pl.BlockSpec((tile, ecg_dim), lambda i: (i, 0)),   # x tile
                    full(w1_bf16.shape), full(b1.shape),
                    full(w2_bf16.shape), full(b2.shape),
                    full(w3_row.shape), full(b3.shape),
                ],
                out_specs=pl.BlockSpec((tile, 1), lambda i: (i, 0)),
            ),
            compiler_params=pltpu.CompilerParams(
                dimension_semantics=("parallel",),       # batch axis shards across v7x cores
                vmem_limit_bytes=vmem_limit,
            ),
            cost_estimate=pl.CostEstimate(
                flops=flops, transcendentals=0, bytes_accessed=bytes_accessed),
        )(ecg, w1_bf16, b1, w2_bf16, b2, w3_row, b3)

    # Weights have constant block indices, so one pipeline buffer suffices; fall
    # back to default double-buffering if this Pallas build rejects Buffered(1).
    try:
        out = run(single_buffer_weights=True)
        return jax.block_until_ready(out)
    except Exception:
        return run(single_buffer_weights=False)


def init_discriminator_params(key, ecg_dim):
    """Deterministic synthetic init (PyTorch-like uniform fan-in scaling)."""
    dims = [(ecg_dim, 512), (512, 256), (256, 1)]
    params = []
    for fan_in, fan_out in dims:
        kw, kb, key = jax.random.split(key, 3)
        bound = 1.0 / jnp.sqrt(fan_in)
        # stored as (in, out) — already transposed relative to torch's (out, in)
        w = jax.random.uniform(kw, (fan_in, fan_out), jnp.float32, -bound, bound)
        b = jax.random.uniform(kb, (1, fan_out), jnp.float32, -bound, bound)
        params += [w, b]
    return tuple(params)


def _reference_forward(ecg, params, act_dtype):
    """Pure-JAX reference mirroring the kernel's dtype choices (bf16 MXU inputs,
    f32 accumulation, act_dtype epilogue, f32 head reduction)."""
    w1, b1, w2, b2, w3, b3 = params
    x = ecg.astype(jnp.bfloat16)
    h1 = (jnp.dot(x, w1.astype(jnp.bfloat16), preferred_element_type=jnp.float32)
          .astype(act_dtype) + b1.astype(act_dtype))
    h1 = jnp.where(h1 > 0, h1, NEG_SLOPE * h1)
    h2 = (jnp.dot(h1.astype(jnp.bfloat16), w2.astype(jnp.bfloat16),
                  preferred_element_type=jnp.float32)
          .astype(act_dtype) + b2.astype(act_dtype))
    h2 = jnp.where(h2 > 0, h2, NEG_SLOPE * h2)
    w3_row = w3.reshape(1, -1).astype(act_dtype)
    return jnp.sum(h2 * w3_row, axis=-1, keepdims=True, dtype=jnp.float32) + b3


if __name__ == "__main__":
    key = jax.random.PRNGKey(0)
    chip = _chip_generation()
    act_dtype = jnp.bfloat16 if chip in ("v6e", "v7x") else jnp.float32
    tol = (dict(atol=5e-2, rtol=5e-2) if act_dtype == jnp.bfloat16
           else dict(atol=1e-4, rtol=1e-4))

    # Case 1: tiny batch — single (ragged) tile, no padding copy.
    k_x, k_p, key = jax.random.split(key, 3)
    B, ecg_dim = 16, 32
    ecg = jax.random.normal(k_x, (B, ecg_dim), jnp.float32)
    params = init_discriminator_params(k_p, ecg_dim)
    validity = jax.block_until_ready(discriminator_forward(ecg, params))
    ref = _reference_forward(ecg, params, act_dtype)
    assert validity.shape == (B, 1)
    assert jnp.allclose(validity, ref, **tol), "case1 mismatch vs reference"

    # Case 2: multi-step grid with a ragged tail (B % tile != 0) and sub-tiling.
    k_x2, k_p2, key = jax.random.split(key, 3)
    B2, ecg_dim2 = 300, 192
    ecg2 = jax.random.normal(k_x2, (B2, ecg_dim2), jnp.float32)
    params2 = init_discriminator_params(k_p2, ecg_dim2)
    validity2 = jax.block_until_ready(
        discriminator_forward(ecg2, params2, batch_tile=256))
    ref2 = _reference_forward(ecg2, params2, act_dtype)
    assert validity2.shape == (B2, 1)
    assert jnp.allclose(validity2, ref2, **tol), "case2 mismatch vs reference"

    print("KERNEL_OK")
</pallas_src>

<mosaic_0001>
module attributes {stable_mosaic.version = 11 : i64} {
  func.func @_discriminator_kernel(%arg0: i32, %arg1: memref<128x32xf32, #tpu.memory_space<vmem>>, %arg2: memref<32x512xbf16, #tpu.memory_space<vmem>>, %arg3: memref<1x512xf32, #tpu.memory_space<vmem>>, %arg4: memref<512x256xbf16, #tpu.memory_space<vmem>>, %arg5: memref<1x256xf32, #tpu.memory_space<vmem>>, %arg6: memref<1x256xf32, #tpu.memory_space<vmem>>, %arg7: memref<1x1xf32, #tpu.memory_space<vmem>>, %arg8: memref<128x1xf32, #tpu.memory_space<vmem>>) attributes {dimension_semantics = [#tpu.dimension_semantics<parallel>], iteration_bounds = array<i64: 1>, scalar_prefetch = 0 : i64, scratch_operands = 0 : i64, tpu.core_type = #tpu.core_type<tc>, window_params = [{transform_indices = @transform_0, window_bounds = array<i64: 128, 32>}, {pipeline_mode = #tpu.pipeline_mode<synchronous>, transform_indices = @transform_1, window_bounds = array<i64: 32, 512>}, {pipeline_mode = #tpu.pipeline_mode<synchronous>, transform_indices = @transform_2, window_bounds = array<i64: 1, 512>}, {pipeline_mode = #tpu.pipeline_mode<synchronous>, transform_indices = @transform_3, window_bounds = array<i64: 512, 256>}, {pipeline_mode = #tpu.pipeline_mode<synchronous>, transform_indices = @transform_4, window_bounds = array<i64: 1, 256>}, {pipeline_mode = #tpu.pipeline_mode<synchronous>, transform_indices = @transform_5, window_bounds = array<i64: 1, 256>}, {pipeline_mode = #tpu.pipeline_mode<synchronous>, transform_indices = @transform_6, window_bounds = array<i64: 1, 1>}, {transform_indices = @transform_7, window_bounds = array<i64: 128, 1>}]} {
    %c0 = arith.constant 0 : index
    %c0_0 = arith.constant 0 : index
    %0 = vector.load %arg2[%c0, %c0_0] : memref<32x512xbf16, #tpu.memory_space<vmem>>, vector<32x512xbf16>
    %c0_1 = arith.constant 0 : index
    %c0_2 = arith.constant 0 : index
    %1 = vector.load %arg4[%c0_1, %c0_2] : memref<512x256xbf16, #tpu.memory_space<vmem>>, vector<512x256xbf16>
    %c0_3 = arith.constant 0 : index
    %c0_4 = arith.constant 0 : index
    %2 = vector.load %arg3[%c0_3, %c0_4] : memref<1x512xf32, #tpu.memory_space<vmem>>, vector<1x512xf32>
    %c0_5 = arith.constant 0 : index
    %c0_6 = arith.constant 0 : index
    %3 = vector.load %arg5[%c0_5, %c0_6] : memref<1x256xf32, #tpu.memory_space<vmem>>, vector<1x256xf32>
    %c0_7 = arith.constant 0 : index
    %c0_8 = arith.constant 0 : index
    %4 = vector.load %arg6[%c0_7, %c0_8] : memref<1x256xf32, #tpu.memory_space<vmem>>, vector<1x256xf32>
    %c0_9 = arith.constant 0 : index
    %c0_10 = arith.constant 0 : index
    %5 = vector.load %arg7[%c0_9, %c0_10] : memref<1x1xf32, #tpu.memory_space<vmem>>, vector<1x1xf32>
    %c0_11 = arith.constant 0 : index
    %c0_12 = arith.constant 0 : index
    %6 = vector.load %arg1[%c0_11, %c0_12] : memref<128x32xf32, #tpu.memory_space<vmem>>, vector<128x32xf32>
    %7 = arith.truncf %6 : vector<128x32xf32> to vector<128x32xbf16>
    %cst = arith.constant dense<0.000000e+00> : vector<128x512xf32>
    %8 = tpu.matmul %7, %0, %cst {dimension_numbers = #tpu.dot_dimension_numbers<[1], [0], [0], [1], [0, 0, 1, 1], [], []>} : vector<128x32xbf16>, vector<32x512xbf16>, vector<128x512xf32> -> vector<128x512xf32>
    %9 = vector.broadcast %2 : vector<1x512xf32> to vector<128x512xf32>
    %10 = arith.addf %8, %9 : vector<128x512xf32>
    %cst_13 = arith.constant 0.000000e+00 : f32
    %11 = vector.broadcast %cst_13 : f32 to vector<128x512xf32>
    %12 = arith.cmpf ogt, %10, %11 : vector<128x512xf32>
    %cst_14 = arith.constant 2.000000e-01 : f32
    %13 = vector.broadcast %cst_14 : f32 to vector<128x512xf32>
    %14 = arith.mulf %13, %10 : vector<128x512xf32>
    %15 = arith.select %12, %10, %14 : vector<128x512xi1>, vector<128x512xf32>
    %16 = arith.truncf %15 : vector<128x512xf32> to vector<128x512xbf16>
    %cst_15 = arith.constant dense<0.000000e+00> : vector<128x256xf32>
    %17 = tpu.matmul %16, %1, %cst_15 {dimension_numbers = #tpu.dot_dimension_numbers<[1], [0], [0], [1], [0, 0, 1, 1], [], []>} : vector<128x512xbf16>, vector<512x256xbf16>, vector<128x256xf32> -> vector<128x256xf32>
    %18 = vector.broadcast %3 : vector<1x256xf32> to vector<128x256xf32>
    %19 = arith.addf %17, %18 : vector<128x256xf32>
    %cst_16 = arith.constant 0.000000e+00 : f32
    %20 = vector.broadcast %cst_16 : f32 to vector<128x256xf32>
    %21 = arith.cmpf ogt, %19, %20 : vector<128x256xf32>
    %cst_17 = arith.constant 2.000000e-01 : f32
    %22 = vector.broadcast %cst_17 : f32 to vector<128x256xf32>
    %23 = arith.mulf %22, %19 : vector<128x256xf32>
    %24 = arith.select %21, %19, %23 : vector<128x256xi1>, vector<128x256xf32>
    %25 = vector.broadcast %4 : vector<1x256xf32> to vector<128x256xf32>
    %26 = arith.mulf %24, %25 : vector<128x256xf32>
    %cst_18 = arith.constant dense<0.000000e+00> : vector<128xf32>
    %27 = vector.multi_reduction <add>, %26, %cst_18 [1] : vector<128x256xf32> to vector<128xf32>
    %28 = vector.shape_cast %27 : vector<128xf32> to vector<128x1xf32>
    %29 = vector.broadcast %5 : vector<1x1xf32> to vector<128x1xf32>
    %30 = arith.addf %28, %29 : vector<128x1xf32>
    %c0_19 = arith.constant 0 : index
    %c0_20 = arith.constant 0 : index
    %31 = vector.load %arg8[%c0_19, %c0_20] : memref<128x1xf32, #tpu.memory_space<vmem>>, vector<128x1xf32>
    tpu.vector_store %arg8[%c0_19, %c0_20], %30 {strides = array<i32>} : memref<128x1xf32, #tpu.memory_space<vmem>>, vector<128x1xf32>,
    return
  }
  func.func @transform_0(%arg0: i32) -> (i32, i32) {
    %c0_i32 = arith.constant 0 : i32
    %c0_i32_0 = arith.constant 0 : i32
    return %arg0, %c0_i32 : i32, i32
  }
  func.func @transform_1(%arg0: i32) -> (i32, i32) {
    %c0_i32 = arith.constant 0 : i32
    %c0_i32_0 = arith.constant 0 : i32
    %c0_i32_1 = arith.constant 0 : i32
    return %c0_i32, %c0_i32_0 : i32, i32
  }
  func.func @transform_2(%arg0: i32) -> (i32, i32) {
    %c0_i32 = arith.constant 0 : i32
    %c0_i32_0 = arith.constant 0 : i32
    %c0_i32_1 = arith.constant 0 : i32
    return %c0_i32, %c0_i32_0 : i32, i32
  }
  func.func @transform_3(%arg0: i32) -> (i32, i32) {
    %c0_i32 = arith.constant 0 : i32
    %c0_i32_0 = arith.constant 0 : i32
    %c0_i32_1 = arith.constant 0 : i32
    return %c0_i32, %c0_i32_0 : i32, i32
  }
  func.func @transform_4(%arg0: i32) -> (i32, i32) {
    %c0_i32 = arith.constant 0 : i32
    %c0_i32_0 = arith.constant 0 : i32
    %c0_i32_1 = arith.constant 0 : i32
    return %c0_i32, %c0_i32_0 : i32, i32
  }
  func.func @transform_5(%arg0: i32) -> (i32, i32) {
    %c0_i32 = arith.constant 0 : i32
    %c0_i32_0 = arith.constant 0 : i32
    %c0_i32_1 = arith.constant 0 : i32
    return %c0_i32, %c0_i32_0 : i32, i32
  }
  func.func @transform_6(%arg0: i32) -> (i32, i32) {
    %c0_i32 = arith.constant 0 : i32
    %c0_i32_0 = arith.constant 0 : i32
    %c0_i32_1 = arith.constant 0 : i32
    return %c0_i32, %c0_i32_0 : i32, i32
  }
  func.func @transform_7(%arg0: i32) -> (i32, i32) {
    %c0_i32 = arith.constant 0 : i32
    %c0_i32_0 = arith.constant 0 : i32
    return %arg0, %c0_i32 : i32, i32
  }
}

module attributes {stable_mosaic.version = 11 : i64} {
  func.func @_discriminator_kernel(%arg0: i32, %arg1: memref<128x32xf32, #tpu.memory_space<vmem>>, %arg2: memref<32x512xbf16, #tpu.memory_space<vmem>>, %arg3: memref<1x512xf32, #tpu.memory_space<vmem>>, %arg4: memref<512x256xbf16, #tpu.memory_space<vmem>>, %arg5: memref<1x256xf32, #tpu.memory_space<vmem>>, %arg6: memref<1x256xf32, #tpu.memory_space<vmem>>, %arg7: memref<1x1xf32, #tpu.memory_space<vmem>>, %arg8: memref<128x1xf32, #tpu.memory_space<vmem>>) attributes {dimension_semantics = [#tpu.dimension_semantics<parallel>], iteration_bounds = array<i64: 1>, scalar_prefetch = 0 : i64, scratch_operands = 0 : i64, tpu.core_type = #tpu.core_type<tc>, window_params = [{transform_indices = @transform_0, window_bounds = array<i64: 128, 32>}, {pipeline_mode = #tpu.pipeline_mode<synchronous>, transform_indices = @transform_1, window_bounds = array<i64: 32, 512>}, {pipeline_mode = #tpu.pipeline_mode<synchronous>, transform_indices = @transform_2, window_bounds = array<i64: 1, 512>}, {pipeline_mode = #tpu.pipeline_mode<synchronous>, transform_indices = @transform_3, window_bounds = array<i64: 512, 256>}, {pipeline_mode = #tpu.pipeline_mode<synchronous>, transform_indices = @transform_4, window_bounds = array<i64: 1, 256>}, {pipeline_mode = #tpu.pipeline_mode<synchronous>, transform_indices = @transform_5, window_bounds = array<i64: 1, 256>}, {pipeline_mode = #tpu.pipeline_mode<synchronous>, transform_indices = @transform_6, window_bounds = array<i64: 1, 1>}, {transform_indices = @transform_7, window_bounds = array<i64: 128, 1>}]} {
    %c0 = arith.constant 0 : index
    %c0_0 = arith.constant 0 : index
    %0 = vector.load %arg2[%c0, %c0_0] : memref<32x512xbf16, #tpu.memory_space<vmem>>, vector<32x512xbf16>
    %c0_1 = arith.constant 0 : index
    %c0_2 = arith.constant 0 : index
    %1 = vector.load %arg4[%c0_1, %c0_2] : memref<512x256xbf16, #tpu.memory_space<vmem>>, vector<512x256xbf16>
    %c0_3 = arith.constant 0 : index
    %c0_4 = arith.constant 0 : index
    %2 = vector.load %arg3[%c0_3, %c0_4] : memref<1x512xf32, #tpu.memory_space<vmem>>, vector<1x512xf32>
    %c0_5 = arith.constant 0 : index
    %c0_6 = arith.constant 0 : index
    %3 = vector.load %arg5[%c0_5, %c0_6] : memref<1x256xf32, #tpu.memory_space<vmem>>, vector<1x256xf32>
    %c0_7 = arith.constant 0 : index
    %c0_8 = arith.constant 0 : index
    %4 = vector.load %arg6[%c0_7, %c0_8] : memref<1x256xf32, #tpu.memory_space<vmem>>, vector<1x256xf32>
    %c0_9 = arith.constant 0 : index
    %c0_10 = arith.constant 0 : index
    %5 = vector.load %arg7[%c0_9, %c0_10] : memref<1x1xf32, #tpu.memory_space<vmem>>, vector<1x1xf32>
    %c0_11 = arith.constant 0 : index
    %c0_12 = arith.constant 0 : index
    %6 = vector.load %arg1[%c0_11, %c0_12] : memref<128x32xf32, #tpu.memory_space<vmem>>, vector<128x32xf32>
    %7 = arith.truncf %6 : vector<128x32xf32> to vector<128x32xbf16>
    %cst = arith.constant dense<0.000000e+00> : vector<128x512xf32>
    %8 = tpu.matmul %7, %0, %cst {dimension_numbers = #tpu.dot_dimension_numbers<[1], [0], [0], [1], [0, 0, 1, 1], [], []>} : vector<128x32xbf16>, vector<32x512xbf16>, vector<128x512xf32> -> vector<128x512xf32>
    %9 = vector.broadcast %2 : vector<1x512xf32> to vector<128x512xf32>
    %10 = arith.addf %8, %9 : vector<128x512xf32>
    %cst_13 = arith.constant 0.000000e+00 : f32
    %11 = vector.broadcast %cst_13 : f32 to vector<128x512xf32>
    %12 = arith.cmpf ogt, %10, %11 : vector<128x512xf32>
    %cst_14 = arith.constant 2.000000e-01 : f32
    %13 = vector.broadcast %cst_14 : f32 to vector<128x512xf32>
    %14 = arith.mulf %13, %10 : vector<128x512xf32>
    %15 = arith.select %12, %10, %14 : vector<128x512xi1>, vector<128x512xf32>
    %16 = arith.truncf %15 : vector<128x512xf32> to vector<128x512xbf16>
    %cst_15 = arith.constant dense<0.000000e+00> : vector<128x256xf32>
    %17 = tpu.matmul %16, %1, %cst_15 {dimension_numbers = #tpu.dot_dimension_numbers<[1], [0], [0], [1], [0, 0, 1, 1], [], []>} : vector<128x512xbf16>, vector<512x256xbf16>, vector<128x256xf32> -> vector<128x256xf32>
    %18 = vector.broadcast %3 : vector<1x256xf32> to vector<128x256xf32>
    %19 = arith.addf %17, %18 : vector<128x256xf32>
    %cst_16 = arith.constant 0.000000e+00 : f32
    %20 = vector.broadcast %cst_16 : f32 to vector<128x256xf32>
    %21 = arith.cmpf ogt, %19, %20 : vector<128x256xf32>
    %cst_17 = arith.constant 2.000000e-01 : f32
    %22 = vector.broadcast %cst_17 : f32 to vector<128x256xf32>
    %23 = arith.mulf %22, %19 : vector<128x256xf32>
    %24 = arith.select %21, %19, %23 : vector<128x256xi1>, vector<128x256xf32>
    %25 = vector.broadcast %4 : vector<1x256xf32> to vector<128x256xf32>
    %26 = arith.mulf %24, %25 : vector<128x256xf32>
    %cst_18 = arith.constant dense<0.000000e+00> : vector<128xf32>
    %27 = vector.multi_reduction <add>, %26, %cst_18 [1] : vector<128x256xf32> to vector<128xf32>
    %28 = vector.shape_cast %27 : vector<128xf32> to vector<128x1xf32>
    %29 = vector.broadcast %5 : vector<1x1xf32> to vector<128x1xf32>
    %30 = arith.addf %28, %29 : vector<128x1xf32>
    %c0_19 = arith.constant 0 : index
    %c0_20 = arith.constant 0 : index
    %31 = vector.load %arg8[%c0_19, %c0_20] : memref<128x1xf32, #tpu.memory_space<vmem>>, vector<128x1xf32>
    tpu.vector_store %arg8[%c0_19, %c0_20], %30 {strides = array<i32>} : memref<128x1xf32, #tpu.memory_space<vmem>>, vector<128x1xf32>,
    return
  }
  func.func @transform_0(%arg0: i32) -> (i32, i32) {
    %c0_i32 = arith.constant 0 : i32
    %c0_i32_0 = arith.constant 0 : i32
    return %arg0, %c0_i32 : i32, i32
  }
  func.func @transform_1(%arg0: i32) -> (i32, i32) {
    %c0_i32 = arith.constant 0 : i32
    %c0_i32_0 = arith.constant 0 : i32
    %c0_i32_1 = arith.constant 0 : i32
    return %c0_i32, %c0_i32_0 : i32, i32
  }
  func.func @transform_2(%arg0: i32) -> (i32, i32) {
    %c0_i32 = arith.constant 0 : i32
    %c0_i32_0 = arith.constant 0 : i32
    %c0_i32_1 = arith.constant 0 : i32
    return %c0_i32, %c0_i32_0 : i32, i32
  }
  func.func @transform_3(%arg0: i32) -> (i32, i32) {
    %c0_i32 = arith.constant 0 : i32
    %c0_i32_0 = arith.constant 0 : i32
    %c0_i32_1 = arith.constant 0 : i32
    return %c0_i32, %c0_i32_0 : i32, i32
  }
  func.func @transform_4(%arg0: i32) -> (i32, i32) {
    %c0_i32 = arith.constant 0 : i32
    %c0_i32_0 = arith.constant 0 : i32
    %c0_i32_1 = arith.constant 0 : i32
    return %c0_i32, %c0_i32_0 : i32, i32
  }
  func.func @transform_5(%arg0: i32) -> (i32, i32) {
    %c0_i32 = arith.constant 0 : i32
    %c0_i32_0 = arith.constant 0 : i32
    %c0_i32_1 = arith.constant 0 : i32
    return %c0_i32, %c0_i32_0 : i32, i32
  }
  func.func @transform_6(%arg0: i32) -> (i32, i32) {
    %c0_i32 = arith.constant 0 : i32
    %c0_i32_0 = arith.constant 0 : i32
    %c0_i32_1 = arith.constant 0 : i32
    return %c0_i32, %c0_i32_0 : i32, i32
  }
  func.func @transform_7(%arg0: i32) -> (i32, i32) {
    %c0_i32 = arith.constant 0 : i32
    %c0_i32_0 = arith.constant 0 : i32
    return %arg0, %c0_i32 : i32, i32
  }
}

</mosaic_0001>

<bundles_post_ra>
// kernel: tpu_custom_call.1
= control target key start
LH: loop header
LB: loop body
LE: loop exit
PB: predicated region body
PF: predicated region fallthrough
CT: control target
= control target key end

     0   :  { %s2382_s0 = inlined_call_operand.hbm [shape: f32[16,32], index: 0, kind: input, shape index: {}]   ;;  %s2383_s1 = inlined_call_operand.hbm [shape: bf16[32,512], index: 1, kind: input, shape index: {}]   ;;  %s2384_s2 = inlined_call_operand.vmem [shape: f32[1,512], index: 2, kind: input, shape index: {}]   ;;  %s2385_s3 = inlined_call_operand.hbm [shape: bf16[512,256], index: 3, kind: input, shape index: {}]   ;;  %s2386_s4 = inlined_call_operand.vmem [shape: f32[1,256], index: 4, kind: input, shape index: {}]   ;;  %s2387_s5 = inlined_call_operand.vmem [shape: f32[1,256], index: 5, kind: input, shape index: {}]   ;;  %s2388_s6 = inlined_call_operand.<no memory space> [shape: f32[1,1], index: 6, kind: input, shape index: {}]   ;;  %s2389_s7 = inlined_call_operand.vmem [shape: f32[16,1], index: 7, kind: output, shape index: {}]  }
   0x1   :  { %v12_v0 = vstv %s2388_s6 }
   0x2   :  { %13 = vst [vmem:[#allocation2] sm:$0x1] %v12_v0 }
   0x3   :  { %14 = vsyncpa [#allocation4], 0 }
   0x4   :  { %15 = vsyncpa [#allocation6], 0 }
   0x5   :  { %20 = vsyncadd [#allocation4], 1792  ;;  %s1874_s26 = smov [#allocation5]   ;;  %s1804_s30 = scalar_lea.hbm %s2383_s1, 1024 }
   0x6   :  { %s33_s27 = sshll.u32 %s1874_s26, 4  ;;  %p1805_p0 = scmp.ne.s32.totalorder %s2383_s1, %s1804_s30  ;;  %s34_s27 = int_to_ptr.vmem [resolvable:$true] %s33_s27 }
   0x7   :  { %p1808_p1 = scmp.lt.u32.totalorder %s1804_s30, %s2383_s1 }
   0x9   :  { %p1810_p2 = pnand %p1808_p1, %p1805_p0 }
   0xb   :  { %1813 = shalt.err (!%p1810_p2)
}
   0xc   :  { %s1814_s6 = scalar_lea.vmem %s34_s27, 1024  ;;  %p1819_p4 = scmp.lt.s32.totalorder %s34_s27, %s34_s27 }
   0xd   :  { %p1815_p3 = scmp.ne.s32.totalorder %s34_s27, %s1814_s6  ;;  %p1820_p5 = scmp.lt.s32.totalorder %s1814_s6, %s1814_s6 }
   0xf   :  { %p1821_p6 = por %p1820_p5, %p1819_p4 }
  0x11   :  { %p1822_p7 = pnand %p1821_p6, %p1815_p3 }
  0x13   :  { %1825 = shalt.err (!%p1822_p7)
}
  0x14   :  { %s1875_s12 = smov 256   ;;  %s1876_s13 = smov 16  }
  0x15   :  { %39 = dma.hbm_to_vmem [thread:$0]  %s2383_s1, 1024, %s34_s27, [#allocation6], %s1875_s12, %s1875_s12, %s1876_s13  }
  0x16   :  { %s1877_s16 = smov [#allocation3]   ;;  %s1826_s20 = scalar_lea.hbm %s2382_s0, 256 }
  0x17   :  { %s21_s17 = sshll.u32 %s1877_s16, 4  ;;  %p1827_p8 = scmp.ne.s32.totalorder %s2382_s0, %s1826_s20  ;;  %s22_s17 = int_to_ptr.vmem [resolvable:$true] %s21_s17 }
  0x18   :  { %p1830_p9 = scmp.lt.u32.totalorder %s1826_s20, %s2382_s0 }
  0x1a   :  { %p1832_p10 = pnand %p1830_p9, %p1827_p8 }
  0x1c   :  { %1835 = shalt.err (!%p1832_p10)
}
  0x1d   :  { %s1836_s25 = scalar_lea.vmem %s22_s17, 256  ;;  %s1840_s1 = scalar_lea.vmem %s22_s17, 2048 }
  0x1e   :  { %p1837_p11 = scmp.ne.s32.totalorder %s22_s17, %s1836_s25  ;;  %p1841_p12 = scmp.lt.s32.totalorder %s22_s17, %s22_s17 }
  0x1f   :  { %p1842_p13 = scmp.lt.s32.totalorder %s1840_s1, %s1836_s25 }
  0x21   :  { %p1843_p0 = por %p1842_p13, %p1841_p12 }
  0x23   :  { %p1844_p1 = pnand %p1843_p0, %p1837_p11 }
  0x25   :  { %1847 = shalt.err (!%p1844_p1)
}
  0x26   :  { %s1878_s26 = smov 128   ;;  %s1879_s27 = smov 8  }
  0x27   :  { %27 = dma.hbm_to_vmem [thread:$0]  %s2382_s0, 256, %s22_s17, [#allocation4], %s1878_s26, %s1878_s26, %s1879_s27  }
  0x28   :  { %s1880_s30 = smov [#allocation7]   ;;  %s1848_s11 = scalar_lea.hbm %s2385_s3, 8192 }
  0x29   :  { %s47_s8 = sshll.u32 %s1880_s30, 4  ;;  %p1849_p2 = scmp.ne.s32.totalorder %s2385_s3, %s1848_s11  ;;  %s48_s8 = int_to_ptr.vmem [resolvable:$true] %s47_s8 }
  0x2a   :  { %p1852_p3 = scmp.lt.u32.totalorder %s1848_s11, %s2385_s3 }
  0x2c   :  { %p1854_p4 = pnand %p1852_p3, %p1849_p2 }
  0x2e   :  { %1857 = shalt.err (!%p1854_p4)
}
  0x2f   :  { %s1858_s15 = scalar_lea.vmem %s48_s8, 8192  ;;  %p1863_p6 = scmp.lt.s32.totalorder %s48_s8, %s48_s8 }
  0x30   :  { %p1859_p5 = scmp.ne.s32.totalorder %s48_s8, %s1858_s15  ;;  %p1864_p7 = scmp.lt.s32.totalorder %s1858_s15, %s1858_s15 }
  0x32   :  { %p1865_p8 = por %p1864_p7, %p1863_p6 }
  0x34   :  { %p1866_p9 = pnand %p1865_p8, %p1859_p5 }
  0x36   :  { %1869 = shalt.err (!%p1866_p9)
}
  0x37   :  { %53 = dma.hbm_to_vmem [thread:$0]  %s2385_s3, 8192, %s48_s8, [#allocation6], %s1878_s26, %s1878_s26, %s1879_s27  }
  0x38   :  { %1870 = dma.done.wait [#allocation4], 2048  }
  0x39   :  { %1871 = vsyncadd [#allocation4], 4294965248 }
  0x3a   :  { %1872 = dma.done.wait [#allocation6], 9216  }
  0x3b   :  { %1873 = vsyncadd [#allocation6], 4294958080  ;;  %v1881_v1 = vmov 0   ;;  %v1696_v2 = vld [vmem:[#allocation5 + $0x4] ss:$16 sps:$4 sm:$0xff]   ;;  %v147_v11 = vld [vmem:[#allocation3 + $0x8] sm:$0xff] }
  0x3c   :  { %288 = vmatprep.mubr.bf16.mxu0 %v1881_v1  ;;  %401 = vmatprep.mubr.bf16.mxu1 %v1881_v1  ;;  %v1698_v3 = vld [vmem:[#allocation5 + $0xc] ss:$16 sps:$4 sm:$0xff]   ;;  %v1700_v4 = vld [vmem:[#allocation5] ss:$16 sps:$4 sm:$0xff]   ;;  %v1701_v5 = vld [vmem:[#allocation5 + $0x8] ss:$16 sps:$4 sm:$0xff]  }
  0x3d   :  { %256 = vmatprep.subr.bf16.mxu0 %v1696_v2  ;;  %369 = vmatprep.subr.bf16.mxu1 %v1698_v3  ;;  %v1702_v6 = vld [vmem:[#allocation5 + $0x24] ss:$16 sps:$4 sm:$0xff]   ;;  %v1704_v7 = vld [vmem:[#allocation5 + $0x2c] ss:$16 sps:$4 sm:$0xff]   ;;  %v1706_v8 = vld [vmem:[#allocation5 + $0x20] ss:$16 sps:$4 sm:$0xff]  }
  0x3e   :  { %257 = vmatpush1.bf16.msra.mxu0 %v1700_v4  ;;  %370 = vmatpush1.bf16.msra.mxu1 %v1701_v5  ;;  %v1707_v9 = vld [vmem:[#allocation5 + $0x28] ss:$16 sps:$4 sm:$0xff]   ;;  %v146_v10 = vld [vmem:[#allocation3] sm:$0xff]  ;;  %vm231_vm0 = vcmask 261120   ;;  %v148_v13 = vld [vmem:[#allocation3 + $0x10] sm:$0xff] }
  0x3f   :  { %258 = vmatprep.subr.bf16.mxu0 %v1702_v6  ;;  %371 = vmatprep.subr.bf16.mxu1 %v1704_v7  ;;  %v162_v12 = vpack.c.bf16 %v147_v11, %v146_v10  ;;  %v149_v14 = vld [vmem:[#allocation3 + $0x18] sm:$0xff]  ;;  %v1708_v15 = vld [vmem:[#allocation7] ss:$8 sps:$4 sm:$0xff]   ;;  %v1710_v16 = vld [vmem:[#allocation7 + $0x4] ss:$8 sps:$4 sm:$0xff]  }
  0x40   :  { %v1711_v17 = vld [vmem:[#allocation7 + $0x100] ss:$8 sps:$4 sm:$0xff]   ;;  %v1713_v18 = vld [vmem:[#allocation7 + $0x104] ss:$8 sps:$4 sm:$0xff]   ;;  %v1714_v19 = vld [vmem:[#allocation7 + $0x10] ss:$8 sps:$4 sm:$0xff]   ;;  %v163_v21 = vpack.c.bf16 %v149_v14, %v148_v13 }
  0x41   :  { %v1716_v20 = vld [vmem:[#allocation7 + $0x14] ss:$8 sps:$4 sm:$0xff]   ;;  %v1717_v23 = vld [vmem:[#allocation7 + $0x110] ss:$8 sps:$4 sm:$0xff]   ;;  %v1722_v24 = vld [vmem:[#allocation7 + $0x24] ss:$8 sps:$4 sm:$0xff]  }
  0x42   :  { %259 = vmatpush1.bf16.msra.mxu0 %v1706_v8  ;;  %372 = vmatpush1.bf16.msra.mxu1 %v1707_v9  ;;  %v1719_v22 = vld [vmem:[#allocation7 + $0x114] ss:$8 sps:$4 sm:$0xff]   ;;  %v1720_v25 = vld [vmem:[#allocation7 + $0x20] ss:$8 sps:$4 sm:$0xff]   ;;  %v1725_v26 = vld [vmem:[#allocation7 + $0x124] ss:$8 sps:$4 sm:$0xff]  }
  0x43   :  { %1037 = vmatprep.subr.bf16.mxu1 %v1710_v16  ;;  %1150 = vmatprep.subr.bf16.mxu0 %v1713_v18  ;;  %v150_v27 = vld [vmem:[#allocation3 + $0x20] sm:$0xff]  ;;  %v1728_v28 = vld [vmem:[#allocation7 + $0x34] ss:$8 sps:$4 sm:$0xff]   ;;  %v151_v29 = vld [vmem:[#allocation3 + $0x28] sm:$0xff] }
  0x44   :  { %v1723_v30 = vld [vmem:[#allocation7 + $0x120] ss:$8 sps:$4 sm:$0xff]   ;;  %v1726_v31 = vld [vmem:[#allocation7 + $0x30] ss:$8 sps:$4 sm:$0xff]   ;;  %v1731_v32 = vld [vmem:[#allocation7 + $0x134] ss:$8 sps:$4 sm:$0xff]   ;;  %v164_v33 = vpack.c.bf16 %v151_v29, %v150_v27 }
  0x45   :  { %1543 = vmatmul.mubr.msk.bf16.vlgmr.msra.gmra.mrb[0].mxu0 %vm231_vm0, %v162_v12  ;;  %1551 = vmatmul.mubr.msk.bf16.vlgmr.msra.gmra.mrb[0].mxu1 %vm231_vm0, %v162_v12  ;;  %v1729_v34 = vld [vmem:[#allocation7 + $0x130] ss:$8 sps:$4 sm:$0xff]   ;;  %v1734_v35 = vld [vmem:[#allocation7 + $0x44] ss:$8 sps:$4 sm:$0xff]   ;;  %v1732_v36 = vld [vmem:[#allocation7 + $0x40] ss:$8 sps:$4 sm:$0xff]  }
  0x46   :  { %298 = vmatprep.mubr.bf16.mxu0 %v1881_v1  ;;  %411 = vmatprep.mubr.bf16.mxu1 %v1881_v1  ;;  %v1737_v37 = vld [vmem:[#allocation7 + $0x144] ss:$8 sps:$4 sm:$0xff]   ;;  %v152_v38 = vld [vmem:[#allocation3 + $0x30] sm:$0xff]  ;;  %v153_v40 = vld [vmem:[#allocation3 + $0x38] sm:$0xff] }
  0x47   :  { %1038 = vmatpush1.bf16.msra.mxu1 %v1708_v15  ;;  %1151 = vmatpush1.bf16.msra.mxu0 %v1711_v17  ;;  %v1740_v39 = vld [vmem:[#allocation7 + $0x54] ss:$8 sps:$4 sm:$0xff]   ;;  %v1735_v41 = vld [vmem:[#allocation7 + $0x140] ss:$8 sps:$4 sm:$0xff]   ;;  %v1738_v42 = vld [vmem:[#allocation7 + $0x50] ss:$8 sps:$4 sm:$0xff]   ;;  %v165_v44 = vpack.c.bf16 %v153_v40, %v152_v38 }
  0x48   :  { %1039 = vmatprep.subr.bf16.mxu1 %v1716_v20  ;;  %1152 = vmatprep.subr.bf16.mxu0 %v1719_v22  ;;  %v1743_v43 = vld [vmem:[#allocation7 + $0x154] ss:$8 sps:$4 sm:$0xff]   ;;  %v1741_v45 = vld [vmem:[#allocation7 + $0x150] ss:$8 sps:$4 sm:$0xff]   ;;  %v1746_v46 = vld [vmem:[#allocation7 + $0x64] ss:$8 sps:$4 sm:$0xff]  }
  0x49   :  { %v1744_v47 = vld [vmem:[#allocation7 + $0x60] ss:$8 sps:$4 sm:$0xff]   ;;  %v1749_v48 = vld [vmem:[#allocation7 + $0x164] ss:$8 sps:$4 sm:$0xff]   ;;  %v1752_v50 = vld [vmem:[#allocation7 + $0x74] ss:$8 sps:$4 sm:$0xff]  }
  0x4a   :  { %v154_v49 = vld [vmem:[#allocation3 + $0x40] sm:$0xff]  ;;  %v155_v51 = vld [vmem:[#allocation3 + $0x48] sm:$0xff]  ;;  %v1750_v53 = vld [vmem:[#allocation7 + $0x70] ss:$8 sps:$4 sm:$0xff]  }
  0x4b   :  { %1040 = vmatpush1.bf16.msra.mxu1 %v1714_v19  ;;  %1153 = vmatpush1.bf16.msra.mxu0 %v1717_v23  ;;  %v1747_v52 = vld [vmem:[#allocation7 + $0x160] ss:$8 sps:$4 sm:$0xff]   ;;  %v1755_v54 = vld [vmem:[#allocation7 + $0x174] ss:$8 sps:$4 sm:$0xff]   ;;  %v166_v55 = vpack.c.bf16 %v155_v51, %v154_v49  ;;  %v1753_v56 = vld [vmem:[#allocation7 + $0x170] ss:$8 sps:$4 sm:$0xff]  }
  0x4c   :  { %1041 = vmatprep.subr.bf16.mxu1 %v1722_v24  ;;  %1154 = vmatprep.subr.bf16.mxu0 %v1725_v26  ;;  %v1758_v57 = vld [vmem:[#allocation7 + $0x84] ss:$8 sps:$4 sm:$0xff]   ;;  %v1756_v58 = vld [vmem:[#allocation7 + $0x80] ss:$8 sps:$4 sm:$0xff]   ;;  %v156_v60 = vld [vmem:[#allocation3 + $0x50] sm:$0xff] }
  0x4d   :  { %1544 = vmatmul.mubr.msk.bf16.gmra.mrb[4].mxu0 %vm231_vm0, %v163_v21  ;;  %1552 = vmatmul.mubr.msk.bf16.gmra.mrb[4].mxu1 %vm231_vm0, %v163_v21  ;;  %v1761_v59 = vld [vmem:[#allocation7 + $0x184] ss:$8 sps:$4 sm:$0xff]   ;;  %v1764_v61 = vld [vmem:[#allocation7 + $0x94] ss:$8 sps:$4 sm:$0xff]   ;;  %v1759_v63 = vld [vmem:[#allocation7 + $0x180] ss:$8 sps:$4 sm:$0xff]  }
  0x4e   :  { %308 = vmatprep.mubr.bf16.mxu0 %v1881_v1  ;;  %421 = vmatprep.mubr.bf16.mxu1 %v1881_v1  ;;  %v157_v62 = vld [vmem:[#allocation3 + $0x58] sm:$0xff]  ;;  %v1770_v5 = vld [vmem:[#allocation7 + $0xa4] ss:$8 sps:$4 sm:$0xff]   ;;  %v1768_v6 = vld [vmem:[#allocation7 + $0xa0] ss:$8 sps:$4 sm:$0xff]  }
  0x4f   :  { %1042 = vmatpush1.bf16.msra.mxu1 %v1720_v25  ;;  %1155 = vmatpush1.bf16.msra.mxu0 %v1723_v30  ;;  %v1762_v0 = vld [vmem:[#allocation7 + $0x90] ss:$8 sps:$4 sm:$0xff]   ;;  %v1767_v2 = vld [vmem:[#allocation7 + $0x194] ss:$8 sps:$4 sm:$0xff]   ;;  %v167_v3 = vpack.c.bf16 %v157_v62, %v156_v60  ;;  %v1773_v7 = vld [vmem:[#allocation7 + $0x1a4] ss:$8 sps:$4 sm:$0xff]  }
  0x50   :  { %1043 = vmatprep.subr.bf16.mxu1 %v1728_v28  ;;  %1156 = vmatprep.subr.bf16.mxu0 %v1731_v32  ;;  %v1765_v4 = vld [vmem:[#allocation7 + $0x190] ss:$8 sps:$4 sm:$0xff]   ;;  %v1776_v8 = vld [vmem:[#allocation7 + $0xb4] ss:$8 sps:$4 sm:$0xff]   ;;  %v158_v9 = vld [vmem:[#allocation3 + $0x60] sm:$0xff] }
  0x51   :  { %v159_v10 = vld [vmem:[#allocation3 + $0x68] sm:$0xff]  ;;  %v1774_v12 = vld [vmem:[#allocation7 + $0xb0] ss:$8 sps:$4 sm:$0xff]   ;;  %v1779_v13 = vld [vmem:[#allocation7 + $0x1b4] ss:$8 sps:$4 sm:$0xff]  }
  0x52   :  { %v1771_v11 = vld [vmem:[#allocation7 + $0x1a0] ss:$8 sps:$4 sm:$0xff]   ;;  %v168_v14 = vpack.c.bf16 %v159_v10, %v158_v9  ;;  %v1777_v15 = vld [vmem:[#allocation7 + $0x1b0] ss:$8 sps:$4 sm:$0xff]   ;;  %v1782_v16 = vld [vmem:[#allocation7 + $0xc4] ss:$8 sps:$4 sm:$0xff]  }
  0x53   :  { %1044 = vmatpush1.bf16.msra.mxu1 %v1726_v31  ;;  %1157 = vmatpush1.bf16.msra.mxu0 %v1729_v34  ;;  %v1780_v17 = vld [vmem:[#allocation7 + $0xc0] ss:$8 sps:$4 sm:$0xff]   ;;  %v1785_v18 = vld [vmem:[#allocation7 + $0x1c4] ss:$8 sps:$4 sm:$0xff]   ;;  %v1788_v19 = vld [vmem:[#allocation7 + $0xd4] ss:$8 sps:$4 sm:$0xff]   ;;  %v171_v34 = vlaneseq }
  0x54   :  { %1045 = vmatprep.subr.bf16.mxu1 %v1734_v35  ;;  %1158 = vmatprep.subr.bf16.mxu0 %v1737_v37  ;;  %v160_v20 = vld [vmem:[#allocation3 + $0x70] sm:$0xff]  ;;  %v161_v21 = vld [vmem:[#allocation3 + $0x78] sm:$0xff]  ;;  %v1783_v22 = vld [vmem:[#allocation7 + $0x1c0] ss:$8 sps:$4 sm:$0xff]  }
  0x55   :  { %1545 = vmatmul.mubr.msk.bf16.gmra.mrb[8].mxu0 %vm231_vm0, %v164_v33  ;;  %1553 = vmatmul.mubr.msk.bf16.gmra.mrb[8].mxu1 %vm231_vm0, %v164_v33  ;;  %v1786_v23 = vld [vmem:[#allocation7 + $0xd0] ss:$8 sps:$4 sm:$0xff]   ;;  %v169_v24 = vpack.c.bf16 %v161_v21, %v160_v20  ;;  %v1791_v25 = vld [vmem:[#allocation7 + $0x1d4] ss:$8 sps:$4 sm:$0xff]   ;;  %v1797_v27 = vld [vmem:[#allocation7 + $0x1e4] ss:$8 sps:$4 sm:$0xff]  }
  0x56   :  { %318 = vmatprep.mubr.bf16.mxu0 %v1881_v1  ;;  %431 = vmatprep.mubr.bf16.mxu1 %v1881_v1  ;;  %v1789_v26 = vld [vmem:[#allocation7 + $0x1d0] ss:$8 sps:$4 sm:$0xff]   ;;  %v1792_v28 = vld [vmem:[#allocation7 + $0xe0] ss:$8 sps:$4 sm:$0xff]   ;;  %v1800_v30 = vld [vmem:[#allocation7 + $0xf4] ss:$8 sps:$4 sm:$0xff]  }
  0x57   :  { %1046 = vmatpush1.bf16.msra.mxu1 %v1732_v36  ;;  %1159 = vmatpush1.bf16.msra.mxu0 %v1735_v41  ;;  %v1795_v29 = vld [vmem:[#allocation7 + $0x1e0] ss:$8 sps:$4 sm:$0xff]   ;;  %v1803_v31 = vld [vmem:[#allocation7 + $0x1f4] ss:$8 sps:$4 sm:$0xff]   ;;  %v1798_v32 = vld [vmem:[#allocation7 + $0xf0] ss:$8 sps:$4 sm:$0xff]  }
  0x58   :  { %1047 = vmatprep.subr.bf16.mxu1 %v1740_v39  ;;  %1160 = vmatprep.subr.bf16.mxu0 %v1743_v43  ;;  %v1801_v33 = vld [vmem:[#allocation7 + $0x1f0] ss:$8 sps:$4 sm:$0xff]   ;;  %v172_v35 = vshrl.u32 %v171_v34, 7  ;;  %v142_v38 = vld [vmem:[%s2384_s2] sm:$0xf] }
  0x5a   :  { %v1993_v36 = vsub.s32 0, %v172_v35  ;;  %v181_v37 = vsub.s32 2, %v172_v35  ;;  %v1998_v39 = vsub.s32 1, %v172_v35  ;;  %v185_v40 = vsub.s32 3, %v172_v35 }
  0x5b   :  { %1048 = vmatpush1.bf16.msra.mxu1 %v1738_v42  ;;  %1161 = vmatpush1.bf16.msra.mxu0 %v1741_v45 }
  0x5c   :  { %1049 = vmatprep.subr.bf16.mxu1 %v1746_v46  ;;  %1162 = vmatprep.subr.bf16.mxu0 %v1749_v48  ;;  %v2001_v41 = vrot.slane %v142_v38, %v1993_v36  ;;  %v2003_v42 = vrot.slane %v142_v38, %v181_v37  ;;  %v2006_v43 = vrot.slane %v142_v38, %v1998_v39 }
  0x5d   :  { %1546 = vmatmul.mubr.msk.bf16.gmra.mrb[12].mxu0 %vm231_vm0, %v165_v44  ;;  %1554 = vmatmul.mubr.msk.bf16.gmra.mrb[12].mxu1 %vm231_vm0, %v165_v44  ;;  %v2008_v44 = vrot.slane %v142_v38, %v185_v40 }
  0x5e   :  { %328 = vmatprep.mubr.bf16.mxu0 %v1881_v1  ;;  %441 = vmatprep.mubr.bf16.mxu1 %v1881_v1 }
  0x5f   :  { %1050 = vmatpush1.bf16.msra.mxu1 %v1744_v47  ;;  %1163 = vmatpush1.bf16.msra.mxu0 %v1747_v52 }
  0x60   :  { %1051 = vmatprep.subr.bf16.mxu1 %v1752_v50  ;;  %1164 = vmatprep.subr.bf16.mxu0 %v1755_v54 }
  0x63   :  { %1052 = vmatpush1.bf16.msra.mxu1 %v1750_v53  ;;  %1165 = vmatpush1.bf16.msra.mxu0 %v1753_v56 }
  0x64   :  { %1053 = vmatprep.subr.bf16.mxu1 %v1758_v57  ;;  %1166 = vmatprep.subr.bf16.mxu0 %v1761_v59 }
  0x65   :  { %1547 = vmatmul.mubr.msk.bf16.gmra.mrb[16].mxu0 %vm231_vm0, %v166_v55  ;;  %1555 = vmatmul.mubr.msk.bf16.gmra.mrb[16].mxu1 %vm231_vm0, %v166_v55 }
  0x66   :  { %338 = vmatprep.mubr.bf16.mxu0 %v1881_v1  ;;  %451 = vmatprep.mubr.bf16.mxu1 %v1881_v1 }
  0x67   :  { %1054 = vmatpush1.bf16.msra.mxu1 %v1756_v58  ;;  %1167 = vmatpush1.bf16.msra.mxu0 %v1759_v63 }
  0x68   :  { %1055 = vmatprep.subr.bf16.mxu1 %v1764_v61  ;;  %1168 = vmatprep.subr.bf16.mxu0 %v1767_v2 }
  0x6b   :  { %1056 = vmatpush1.bf16.msra.mxu1 %v1762_v0  ;;  %1169 = vmatpush1.bf16.msra.mxu0 %v1765_v4 }
  0x6c   :  { %1057 = vmatprep.subr.bf16.mxu1 %v1770_v5  ;;  %1170 = vmatprep.subr.bf16.mxu0 %v1773_v7 }
  0x6d   :  { %1548 = vmatmul.mubr.msk.bf16.gmra.mrb[20].mxu0 %vm231_vm0, %v167_v3  ;;  %1556 = vmatmul.mubr.msk.bf16.gmra.mrb[20].mxu1 %vm231_vm0, %v167_v3 }
  0x6e   :  { %348 = vmatprep.mubr.bf16.mxu0 %v1881_v1  ;;  %461 = vmatprep.mubr.bf16.mxu1 %v1881_v1 }
  0x6f   :  { %1058 = vmatpush1.bf16.msra.mxu1 %v1768_v6  ;;  %1171 = vmatpush1.bf16.msra.mxu0 %v1771_v11 }
  0x70   :  { %1059 = vmatprep.subr.bf16.mxu1 %v1776_v8  ;;  %1172 = vmatprep.subr.bf16.mxu0 %v1779_v13 }
  0x73   :  { %1060 = vmatpush1.bf16.msra.mxu1 %v1774_v12  ;;  %1173 = vmatpush1.bf16.msra.mxu0 %v1777_v15 }
  0x74   :  { %1061 = vmatprep.subr.bf16.mxu1 %v1782_v16  ;;  %1174 = vmatprep.subr.bf16.mxu0 %v1785_v18 }
  0x75   :  { %1549 = vmatmul.mubr.msk.bf16.gmra.mrb[24].mxu0 %vm231_vm0, %v168_v14  ;;  %1557 = vmatmul.mubr.msk.bf16.gmra.mrb[24].mxu1 %vm231_vm0, %v168_v14 }
  0x76   :  { %358 = vmatprep.mubr.bf16.mxu0 %v1881_v1  ;;  %471 = vmatprep.mubr.bf16.mxu1 %v1881_v1  ;;  %v1794_v1 = vld [vmem:[#allocation7 + $0xe4] ss:$8 sps:$4 sm:$0xff]  }
  0x77   :  { %1062 = vmatpush1.bf16.msra.mxu1 %v1780_v17  ;;  %1175 = vmatpush1.bf16.msra.mxu0 %v1783_v22 }
  0x78   :  { %1063 = vmatprep.subr.bf16.mxu1 %v1788_v19  ;;  %1176 = vmatprep.subr.bf16.mxu0 %v1791_v25 }
  0x7b   :  { %1064 = vmatpush1.bf16.msra.mxu1 %v1786_v23  ;;  %1177 = vmatpush1.bf16.msra.mxu0 %v1789_v26 }
  0x7c   :  { %1065 = vmatprep.subr.bf16.mxu1 %v1794_v1  ;;  %1178 = vmatprep.subr.bf16.mxu0 %v1797_v27 }
  0x7d   :  { %1550 = vmatmul.mubr.msk.bf16.gmra.mrb[28].mxu0 %vm231_vm0, %v169_v24  ;;  %1558 = vmatmul.mubr.msk.bf16.gmra.mrb[28].mxu1 %vm231_vm0, %v169_v24 }
  0x7f   :  { %1066 = vmatpush1.bf16.msra.mxu1 %v1792_v28  ;;  %1179 = vmatpush1.bf16.msra.mxu0 %v1795_v29 }
  0x80   :  { %1067 = vmatprep.subr.bf16.mxu1 %v1800_v30  ;;  %1180 = vmatprep.subr.bf16.mxu0 %v1803_v31 }
  0x83   :  { %1068 = vmatpush1.bf16.msra.mxu1 %v1798_v32  ;;  %1181 = vmatpush1.bf16.msra.mxu0 %v1801_v33 }
 0x118   :  { %v290_v45 = vpop.f32.mrb[0].mxu0  ;;  %v403_v46 = vpop.f32.mrb[0].mxu1 }
 0x119   :  { %v291_v47 = vadd.f32 %v290_v45, %v2001_v41  ;;  %v404_v48 = vadd.f32 %v403_v46, %v2003_v42  ;;  %v292_v49 = vpop.f32.mrb[1].mxu0  ;;  %v405_v50 = vpop.f32.mrb[1].mxu1 }
 0x11a   :  { %v293_v51 = vadd.f32 %v292_v49, %v2006_v43  ;;  %v406_v52 = vadd.f32 %v405_v50, %v2008_v44  ;;  %v294_v53 = vpop.f32.mrb[2].mxu0  ;;  %v407_v54 = vpop.f32.mrb[2].mxu1 }
 0x11b   :  { %vm482_vm1 = vcmp.gt.f32.partialorder %v291_v47, 0.0  ;;  %v546_v55 = vmul.f32 0.2, %v291_v47  ;;  %vm484_vm2 = vcmp.gt.f32.partialorder %v404_v48, 0.0  ;;  %v548_v56 = vmul.f32 0.2, %v404_v48 }
 0x11c   :  { %vm483_vm3 = vcmp.gt.f32.partialorder %v293_v51, 0.0  ;;  %v547_v57 = vmul.f32 0.2, %v293_v51  ;;  %v295_v58 = vadd.f32 %v294_v53, %v2001_v41  ;;  %v408_v59 = vadd.f32 %v407_v54, %v2003_v42  ;;  %v296_v60 = vpop.f32.mrb[3].mxu0  ;;  %v409_v61 = vpop.f32.mrb[3].mxu1 }
 0x11d   :  { %vm485_vm4 = vcmp.gt.f32.partialorder %v406_v52, 0.0  ;;  %v549_v62 = vmul.f32 0.2, %v406_v52  ;;  %v297_v63 = vadd.f32 %v296_v60, %v2006_v43  ;;  %v410_v0 = vadd.f32 %v409_v61, %v2008_v44 }
 0x11e   :  { %vm486_vm5 = vcmp.gt.f32.partialorder %v295_v58, 0.0  ;;  %v550_v2 = vmul.f32 0.2, %v295_v58  ;;  %vm488_vm6 = vcmp.gt.f32.partialorder %v408_v59, 0.0  ;;  %v552_v3 = vmul.f32 0.2, %v408_v59 }
 0x11f   :  { %vm487_vm7 = vcmp.gt.f32.partialorder %v297_v63, 0.0  ;;  %v551_v4 = vmul.f32 0.2, %v297_v63  ;;  %vm489_vm8 = vcmp.gt.f32.partialorder %v410_v0, 0.0  ;;  %v553_v5 = vmul.f32 0.2, %v410_v0 }
 0x120   :  { %v610_v6 = vsel %vm482_vm1, %v291_v47, %v546_v55  ;;  %v612_v7 = vsel %vm484_vm2, %v404_v48, %v548_v56  ;;  %v614_v8 = vsel %vm486_vm5, %v295_v58, %v550_v2  ;;  %v616_v9 = vsel %vm488_vm6, %v408_v59, %v552_v3  ;;  %v300_v10 = vpop.f32.mrb[4].mxu0  ;;  %v413_v11 = vpop.f32.mrb[4].mxu1 }
 0x121   :  { %v674_v12 = vpack.c.bf16 %v614_v8, %v610_v6  ;;  %v676_v13 = vpack.c.bf16 %v616_v9, %v612_v7  ;;  %v301_v14 = vadd.f32 %v300_v10, %v2001_v41  ;;  %v414_v15 = vadd.f32 %v413_v11, %v2003_v42  ;;  %v302_v16 = vpop.f32.mrb[5].mxu0  ;;  %v415_v17 = vpop.f32.mrb[5].mxu1 }
 0x122   :  { %v303_v18 = vadd.f32 %v302_v16, %v2006_v43  ;;  %v416_v19 = vadd.f32 %v415_v17, %v2008_v44  ;;  %v304_v20 = vpop.f32.mrb[6].mxu0  ;;  %v417_v21 = vpop.f32.mrb[6].mxu1  ;;  %v615_v22 = vsel %vm487_vm7, %v297_v63, %v551_v4  ;;  %v617_v23 = vsel %vm489_vm8, %v410_v0, %v553_v5 }
 0x123   :  { %v554_v24 = vmul.f32 0.2, %v301_v14  ;;  %v611_v25 = vsel %vm483_vm3, %v293_v51, %v547_v57  ;;  %v613_v26 = vsel %vm485_vm4, %v406_v52, %v549_v62  ;;  %vm490_vm9 = vcmp.gt.f32.partialorder %v301_v14, 0.0  ;;  %v306_v30 = vpop.f32.mrb[7].mxu0  ;;  %v419_v31 = vpop.f32.mrb[7].mxu1 }
 0x124   :  { %vm492_vm10 = vcmp.gt.f32.partialorder %v414_v15, 0.0  ;;  %v555_v1 = vmul.f32 0.2, %v303_v18  ;;  %v557_v27 = vmul.f32 0.2, %v416_v19  ;;  %v305_v28 = vadd.f32 %v304_v20, %v2001_v41 }
 0x125   :  { %v418_v29 = vadd.f32 %v417_v21, %v2003_v42  ;;  %v675_v32 = vpack.c.bf16 %v615_v22, %v611_v25  ;;  %v677_v33 = vpack.c.bf16 %v617_v23, %v613_v26  ;;  %vm491_vm11 = vcmp.gt.f32.partialorder %v303_v18, 0.0 }
 0x126   :  { %vm493_vm12 = vcmp.gt.f32.partialorder %v416_v19, 0.0  ;;  %v307_v34 = vadd.f32 %v306_v30, %v2006_v43  ;;  %v420_v35 = vadd.f32 %v419_v31, %v2008_v44  ;;  %vm494_vm13 = vcmp.gt.f32.partialorder %v305_v28, 0.0 }
 0x127   :  { %v558_v37 = vmul.f32 0.2, %v305_v28  ;;  %vm496_vm14 = vcmp.gt.f32.partialorder %v418_v29, 0.0  ;;  %v560_v38 = vmul.f32 0.2, %v418_v29  ;;  %1069 = vmatprep.mubr.bf16.mxu1 %v675_v32  ;;  %1182 = vmatprep.mubr.bf16.mxu0 %v677_v33  ;;  %v619_v49 = vsel %vm491_vm11, %v303_v18, %v555_v1 }
 0x128   :  { %vm495_vm15 = vcmp.gt.f32.partialorder %v307_v34, 0.0  ;;  %v559_v40 = vmul.f32 0.2, %v307_v34  ;;  %vm497_vm0 = vcmp.gt.f32.partialorder %v420_v35, 0.0  ;;  %v561_v45 = vmul.f32 0.2, %v420_v35  ;;  %1070 = vmatmul.mubr.bf16.vlgmr.msra.gmra.mrb[32].mxu1 %v674_v12  ;;  %1183 = vmatmul.mubr.bf16.vlgmr.msra.gmra.mrb[32].mxu0 %v676_v13 }
 0x129   :  { %v556_v46 = vmul.f32 0.2, %v414_v15  ;;  %v310_v47 = vpop.f32.mrb[8].mxu0  ;;  %v423_v48 = vpop.f32.mrb[8].mxu1  ;;  %v621_v50 = vsel %vm493_vm12, %v416_v19, %v557_v27  ;;  %v622_v51 = vsel %vm494_vm13, %v305_v28, %v558_v37  ;;  %v624_v57 = vsel %vm496_vm14, %v418_v29, %v560_v38 }
 0x12a   :  { %v311_v52 = vadd.f32 %v310_v47, %v2001_v41  ;;  %v312_v53 = vpop.f32.mrb[9].mxu0  ;;  %v425_v54 = vpop.f32.mrb[9].mxu1  ;;  %v623_v55 = vsel %vm495_vm15, %v307_v34, %v559_v40  ;;  %v625_v56 = vsel %vm497_vm0, %v420_v35, %v561_v45  ;;  %v2040_v2 = vadd.f32 %v423_v48, %v2003_v42 }
 0x12b   :  { %v313_v58 = vadd.f32 %v312_v53, %v2006_v43  ;;  %v426_v59 = vadd.f32 %v425_v54, %v2008_v44  ;;  %v314_v60 = vpop.f32.mrb[10].mxu0  ;;  %v427_v61 = vpop.f32.mrb[10].mxu1  ;;  %v679_v62 = vpack.c.bf16 %v623_v55, %v619_v49  ;;  %v681_v63 = vpack.c.bf16 %v625_v56, %v621_v50 }
 0x12c   :  { %v562_v0 = vmul.f32 0.2, %v311_v52  ;;  %v618_v3 = vsel %vm490_vm9, %v301_v14, %v554_v24  ;;  %v620_v4 = vsel %vm492_vm10, %v414_v15, %v556_v46  ;;  %v315_v5 = vadd.f32 %v314_v60, %v2001_v41  ;;  %v316_v6 = vpop.f32.mrb[11].mxu0  ;;  %v429_v7 = vpop.f32.mrb[11].mxu1 }
 0x12d   :  { %1079 = vmatprep.mubr.bf16.mxu1 %v679_v62  ;;  %1192 = vmatprep.mubr.bf16.mxu0 %v681_v63  ;;  %vm499_vm1 = vcmp.gt.f32.partialorder %v313_v58, 0.0  ;;  %v678_v8 = vpack.c.bf16 %v622_v51, %v618_v3  ;;  %v680_v9 = vpack.c.bf16 %v624_v57, %v620_v4  ;;  %v563_v10 = vmul.f32 0.2, %v313_v58 }
 0x12e   :  { %vm501_vm2 = vcmp.gt.f32.partialorder %v426_v59, 0.0  ;;  %v317_v11 = vadd.f32 %v316_v6, %v2006_v43  ;;  %v430_v12 = vadd.f32 %v429_v7, %v2008_v44  ;;  %v565_v17 = vmul.f32 0.2, %v426_v59 }
 0x12f   :  { %vm502_vm3 = vcmp.gt.f32.partialorder %v315_v5, 0.0  ;;  %v566_v14 = vmul.f32 0.2, %v315_v5  ;;  %v428_v15 = vadd.f32 %v427_v61, %v2003_v42  ;;  %vm498_vm6 = vcmp.gt.f32.partialorder %v311_v52, 0.0 }
 0x130   :  { %v320_v13 = vpop.f32.mrb[12].mxu0  ;;  %v433_v16 = vpop.f32.mrb[12].mxu1  ;;  %1080 = vmatmul.mubr.bf16.gmra.mrb[36].mxu1 %v678_v8  ;;  %1193 = vmatmul.mubr.bf16.gmra.mrb[36].mxu0 %v680_v9  ;;  %vm503_vm4 = vcmp.gt.f32.partialorder %v317_v11, 0.0  ;;  %v567_v18 = vmul.f32 0.2, %v317_v11  ;;  %vm505_vm5 = vcmp.gt.f32.partialorder %v430_v12, 0.0  ;;  %v627_v29 = vsel %vm499_vm1, %v313_v58, %v563_v10 }
 0x131   :  { %v569_v19 = vmul.f32 0.2, %v430_v12  ;;  %vm500_vm7 = vcmp.gt.f32.partialorder %v2040_v2, 0.0  ;;  %v2050_v20 = vadd.f32 %v320_v13, %v2001_v41  ;;  %v322_v21 = vpop.f32.mrb[13].mxu0  ;;  %v435_v22 = vpop.f32.mrb[13].mxu1  ;;  %v2054_v24 = vadd.f32 %v433_v16, %v2003_v42 }
 0x132   :  { %v564_v23 = vmul.f32 0.2, %v2040_v2  ;;  %v324_v25 = vpop.f32.mrb[14].mxu0  ;;  %v437_v26 = vpop.f32.mrb[14].mxu1  ;;  %v631_v1 = vsel %vm503_vm4, %v317_v11, %v567_v18  ;;  %v323_v28 = vadd.f32 %v322_v21, %v2006_v43  ;;  %v629_v30 = vsel %vm501_vm2, %v426_v59, %v565_v17 }
 0x133   :  { %v633_v27 = vsel %vm505_vm5, %v430_v12, %v569_v19  ;;  %v630_v31 = vsel %vm502_vm3, %v315_v5, %v566_v14  ;;  %vm504_vm8 = vcmp.gt.f32.partialorder %v428_v15, 0.0  ;;  %v568_v32 = vmul.f32 0.2, %v428_v15  ;;  %v326_v37 = vpop.f32.mrb[15].mxu0  ;;  %v439_v38 = vpop.f32.mrb[15].mxu1 }
 0x134   :  { %v2061_v33 = vadd.f32 %v435_v22, %v2008_v44  ;;  %v626_v34 = vsel %vm498_vm6, %v311_v52, %v562_v0  ;;  %vm506_vm9 = vcmp.gt.f32.partialorder %v2050_v20, 0.0  ;;  %v2066_v35 = vmul.f32 0.2, %v2050_v20 }
 0x135   :  { %v683_v40 = vpack.c.bf16 %v631_v1, %v627_v29  ;;  %v685_v45 = vpack.c.bf16 %v633_v27, %v629_v30  ;;  %vm508_vm10 = vcmp.gt.f32.partialorder %v2054_v24, 0.0  ;;  %v327_v46 = vadd.f32 %v326_v37, %v2006_v43 }
 0x136   :  { %v440_v47 = vadd.f32 %v439_v38, %v2008_v44  ;;  %v682_v48 = vpack.c.bf16 %v630_v31, %v626_v34  ;;  %v572_v51 = vmul.f32 0.2, %v2054_v24  ;;  %vm507_vm11 = vcmp.gt.f32.partialorder %v323_v28, 0.0 }
 0x137   :  { %v571_v52 = vmul.f32 0.2, %v323_v28  ;;  %v325_v53 = vadd.f32 %v324_v25, %v2001_v41  ;;  %1089 = vmatprep.mubr.bf16.mxu1 %v683_v40  ;;  %1202 = vmatprep.mubr.bf16.mxu0 %v685_v45  ;;  %vm509_vm12 = vcmp.gt.f32.partialorder %v2061_v33, 0.0  ;;  %v438_v54 = vadd.f32 %v437_v26, %v2003_v42 }
 0x138   :  { %v330_v49 = vpop.f32.mrb[16].mxu0  ;;  %v443_v50 = vpop.f32.mrb[16].mxu1  ;;  %vm511_vm13 = vcmp.gt.f32.partialorder %v327_v46, 0.0  ;;  %v575_v55 = vmul.f32 0.2, %v327_v46  ;;  %1090 = vmatmul.mubr.bf16.gmra.mrb[40].mxu1 %v682_v48  ;;  %v628_v56 = vsel %vm500_vm7, %v2040_v2, %v564_v23  ;;  %v632_v57 = vsel %vm504_vm8, %v428_v15, %v568_v32 }
 0x139   :  { %v2080_v58 = vadd.f32 %v330_v49, %v2001_v41  ;;  %v2083_v59 = vadd.f32 %v443_v50, %v2003_v42  ;;  %v332_v60 = vpop.f32.mrb[17].mxu0  ;;  %v445_v61 = vpop.f32.mrb[17].mxu1  ;;  %v577_v62 = vmul.f32 0.2, %v440_v47  ;;  %v684_v63 = vpack.c.bf16 %v632_v57, %v628_v56 }
 0x13a   :  { %v2086_v0 = vadd.f32 %v332_v60, %v2006_v43  ;;  %v334_v3 = vpop.f32.mrb[18].mxu0  ;;  %v447_v4 = vpop.f32.mrb[18].mxu1  ;;  %v639_v5 = vsel %vm511_vm13, %v327_v46, %v575_v55  ;;  %v573_v2 = vmul.f32 0.2, %v2061_v33  ;;  %vm510_vm14 = vcmp.gt.f32.partialorder %v325_v53, 0.0 }
 0x13b   :  { %vm513_vm15 = vcmp.gt.f32.partialorder %v440_v47, 0.0  ;;  %v2090_v6 = vadd.f32 %v445_v61, %v2008_v44  ;;  %v574_v7 = vmul.f32 0.2, %v325_v53  ;;  %vm512_vm0 = vcmp.gt.f32.partialorder %v438_v54, 0.0  ;;  %1203 = vmatmul.mubr.bf16.gmra.mrb[40].mxu0 %v684_v63  ;;  %v336_v13 = vpop.f32.mrb[19].mxu0  ;;  %v449_v16 = vpop.f32.mrb[19].mxu1 }
 0x13c   :  { %v576_v8 = vmul.f32 0.2, %v438_v54  ;;  %v635_v9 = vsel %vm507_vm11, %v323_v28, %v571_v52  ;;  %v2094_v10 = vmul.f32 0.2, %v2080_v58  ;;  %v2097_v11 = vmul.f32 0.2, %v2083_v59 }
 0x13d   :  { %v2100_v12 = vadd.f32 %v334_v3, %v2001_v41  ;;  %v687_v17 = vpack.c.bf16 %v639_v5, %v635_v9  ;;  %vm514_vm1 = vcmp.gt.f32.partialorder %v2080_v58, 0.0  ;;  %vm515_vm2 = vcmp.gt.f32.partialorder %v2086_v0, 0.0 }
 0x13e   :  { %v579_v14 = vmul.f32 0.2, %v2086_v0  ;;  %v641_v15 = vsel %vm513_vm15, %v440_v47, %v577_v62  ;;  %vm516_vm3 = vcmp.gt.f32.partialorder %v2083_v59, 0.0  ;;  %vm517_vm4 = vcmp.gt.f32.partialorder %v2090_v6, 0.0 }
 0x13f   :  { %v581_v21 = vmul.f32 0.2, %v2090_v6  ;;  %v2110_v22 = vadd.f32 %v447_v4, %v2003_v42  ;;  %v337_v23 = vadd.f32 %v336_v13, %v2006_v43  ;;  %1099 = vmatprep.mubr.bf16.mxu1 %v687_v17  ;;  %vm518_vm5 = vcmp.gt.f32.partialorder %v2100_v12, 0.0 }
 0x140   :  { %v340_v18 = vpop.f32.mrb[20].mxu0  ;;  %v453_v19 = vpop.f32.mrb[20].mxu1  ;;  %v450_v25 = vadd.f32 %v449_v16, %v2008_v44  ;;  %v637_v26 = vsel %vm509_vm12, %v2061_v33, %v573_v2  ;;  %v634_v1 = vsel %vm506_vm9, %v2050_v20, %v2066_v35  ;;  %v638_v28 = vsel %vm510_vm14, %v325_v53, %v574_v7 }
 0x141   :  { %v689_v27 = vpack.c.bf16 %v641_v15, %v637_v26  ;;  %v636_v29 = vsel %vm508_vm10, %v2054_v24, %v572_v51  ;;  %v640_v30 = vsel %vm512_vm0, %v438_v54, %v576_v8  ;;  %v342_v31 = vpop.f32.mrb[21].mxu0  ;;  %v455_v32 = vpop.f32.mrb[21].mxu1  ;;  %v686_v34 = vpack.c.bf16 %v638_v28, %v634_v1 }
 0x142   :  { %v688_v37 = vpack.c.bf16 %v640_v30, %v636_v29  ;;  %v2128_v33 = vadd.f32 %v340_v18, %v2001_v41  ;;  %v2131_v38 = vadd.f32 %v453_v19, %v2003_v42  ;;  %v344_v20 = vpop.f32.mrb[22].mxu0  ;;  %v457_v35 = vpop.f32.mrb[22].mxu1  ;;  %v582_v40 = vmul.f32 0.2, %v2100_v12 }
 0x143   :  { %v583_v45 = vmul.f32 0.2, %v337_v23  ;;  %1212 = vmatprep.mubr.bf16.mxu0 %v689_v27  ;;  %v2135_v24 = vadd.f32 %v342_v31, %v2006_v43  ;;  %v2138_v46 = vadd.f32 %v455_v32, %v2008_v44  ;;  %v346_v47 = vpop.f32.mrb[23].mxu0  ;;  %v459_v48 = vpop.f32.mrb[23].mxu1  ;;  %vm519_vm6 = vcmp.gt.f32.partialorder %v337_v23, 0.0  ;;  %1100 = vmatmul.mubr.bf16.gmra.mrb[44].mxu1 %v686_v34 }
 0x144   :  { %v585_v49 = vmul.f32 0.2, %v450_v25  ;;  %1213 = vmatmul.mubr.bf16.gmra.mrb[44].mxu0 %v688_v37  ;;  %v2141_v50 = vadd.f32 %v344_v20, %v2001_v41  ;;  %v2144_v51 = vadd.f32 %v457_v35, %v2003_v42  ;;  %vm520_vm7 = vcmp.gt.f32.partialorder %v2110_v22, 0.0 }
 0x145   :  { %v584_v52 = vmul.f32 0.2, %v2110_v22  ;;  %vm521_vm8 = vcmp.gt.f32.partialorder %v450_v25, 0.0  ;;  %v2149_v53 = vmul.f32 0.2, %v2128_v33  ;;  %vm522_vm9 = vcmp.gt.f32.partialorder %v2128_v33, 0.0 }
 0x146   :  { %v2153_v54 = vmul.f32 0.2, %v2131_v38  ;;  %vm523_vm10 = vcmp.gt.f32.partialorder %v2135_v24, 0.0  ;;  %v587_v55 = vmul.f32 0.2, %v2135_v24  ;;  %vm525_vm11 = vcmp.gt.f32.partialorder %v2138_v46, 0.0 }
 0x147   :  { %v589_v56 = vmul.f32 0.2, %v2138_v46  ;;  %v347_v57 = vadd.f32 %v346_v47, %v2006_v43  ;;  %v643_v60 = vsel %vm515_vm2, %v2086_v0, %v579_v14  ;;  %v647_v61 = vsel %vm519_vm6, %v337_v23, %v583_v45 }
 0x148   :  { %v350_v62 = vpop.f32.mrb[24].mxu0  ;;  %v463_v63 = vpop.f32.mrb[24].mxu1  ;;  %vm524_vm12 = vcmp.gt.f32.partialorder %v2131_v38, 0.0  ;;  %vm526_vm13 = vcmp.gt.f32.partialorder %v2141_v50, 0.0  ;;  %v2167_v3 = vmul.f32 0.2, %v2141_v50  ;;  %v691_v5 = vpack.c.bf16 %v647_v61, %v643_v60 }
 0x149   :  { %v2170_v4 = vmul.f32 0.2, %v2144_v51  ;;  %v649_v2 = vsel %vm521_vm8, %v450_v25, %v585_v49  ;;  %v352_v7 = vpop.f32.mrb[25].mxu0  ;;  %v465_v8 = vpop.f32.mrb[25].mxu1  ;;  %v591_v0 = vmul.f32 0.2, %v347_v57  ;;  %v460_v9 = vadd.f32 %v459_v48, %v2008_v44 }
 0x14a   :  { %v645_v13 = vsel %vm517_vm4, %v2090_v6, %v581_v21  ;;  %v642_v16 = vsel %vm514_vm1, %v2080_v58, %v2094_v10  ;;  %1109 = vmatprep.mubr.bf16.mxu1 %v691_v5  ;;  %v646_v14 = vsel %vm518_vm5, %v2100_v12, %v582_v40  ;;  %v644_v15 = vsel %vm516_vm3, %v2083_v59, %v2097_v11  ;;  %v354_v18 = vpop.f32.mrb[26].mxu0  ;;  %v467_v19 = vpop.f32.mrb[26].mxu1 }
 0x14b   :  { %v693_v17 = vpack.c.bf16 %v649_v2, %v645_v13  ;;  %v648_v6 = vsel %vm520_vm7, %v2110_v22, %v584_v52  ;;  %v690_v21 = vpack.c.bf16 %v646_v14, %v642_v16  ;;  %v2192_v58 = vadd.f32 %v350_v62, %v2001_v41  ;;  %v356_v12 = vpop.f32.mrb[27].mxu0  ;;  %v469_v25 = vpop.f32.mrb[27].mxu1 }
 0x14c   :  { %v692_v23 = vpack.c.bf16 %v648_v6, %v644_v15  ;;  %v2195_v10 = vadd.f32 %v463_v63, %v2003_v42  ;;  %v2198_v26 = vadd.f32 %v352_v7, %v2006_v43  ;;  %v2201_v59 = vadd.f32 %v465_v8, %v2008_v44 }
 0x14d   :  { %1222 = vmatprep.mubr.bf16.mxu0 %v693_v17  ;;  %v2204_v11 = vadd.f32 %v354_v18, %v2001_v41  ;;  %v2207_v22 = vadd.f32 %v467_v19, %v2003_v42  ;;  %vm528_vm14 = vcmp.gt.f32.partialorder %v2144_v51, 0.0  ;;  %vm527_vm15 = vcmp.gt.f32.partialorder %v347_v57, 0.0  ;;  %1110 = vmatmul.mubr.bf16.gmra.mrb[48].mxu1 %v690_v21 }
 0x14e   :  { %v593_v1 = vmul.f32 0.2, %v460_v9  ;;  %1223 = vmatmul.mubr.bf16.gmra.mrb[48].mxu0 %v692_v23  ;;  %v2211_v27 = vmul.f32 0.2, %v2192_v58  ;;  %vm529_vm0 = vcmp.gt.f32.partialorder %v460_v9, 0.0  ;;  %vm531_vm1 = vcmp.gt.f32.partialorder %v2198_v26, 0.0 }
 0x14f   :  { %v2214_v28 = vmul.f32 0.2, %v2195_v10  ;;  %v595_v29 = vmul.f32 0.2, %v2198_v26  ;;  %vm530_vm2 = vcmp.gt.f32.partialorder %v2192_v58, 0.0  ;;  %vm533_vm3 = vcmp.gt.f32.partialorder %v2201_v59, 0.0 }
 0x150   :  { %v597_v30 = vmul.f32 0.2, %v2201_v59  ;;  %v2222_v31 = vmul.f32 0.2, %v2204_v11  ;;  %v2225_v32 = vmul.f32 0.2, %v2207_v22  ;;  %v357_v34 = vadd.f32 %v356_v12, %v2006_v43 }
 0x151   :  { %v470_v37 = vadd.f32 %v469_v25, %v2008_v44  ;;  %v651_v20 = vsel %vm523_vm10, %v2135_v24, %v587_v55  ;;  %v655_v35 = vsel %vm527_vm15, %v347_v57, %v591_v0  ;;  %v360_v40 = vpop.f32.mrb[28].mxu0  ;;  %v473_v45 = vpop.f32.mrb[28].mxu1  ;;  %vm532_vm4 = vcmp.gt.f32.partialorder %v2195_v10, 0.0 }
 0x152   :  { %vm534_vm5 = vcmp.gt.f32.partialorder %v2204_v11, 0.0  ;;  %vm536_vm6 = vcmp.gt.f32.partialorder %v2207_v22, 0.0  ;;  %v695_v47 = vpack.c.bf16 %v655_v35, %v651_v20  ;;  %v653_v48 = vsel %vm525_vm11, %v2138_v46, %v589_v56  ;;  %v362_v52 = vpop.f32.mrb[29].mxu0  ;;  %v475_v55 = vpop.f32.mrb[29].mxu1  ;;  %v143_v20 = vld [vmem:[%s2386_s4] sm:$0x3] }
 0x153   :  { %v657_v49 = vsel %vm529_vm0, %v460_v9, %v593_v1  ;;  %v650_v24 = vsel %vm522_vm9, %v2128_v33, %v2149_v53  ;;  %vm535_vm7 = vcmp.gt.f32.partialorder %v357_v34, 0.0  ;;  %v599_v57 = vmul.f32 0.2, %v357_v34  ;;  %v364_v53 = vpop.f32.mrb[30].mxu0  ;;  %v477_v62 = vpop.f32.mrb[30].mxu1 }
 0x154   :  { %vm537_vm8 = vcmp.gt.f32.partialorder %v470_v37, 0.0  ;;  %v601_v60 = vmul.f32 0.2, %v470_v37  ;;  %1119 = vmatprep.mubr.bf16.mxu1 %v695_v47  ;;  %v697_v61 = vpack.c.bf16 %v657_v49, %v653_v48  ;;  %v654_v46 = vsel %vm526_vm13, %v2141_v50, %v2167_v3  ;;  %v366_v8 = vpop.f32.mrb[31].mxu0  ;;  %v479_v50 = vpop.f32.mrb[31].mxu1 }
 0x155   :  { %v652_v56 = vsel %vm524_vm12, %v2131_v38, %v2153_v54  ;;  %v656_v33 = vsel %vm528_vm14, %v2144_v51, %v2170_v4  ;;  %v694_v63 = vpack.c.bf16 %v654_v46, %v650_v24  ;;  %v361_v2 = vadd.f32 %v360_v40, %v2001_v41 }
 0x156   :  { %v696_v5 = vpack.c.bf16 %v656_v33, %v652_v56  ;;  %v474_v7 = vadd.f32 %v473_v45, %v2003_v42  ;;  %1232 = vmatprep.mubr.bf16.mxu0 %v697_v61  ;;  %v363_v3 = vadd.f32 %v362_v52, %v2006_v43  ;;  %v476_v38 = vadd.f32 %v475_v55, %v2008_v44  ;;  %v144_v52 = vld [vmem:[%s2387_s5] sm:$0x3] }
 0x157   :  { %v365_v54 = vadd.f32 %v364_v53, %v2001_v41  ;;  %v478_v0 = vadd.f32 %v477_v62, %v2003_v42  ;;  %1120 = vmatmul.mubr.bf16.gmra.mrb[52].mxu1 %v694_v63  ;;  %vm538_vm9 = vcmp.gt.f32.partialorder %v361_v2, 0.0  ;;  %v602_v51 = vmul.f32 0.2, %v361_v2 }
 0x158   :  { %1233 = vmatmul.mubr.bf16.gmra.mrb[52].mxu0 %v696_v5  ;;  %vm540_vm10 = vcmp.gt.f32.partialorder %v474_v7, 0.0  ;;  %v604_v4 = vmul.f32 0.2, %v474_v7  ;;  %vm539_vm11 = vcmp.gt.f32.partialorder %v363_v3, 0.0  ;;  %v603_v9 = vmul.f32 0.2, %v363_v3 }
 0x159   :  { %vm541_vm12 = vcmp.gt.f32.partialorder %v476_v38, 0.0  ;;  %v605_v13 = vmul.f32 0.2, %v476_v38  ;;  %vm542_vm13 = vcmp.gt.f32.partialorder %v365_v54, 0.0  ;;  %v606_v16 = vmul.f32 0.2, %v365_v54 }
 0x15a   :  { %vm544_vm14 = vcmp.gt.f32.partialorder %v478_v0, 0.0  ;;  %v608_v17 = vmul.f32 0.2, %v478_v0  ;;  %v367_v14 = vadd.f32 %v366_v8, %v2006_v43  ;;  %v480_v41 = vadd.f32 %v479_v50, %v2008_v44 }
 0x15b   :  { %v659_v42 = vsel %vm531_vm1, %v2198_v26, %v595_v29  ;;  %v663_v15 = vsel %vm535_vm7, %v357_v34, %v599_v57  ;;  %v661_v18 = vsel %vm533_vm3, %v2201_v59, %v597_v30  ;;  %v665_v19 = vsel %vm537_vm8, %v470_v37, %v601_v60 }
 0x15c   :  { %v699_v6 = vpack.c.bf16 %v663_v15, %v659_v42  ;;  %v658_v43 = vsel %vm530_vm2, %v2192_v58, %v2211_v27  ;;  %vm543_vm15 = vcmp.gt.f32.partialorder %v367_v14, 0.0  ;;  %v607_v44 = vmul.f32 0.2, %v367_v14 }
 0x15d   :  { %vm545_vm0 = vcmp.gt.f32.partialorder %v480_v41, 0.0  ;;  %v609_v21 = vmul.f32 0.2, %v480_v41  ;;  %v701_v23 = vpack.c.bf16 %v665_v19, %v661_v18  ;;  %v662_v12 = vsel %vm534_vm5, %v2204_v11, %v2222_v31 }
 0x15e   :  { %1129 = vmatprep.mubr.bf16.mxu1 %v699_v6  ;;  %v660_v25 = vsel %vm532_vm4, %v2195_v10, %v2214_v28  ;;  %v664_v58 = vsel %vm536_vm6, %v2207_v22, %v2225_v32  ;;  %v698_v26 = vpack.c.bf16 %v662_v12, %v658_v43  ;;  %v667_v1 = vsel %vm539_vm11, %v363_v3, %v603_v9 }
 0x15f   :  { %v700_v59 = vpack.c.bf16 %v664_v58, %v660_v25  ;;  %v671_v27 = vsel %vm543_vm15, %v367_v14, %v607_v44  ;;  %1242 = vmatprep.mubr.bf16.mxu0 %v701_v23  ;;  %v669_v30 = vsel %vm541_vm12, %v476_v38, %v605_v13  ;;  %v673_v11 = vsel %vm545_vm0, %v480_v41, %v609_v21 }
 0x160   :  { %v703_v29 = vpack.c.bf16 %v671_v27, %v667_v1  ;;  %1130 = vmatmul.mubr.bf16.gmra.mrb[56].mxu1 %v698_v26  ;;  %v705_v31 = vpack.c.bf16 %v673_v11, %v669_v30  ;;  %v666_v10 = vsel %vm538_vm9, %v361_v2, %v602_v51  ;;  %v670_v28 = vsel %vm542_vm13, %v365_v54, %v606_v16 }
 0x161   :  { %1243 = vmatmul.mubr.bf16.gmra.mrb[56].mxu0 %v700_v59  ;;  %v702_v34 = vpack.c.bf16 %v670_v28, %v666_v10  ;;  %v668_v22 = vsel %vm540_vm10, %v474_v7, %v604_v4  ;;  %v672_v32 = vsel %vm544_vm14, %v478_v0, %v608_v17  ;;  %v2298_v35 = vrot.slane %v143_v20, %v1993_v36 }
 0x162   :  { %1139 = vmatprep.mubr.bf16.mxu1 %v703_v29  ;;  %1252 = vmatprep.mubr.bf16.mxu0 %v705_v31  ;;  %v704_v37 = vpack.c.bf16 %v672_v32, %v668_v22  ;;  %v2301_v40 = vrot.slane %v143_v20, %v1998_v39  ;;  %v2311_v63 = vrot.slane %v144_v52, %v1993_v36 }
 0x163   :  { %v2314_v7 = vrot.slane %v144_v52, %v1998_v39 }
 0x168   :  { %1140 = vmatmul.mubr.bf16.gmra.mrb[60].mxu1 %v702_v34 }
 0x169   :  { %1253 = vmatmul.mubr.bf16.gmra.mrb[60].mxu0 %v704_v37 }
 0x1fb   :  { %v1071_v45 = vpop.f32.mrb[32].mxu1  ;;  %v1184_v47 = vpop.f32.mrb[32].mxu0 }
 0x1fc   :  { %v1072_v48 = vadd.f32 %v1071_v45, %v2298_v35  ;;  %v1073_v49 = vpop.f32.mrb[33].mxu1  ;;  %v1186_v24 = vpop.f32.mrb[33].mxu0 }
 0x1fd   :  { %v1074_v55 = vadd.f32 %v1073_v49, %v2301_v40  ;;  %v1075_v57 = vpop.f32.mrb[34].mxu1  ;;  %v1188_v60 = vpop.f32.mrb[34].mxu0 }
 0x1fe   :  { %v1185_v61 = vadd.f32 %v1184_v47, %v1072_v48  ;;  %v1076_v46 = vadd.f32 %v1075_v57, %v2298_v35  ;;  %v1077_v56 = vpop.f32.mrb[35].mxu1  ;;  %v1190_v33 = vpop.f32.mrb[35].mxu0 }
 0x1ff   :  { %v1187_v53 = vadd.f32 %v1186_v24, %v1074_v55  ;;  %v1078_v62 = vadd.f32 %v1077_v56, %v2301_v40 }
 0x200   :  { %vm1263_vm1 = vcmp.gt.f32.partialorder %v1185_v61, 0.0  ;;  %v1295_v5 = vmul.f32 0.2, %v1185_v61  ;;  %v1189_v2 = vadd.f32 %v1188_v60, %v1076_v46 }
 0x201   :  { %vm1264_vm2 = vcmp.gt.f32.partialorder %v1187_v53, 0.0  ;;  %v1296_v8 = vmul.f32 0.2, %v1187_v53  ;;  %v1191_v50 = vadd.f32 %v1190_v33, %v1078_v62 }
 0x202   :  { %vm1265_vm3 = vcmp.gt.f32.partialorder %v1189_v2, 0.0  ;;  %v1297_v3 = vmul.f32 0.2, %v1189_v2  ;;  %v1327_v38 = vsel %vm1263_vm1, %v1185_v61, %v1295_v5 }
 0x203   :  { %vm1266_vm4 = vcmp.gt.f32.partialorder %v1191_v50, 0.0  ;;  %v1298_v54 = vmul.f32 0.2, %v1191_v50  ;;  %v1081_v0 = vpop.f32.mrb[36].mxu1  ;;  %v1194_v51 = vpop.f32.mrb[36].mxu0  ;;  %v1328_v4 = vsel %vm1264_vm2, %v1187_v53, %v1296_v8  ;;  %v1370_v36 = vmul.f32 %v2311_v63, %v1327_v38 }
 0x204   :  { %v1082_v9 = vadd.f32 %v1081_v0, %v2298_v35  ;;  %v1083_v13 = vpop.f32.mrb[37].mxu1  ;;  %v1196_v16 = vpop.f32.mrb[37].mxu0  ;;  %v1371_v39 = vmul.f32 %v2314_v7, %v1328_v4  ;;  %v1329_v17 = vsel %vm1265_vm3, %v1189_v2, %v1297_v3 }
 0x205   :  { %v1084_v14 = vadd.f32 %v1083_v13, %v2301_v40  ;;  %v1085_v41 = vpop.f32.mrb[38].mxu1  ;;  %v1198_v42 = vpop.f32.mrb[38].mxu0  ;;  %v1330_v15 = vsel %vm1266_vm4, %v1191_v50, %v1298_v54  ;;  %v1372_v6 = vmul.f32 %v2311_v63, %v1329_v17 }
 0x206   :  { %v1195_v18 = vadd.f32 %v1194_v51, %v1082_v9  ;;  %v1086_v19 = vadd.f32 %v1085_v41, %v2298_v35  ;;  %v1087_v43 = vpop.f32.mrb[39].mxu1  ;;  %v1200_v44 = vpop.f32.mrb[39].mxu0  ;;  %v1402_v21 = vadd.f32 %v1371_v39, %v1370_v36  ;;  %v1373_v23 = vmul.f32 %v2314_v7, %v1330_v15 }
 0x207   :  { %v1197_v12 = vadd.f32 %v1196_v16, %v1084_v14  ;;  %v1088_v25 = vadd.f32 %v1087_v43, %v2301_v40 }
 0x208   :  { %vm1267_vm5 = vcmp.gt.f32.partialorder %v1195_v18, 0.0  ;;  %v1299_v58 = vmul.f32 0.2, %v1195_v18  ;;  %v1199_v26 = vadd.f32 %v1198_v42, %v1086_v19  ;;  %1403 = vadd.xlane.f32.xlu0 %v1402_v21  ;;  %v1405_v59 = vadd.f32 %v1373_v23, %v1372_v6 }
 0x209   :  { %vm1268_vm6 = vcmp.gt.f32.partialorder %v1197_v12, 0.0  ;;  %v1300_v1 = vmul.f32 0.2, %v1197_v12  ;;  %v1201_v27 = vadd.f32 %v1200_v44, %v1088_v25 }
 0x20a   :  { %vm1269_vm7 = vcmp.gt.f32.partialorder %v1199_v26, 0.0  ;;  %v1301_v29 = vmul.f32 0.2, %v1199_v26  ;;  %v1331_v30 = vsel %vm1267_vm5, %v1195_v18, %v1299_v58 }
 0x20b   :  { %vm1270_vm8 = vcmp.gt.f32.partialorder %v1201_v27, 0.0  ;;  %v1302_v11 = vmul.f32 0.2, %v1201_v27  ;;  %v1332_v31 = vsel %vm1268_vm6, %v1197_v12, %v1300_v1  ;;  %v1374_v10 = vmul.f32 %v2311_v63, %v1331_v30  ;;  %v1091_v28 = vpop.f32.mrb[40].mxu1 }
 0x20c   :  { %1406 = vadd.xlane.f32.xlu0 %v1405_v59  ;;  %v1375_v34 = vmul.f32 %v2314_v7, %v1332_v31  ;;  %v1333_v22 = vsel %vm1269_vm7, %v1199_v26, %v1301_v29  ;;  %v1092_v32 = vadd.f32 %v1091_v28, %v2298_v35  ;;  %v1093_v37 = vpop.f32.mrb[41].mxu1 }
 0x20d   :  { %v1334_v20 = vsel %vm1270_vm8, %v1201_v27, %v1302_v11  ;;  %v1376_v45 = vmul.f32 %v2311_v63, %v1333_v22  ;;  %v1094_v47 = vadd.f32 %v1093_v37, %v2301_v40  ;;  %v1095_v48 = vpop.f32.mrb[42].mxu1 }
 0x20e   :  { %v1408_v49 = vadd.f32 %v1375_v34, %v1374_v10  ;;  %v1377_v24 = vmul.f32 %v2314_v7, %v1334_v20  ;;  %v1096_v52 = vadd.f32 %v1095_v48, %v2298_v35  ;;  %v1097_v55 = vpop.f32.mrb[43].mxu1  ;;  %v1204_v57 = vpop.f32.mrb[40].mxu0 }
 0x20f   :  { %v1098_v60 = vadd.f32 %v1097_v55, %v2301_v40  ;;  %v1205_v46 = vadd.f32 %v1204_v57, %v1092_v32  ;;  %v1206_v56 = vpop.f32.mrb[41].mxu0 }
 0x210   :  { %1409 = vadd.xlane.f32.xlu1 %v1408_v49  ;;  %v1411_v61 = vadd.f32 %v1377_v24, %v1376_v45  ;;  %v1207_v33 = vadd.f32 %v1206_v56, %v1094_v47  ;;  %v1208_v53 = vpop.f32.mrb[42].mxu0 }
 0x211   :  { %vm1271_vm9 = vcmp.gt.f32.partialorder %v1205_v46, 0.0  ;;  %v1303_v62 = vmul.f32 0.2, %v1205_v46  ;;  %v1209_v5 = vadd.f32 %v1208_v53, %v1096_v52  ;;  %v1210_v2 = vpop.f32.mrb[43].mxu0 }
 0x212   :  { %vm1272_vm10 = vcmp.gt.f32.partialorder %v1207_v33, 0.0  ;;  %v1304_v8 = vmul.f32 0.2, %v1207_v33  ;;  %v1211_v50 = vadd.f32 %v1210_v2, %v1098_v60 }
 0x213   :  { %vm1273_vm11 = vcmp.gt.f32.partialorder %v1209_v5, 0.0  ;;  %v1305_v3 = vmul.f32 0.2, %v1209_v5  ;;  %v1335_v38 = vsel %vm1271_vm9, %v1205_v46, %v1303_v62 }
 0x214   :  { %1412 = vadd.xlane.f32.xlu1 %v1411_v61  ;;  %vm1274_vm12 = vcmp.gt.f32.partialorder %v1211_v50, 0.0  ;;  %v1306_v54 = vmul.f32 0.2, %v1211_v50  ;;  %v1336_v0 = vsel %vm1272_vm10, %v1207_v33, %v1304_v8  ;;  %v1378_v51 = vmul.f32 %v2311_v63, %v1335_v38 }
 0x215   :  { %v1379_v4 = vmul.f32 %v2314_v7, %v1336_v0  ;;  %v1337_v36 = vsel %vm1273_vm11, %v1209_v5, %v1305_v3 }
 0x216   :  { %v1101_v9 = vpop.f32.mrb[44].mxu1  ;;  %v1338_v16 = vsel %vm1274_vm12, %v1211_v50, %v1306_v54  ;;  %v1380_v39 = vmul.f32 %v2311_v63, %v1337_v36 }
 0x217   :  { %v1214_v13 = vpop.f32.mrb[44].mxu0  ;;  %v1102_v17 = vadd.f32 %v1101_v9, %v2298_v35  ;;  %v1103_v14 = vpop.f32.mrb[45].mxu1  ;;  %v1414_v42 = vadd.f32 %v1379_v4, %v1378_v51  ;;  %v1381_v15 = vmul.f32 %v2314_v7, %v1338_v16 }
 0x218   :  { %v1216_v41 = vpop.f32.mrb[45].mxu0  ;;  %v1104_v6 = vadd.f32 %v1103_v14, %v2301_v40  ;;  %v1105_v18 = vpop.f32.mrb[46].mxu1 }
 0x219   :  { %v1218_v19 = vpop.f32.mrb[46].mxu0  ;;  %v1215_v43 = vadd.f32 %v1214_v13, %v1102_v17  ;;  %v1106_v44 = vadd.f32 %v1105_v18, %v2298_v35  ;;  %v1107_v21 = vpop.f32.mrb[47].mxu1  ;;  %1415 = vadd.xlane.f32.xlu0 %v1414_v42  ;;  %v1417_v12 = vadd.f32 %v1381_v15, %v1380_v39 }
 0x21a   :  { %v1220_v23 = vpop.f32.mrb[47].mxu0  ;;  %v1217_v25 = vadd.f32 %v1216_v41, %v1104_v6  ;;  %v1108_v58 = vadd.f32 %v1107_v21, %v2301_v40 }
 0x21b   :  { %vm1275_vm13 = vcmp.gt.f32.partialorder %v1215_v43, 0.0  ;;  %v1307_v26 = vmul.f32 0.2, %v1215_v43  ;;  %v1219_v59 = vadd.f32 %v1218_v19, %v1106_v44  ;;  %1418 = vadd.xlane.f32.xlu1 %v1417_v12 }
 0x21c   :  { %vm1276_vm14 = vcmp.gt.f32.partialorder %v1217_v25, 0.0  ;;  %v1308_v1 = vmul.f32 0.2, %v1217_v25  ;;  %v1221_v27 = vadd.f32 %v1220_v23, %v1108_v58 }
 0x21d   :  { %vm1277_vm15 = vcmp.gt.f32.partialorder %v1219_v59, 0.0  ;;  %v1309_v29 = vmul.f32 0.2, %v1219_v59  ;;  %v1339_v30 = vsel %vm1275_vm13, %v1215_v43, %v1307_v26 }
 0x21e   :  { %vm1278_vm0 = vcmp.gt.f32.partialorder %v1221_v27, 0.0  ;;  %v1310_v11 = vmul.f32 0.2, %v1221_v27  ;;  %v1340_v31 = vsel %vm1276_vm14, %v1217_v25, %v1308_v1  ;;  %v1382_v10 = vmul.f32 %v2311_v63, %v1339_v30 }
 0x21f   :  { %v1383_v22 = vmul.f32 %v2314_v7, %v1340_v31  ;;  %v1341_v32 = vsel %vm1277_vm15, %v1219_v59, %v1309_v29 }
 0x220   :  { %v1111_v28 = vpop.f32.mrb[48].mxu1  ;;  %v1342_v47 = vsel %vm1278_vm0, %v1221_v27, %v1310_v11  ;;  %v1384_v48 = vmul.f32 %v2311_v63, %v1341_v32 }
 0x221   :  { %v1224_v34 = vpop.f32.mrb[48].mxu0  ;;  %v1112_v37 = vadd.f32 %v1111_v28, %v2298_v35  ;;  %v1113_v20 = vpop.f32.mrb[49].mxu1  ;;  %v1420_v55 = vadd.f32 %v1383_v22, %v1382_v10  ;;  %v1385_v57 = vmul.f32 %v2314_v7, %v1342_v47 }
 0x222   :  { %v1226_v45 = vpop.f32.mrb[49].mxu0  ;;  %v1114_v49 = vadd.f32 %v1113_v20, %v2301_v40  ;;  %v1115_v24 = vpop.f32.mrb[50].mxu1 }
 0x223   :  { %v1228_v52 = vpop.f32.mrb[50].mxu0  ;;  %v1225_v60 = vadd.f32 %v1224_v34, %v1112_v37  ;;  %v1116_v61 = vadd.f32 %v1115_v24, %v2298_v35  ;;  %v1117_v46 = vpop.f32.mrb[51].mxu1  ;;  %1421 = vadd.xlane.f32.xlu0 %v1420_v55  ;;  %v1423_v62 = vadd.f32 %v1385_v57, %v1384_v48 }
 0x224   :  { %v1230_v56 = vpop.f32.mrb[51].mxu0  ;;  %v1227_v33 = vadd.f32 %v1226_v45, %v1114_v49  ;;  %v1118_v53 = vadd.f32 %v1117_v46, %v2301_v40 }
 0x225   :  { %vm1279_vm1 = vcmp.gt.f32.partialorder %v1225_v60, 0.0  ;;  %v1311_v5 = vmul.f32 0.2, %v1225_v60  ;;  %v1229_v2 = vadd.f32 %v1228_v52, %v1116_v61  ;;  %1424 = vadd.xlane.f32.xlu1 %v1423_v62 }
 0x226   :  { %vm1280_vm2 = vcmp.gt.f32.partialorder %v1227_v33, 0.0  ;;  %v1312_v8 = vmul.f32 0.2, %v1227_v33  ;;  %v1231_v50 = vadd.f32 %v1230_v56, %v1118_v53 }
 0x227   :  { %vm1281_vm3 = vcmp.gt.f32.partialorder %v1229_v2, 0.0  ;;  %v1313_v3 = vmul.f32 0.2, %v1229_v2  ;;  %v1343_v38 = vsel %vm1279_vm1, %v1225_v60, %v1311_v5  ;;  %vm1472_vm1 = vcmask 7168  }
 0x228   :  { %vm1282_vm4 = vcmp.gt.f32.partialorder %v1231_v50, 0.0  ;;  %v1314_v54 = vmul.f32 0.2, %v1231_v50  ;;  %v1344_v0 = vsel %vm1280_vm2, %v1227_v33, %v1312_v8  ;;  %v1386_v51 = vmul.f32 %v2311_v63, %v1343_v38 }
 0x229   :  { %v1387_v9 = vmul.f32 %v2314_v7, %v1344_v0  ;;  %v1345_v13 = vsel %vm1281_vm3, %v1229_v2, %v1313_v3 }
 0x22a   :  { %v1121_v4 = vpop.f32.mrb[52].mxu1  ;;  %v1346_v14 = vsel %vm1282_vm4, %v1231_v50, %v1314_v54  ;;  %v1388_v41 = vmul.f32 %v2311_v63, %v1345_v13 }
 0x22b   :  { %v1234_v36 = vpop.f32.mrb[52].mxu0  ;;  %v1122_v16 = vadd.f32 %v1121_v4, %v2298_v35  ;;  %v1123_v39 = vpop.f32.mrb[53].mxu1  ;;  %v1426_v18 = vadd.f32 %v1387_v9, %v1386_v51  ;;  %v1389_v19 = vmul.f32 %v2314_v7, %v1346_v14 }
 0x22c   :  { %v1236_v17 = vpop.f32.mrb[53].mxu0  ;;  %v1124_v42 = vadd.f32 %v1123_v39, %v2301_v40  ;;  %v1125_v15 = vpop.f32.mrb[54].mxu1 }
 0x22d   :  { %v1238_v6 = vpop.f32.mrb[54].mxu0  ;;  %v1235_v43 = vadd.f32 %v1234_v36, %v1122_v16  ;;  %v1126_v44 = vadd.f32 %v1125_v15, %v2298_v35  ;;  %v1127_v21 = vpop.f32.mrb[55].mxu1  ;;  %1427 = vadd.xlane.f32.xlu0 %v1426_v18  ;;  %v1429_v58 = vadd.f32 %v1389_v19, %v1388_v41 }
 0x22e   :  { %v1240_v23 = vpop.f32.mrb[55].mxu0  ;;  %v1237_v12 = vadd.f32 %v1236_v17, %v1124_v42  ;;  %v1128_v25 = vadd.f32 %v1127_v21, %v2301_v40 }
 0x22f   :  { %vm1283_vm5 = vcmp.gt.f32.partialorder %v1235_v43, 0.0  ;;  %v1315_v26 = vmul.f32 0.2, %v1235_v43  ;;  %v1239_v59 = vadd.f32 %v1238_v6, %v1126_v44  ;;  %1430 = vadd.xlane.f32.xlu1 %v1429_v58 }
 0x230   :  { %vm1284_vm6 = vcmp.gt.f32.partialorder %v1237_v12, 0.0  ;;  %v1316_v1 = vmul.f32 0.2, %v1237_v12  ;;  %v1241_v27 = vadd.f32 %v1240_v23, %v1128_v25 }
 0x231   :  { %vm1285_vm7 = vcmp.gt.f32.partialorder %v1239_v59, 0.0  ;;  %v1317_v29 = vmul.f32 0.2, %v1239_v59  ;;  %v1347_v30 = vsel %vm1283_vm5, %v1235_v43, %v1315_v26 }
 0x232   :  { %vm1286_vm8 = vcmp.gt.f32.partialorder %v1241_v27, 0.0  ;;  %v1318_v11 = vmul.f32 0.2, %v1241_v27  ;;  %v1348_v31 = vsel %vm1284_vm6, %v1237_v12, %v1316_v1  ;;  %v1390_v10 = vmul.f32 %v2311_v63, %v1347_v30 }
 0x233   :  { %v1131_v28 = vpop.f32.mrb[56].mxu1  ;;  %v1391_v22 = vmul.f32 %v2314_v7, %v1348_v31  ;;  %v1349_v32 = vsel %vm1285_vm7, %v1239_v59, %v1317_v29 }
 0x234   :  { %v1244_v34 = vpop.f32.mrb[56].mxu0  ;;  %v1132_v37 = vadd.f32 %v1131_v28, %v2298_v35  ;;  %v1133_v20 = vpop.f32.mrb[57].mxu1  ;;  %v1350_v47 = vsel %vm1286_vm8, %v1241_v27, %v1318_v11  ;;  %v1392_v48 = vmul.f32 %v2311_v63, %v1349_v32 }
 0x235   :  { %v1246_v45 = vpop.f32.mrb[57].mxu0  ;;  %v1134_v49 = vadd.f32 %v1133_v20, %v2301_v40  ;;  %v1135_v24 = vpop.f32.mrb[58].mxu1  ;;  %v1432_v55 = vadd.f32 %v1391_v22, %v1390_v10  ;;  %v1393_v57 = vmul.f32 %v2314_v7, %v1350_v47  ;;  %v1623_v20 = vld [vmem:[#allocation2] ss:$0 sm:$0xff] }
 0x236   :  { %v1248_v52 = vpop.f32.mrb[58].mxu0  ;;  %v1245_v60 = vadd.f32 %v1244_v34, %v1132_v37  ;;  %v1136_v61 = vadd.f32 %v1135_v24, %v2298_v35  ;;  %v1137_v46 = vpop.f32.mrb[59].mxu1 }
 0x237   :  { %v1250_v56 = vpop.f32.mrb[59].mxu0  ;;  %v1247_v33 = vadd.f32 %v1246_v45, %v1134_v49  ;;  %v1138_v53 = vadd.f32 %v1137_v46, %v2301_v40  ;;  %1433 = vadd.xlane.f32.xlu0 %v1432_v55  ;;  %v1435_v62 = vadd.f32 %v1393_v57, %v1392_v48 }
 0x238   :  { %vm1287_vm9 = vcmp.gt.f32.partialorder %v1245_v60, 0.0  ;;  %v1319_v5 = vmul.f32 0.2, %v1245_v60  ;;  %v1249_v2 = vadd.f32 %v1248_v52, %v1136_v61 }
 0x239   :  { %vm1288_vm10 = vcmp.gt.f32.partialorder %v1247_v33, 0.0  ;;  %v1320_v8 = vmul.f32 0.2, %v1247_v33  ;;  %v1251_v50 = vadd.f32 %v1250_v56, %v1138_v53  ;;  %1436 = vadd.xlane.f32.xlu1 %v1435_v62 }
 0x23a   :  { %vm1289_vm11 = vcmp.gt.f32.partialorder %v1249_v2, 0.0  ;;  %v1321_v3 = vmul.f32 0.2, %v1249_v2  ;;  %v1351_v38 = vsel %vm1287_vm9, %v1245_v60, %v1319_v5 }
 0x23b   :  { %vm1290_vm12 = vcmp.gt.f32.partialorder %v1251_v50, 0.0  ;;  %v1322_v54 = vmul.f32 0.2, %v1251_v50  ;;  %v1141_v0 = vpop.f32.mrb[60].mxu1  ;;  %v1352_v4 = vsel %vm1288_vm10, %v1247_v33, %v1320_v8  ;;  %v1394_v36 = vmul.f32 %v2311_v63, %v1351_v38 }
 0x23c   :  { %v1254_v51 = vpop.f32.mrb[60].mxu0  ;;  %v1142_v9 = vadd.f32 %v1141_v0, %v2298_v35  ;;  %v1143_v13 = vpop.f32.mrb[61].mxu1  ;;  %v1395_v39 = vmul.f32 %v2314_v7, %v1352_v4  ;;  %v1353_v17 = vsel %vm1289_vm11, %v1249_v2, %v1321_v3 }
 0x23d   :  { %v1256_v16 = vpop.f32.mrb[61].mxu0  ;;  %v1144_v14 = vadd.f32 %v1143_v13, %v2301_v40  ;;  %v1145_v41 = vpop.f32.mrb[62].mxu1  ;;  %v1354_v15 = vsel %vm1290_vm12, %v1251_v50, %v1322_v54  ;;  %v1396_v6 = vmul.f32 %v2311_v63, %v1353_v17 }
 0x23e   :  { %v1258_v42 = vpop.f32.mrb[62].mxu0  ;;  %v1255_v18 = vadd.f32 %v1254_v51, %v1142_v9  ;;  %v1146_v19 = vadd.f32 %v1145_v41, %v2298_v35  ;;  %v1147_v43 = vpop.f32.mrb[63].mxu1  ;;  %v1438_v21 = vadd.f32 %v1395_v39, %v1394_v36  ;;  %v1397_v23 = vmul.f32 %v2314_v7, %v1354_v15 }
 0x23f   :  { %v1260_v44 = vpop.f32.mrb[63].mxu0  ;;  %v1257_v12 = vadd.f32 %v1256_v16, %v1144_v14  ;;  %v1148_v25 = vadd.f32 %v1147_v43, %v2301_v40 }
 0x240   :  { %vm1291_vm13 = vcmp.gt.f32.partialorder %v1255_v18, 0.0  ;;  %v1323_v58 = vmul.f32 0.2, %v1255_v18  ;;  %v1259_v26 = vadd.f32 %v1258_v42, %v1146_v19  ;;  %1439 = vadd.xlane.f32.xlu0 %v1438_v21  ;;  %v1441_v59 = vadd.f32 %v1397_v23, %v1396_v6 }
 0x241   :  { %vm1292_vm14 = vcmp.gt.f32.partialorder %v1257_v12, 0.0  ;;  %v1324_v1 = vmul.f32 0.2, %v1257_v12  ;;  %v1261_v27 = vadd.f32 %v1260_v44, %v1148_v25 }
 0x242   :  { %vm1293_vm15 = vcmp.gt.f32.partialorder %v1259_v26, 0.0  ;;  %v1325_v29 = vmul.f32 0.2, %v1259_v26  ;;  %1442 = vadd.xlane.f32.xlu1 %v1441_v59  ;;  %v1355_v35 = vsel %vm1291_vm13, %v1255_v18, %v1323_v58 }
 0x243   :  { %vm1294_vm0 = vcmp.gt.f32.partialorder %v1261_v27, 0.0  ;;  %v1326_v30 = vmul.f32 0.2, %v1261_v27  ;;  %v1356_v11 = vsel %vm1292_vm14, %v1257_v12, %v1324_v1  ;;  %v1398_v31 = vmul.f32 %v2311_v63, %v1355_v35 }
 0x244   :  { %v1399_v10 = vmul.f32 %v2314_v7, %v1356_v11  ;;  %v1357_v40 = vsel %vm1293_vm15, %v1259_v26, %v1325_v29 }
 0x245   :  { %v1358_v28 = vsel %vm1294_vm0, %v1261_v27, %v1326_v30  ;;  %v1400_v34 = vmul.f32 %v2311_v63, %v1357_v40 }
 0x246   :  { %v1444_v22 = vadd.f32 %v1399_v10, %v1398_v31  ;;  %v1401_v32 = vmul.f32 %v2314_v7, %v1358_v28 }
 0x248   :  { %1445 = vadd.xlane.f32.xlu0 %v1444_v22  ;;  %v1447_v37 = vadd.f32 %v1401_v32, %v1400_v34 }
 0x24a   :  { %1448 = vadd.xlane.f32.xlu1 %v1447_v37 }
 0x295   :  { %v1404_v45 = vpop.xlane.xlu0 %1403 }
 0x296   :  { %v1456_v47 = vadd.f32 %v1623_v20, %v1404_v45 }
 0x298   :  { %1473 = vst.msk [vmem:[#allocation8] sm:$0xff] %vm1472_vm1, %v1456_v47 }
 0x299   :  { %v1407_v48 = vpop.xlane.xlu0 %1406 }
 0x29a   :  { %v1457_v49 = vadd.f32 %v1623_v20, %v1407_v48 }
 0x29c   :  { %1474 = vst.msk [vmem:[#allocation8 + $0x8] sm:$0xff] %vm1472_vm1, %v1457_v49 }
 0x29d   :  { %v1410_v24 = vpop.xlane.xlu1 %1409 }
 0x29f   :  { %v1520_v52 = vld [vmem:[#allocation8] sm:$0xff] }
 0x2a0   :  { %1521 = vst [vmem:[%s2389_s7] sm:$0xff] %v1520_v52 }
 0x2a1   :  { %v1413_v63 = vpop.xlane.xlu1 %1412 }
 0x2a3   :  { %v1522_v55 = vld [vmem:[#allocation8 + $0x8] sm:$0xff] }
 0x2a4   :  { %1523 = vst [vmem:[%s2389_s7 + $0x8] sm:$0xff] %v1522_v55 }
 0x2a6   :  { %v1416_v7 = vpop.xlane.xlu0 %1415 }
 0x2a8   :  { %v1419_v57 = vpop.xlane.xlu1 %1418 }
 0x2b0   :  { %v1422_v60 = vpop.xlane.xlu0 %1421 }
 0x2b2   :  { %v1425_v61 = vpop.xlane.xlu1 %1424 }
 0x2ba   :  { %v1428_v46 = vpop.xlane.xlu0 %1427 }
 0x2bc   :  { %v1431_v56 = vpop.xlane.xlu1 %1430 }
 0x2c4   :  { %v1434_v33 = vpop.xlane.xlu0 %1433 }
 0x2c6   :  { %v1437_v53 = vpop.xlane.xlu1 %1436 }
 0x2cd   :  { %v1440_v62 = vpop.xlane.xlu0 %1439 }
 0x2cf   :  { %v1443_v5 = vpop.xlane.xlu1 %1442 }
 0x2d5   :  { %v1446_v2 = vpop.xlane.xlu0 %1445 }
 0x2d7   :  { %v1449_v8 = vpop.xlane.xlu1 %1448 }
 0x2d8   :  { %1529 = vsyncpa [#allocation4], 1 }
 0x2d9   :  { %1530 = vsyncpa [#allocation6], 1 }

// kernel: tpu_custom_call.1
= control target key start
LH: loop header
LB: loop body
LE: loop exit
PB: predicated region body
PF: predicated region fallthrough
CT: control target
= control target key end

     0   :  { %s2382_s0 = inlined_call_operand.hbm [shape: f32[16,32], index: 0, kind: input, shape index: {}]   ;;  %s2383_s1 = inlined_call_operand.hbm [shape: bf16[32,512], index: 1, kind: input, shape index: {}]   ;;  %s2384_s2 = inlined_call_operand.vmem [shape: f32[1,512], index: 2, kind: input, shape index: {}]   ;;  %s2385_s3 = inlined_call_operand.hbm [shape: bf16[512,256], index: 3, kind: input, shape index: {}]   ;;  %s2386_s4 = inlined_call_operand.vmem [shape: f32[1,256], index: 4, kind: input, shape index: {}]   ;;  %s2387_s5 = inlined_call_operand.vmem [shape: f32[1,256], index: 5, kind: input, shape index: {}]   ;;  %s2388_s6 = inlined_call_operand.<no memory space> [shape: f32[1,1], index: 6, kind: input, shape index: {}]   ;;  %s2389_s7 = inlined_call_operand.vmem [shape: f32[16,1], index: 7, kind: output, shape index: {}]  }
   0x1   :  { %v12_v0 = vstv %s2388_s6 }
   0x2   :  { %13 = vst [vmem:[#allocation2] sm:$0x1] %v12_v0 }
   0x3   :  { %14 = vsyncpa [#allocation4], 0 }
   0x4   :  { %15 = vsyncpa [#allocation6], 0 }
   0x5   :  { %20 = vsyncadd [#allocation4], 1792  ;;  %s1874_s26 = smov [#allocation5]   ;;  %s1804_s30 = scalar_lea.hbm %s2383_s1, 1024 }
   0x6   :  { %s33_s27 = sshll.u32 %s1874_s26, 4  ;;  %p1805_p0 = scmp.ne.s32.totalorder %s2383_s1, %s1804_s30  ;;  %s34_s27 = int_to_ptr.vmem [resolvable:$true] %s33_s27 }
   0x7   :  { %p1808_p1 = scmp.lt.u32.totalorder %s1804_s30, %s2383_s1 }
   0x9   :  { %p1810_p2 = pnand %p1808_p1, %p1805_p0 }
   0xb   :  { %1813 = shalt.err (!%p1810_p2)
}
   0xc   :  { %s1814_s6 = scalar_lea.vmem %s34_s27, 1024  ;;  %p1819_p4 = scmp.lt.s32.totalorder %s34_s27, %s34_s27 }
   0xd   :  { %p1815_p3 = scmp.ne.s32.totalorder %s34_s27, %s1814_s6  ;;  %p1820_p5 = scmp.lt.s32.totalorder %s1814_s6, %s1814_s6 }
   0xf   :  { %p1821_p6 = por %p1820_p5, %p1819_p4 }
  0x11   :  { %p1822_p7 = pnand %p1821_p6, %p1815_p3 }
  0x13   :  { %1825 = shalt.err (!%p1822_p7)
}
  0x14   :  { %s1875_s12 = smov 256   ;;  %s1876_s13 = smov 16  }
  0x15   :  { %39 = dma.hbm_to_vmem [thread:$0]  %s2383_s1, 1024, %s34_s27, [#allocation6], %s1875_s12, %s1875_s12, %s1876_s13  }
  0x16   :  { %s1877_s16 = smov [#allocation3]   ;;  %s1826_s20 = scalar_lea.hbm %s2382_s0, 256 }
  0x17   :  { %s21_s17 = sshll.u32 %s1877_s16, 4  ;;  %p1827_p8 = scmp.ne.s32.totalorder %s2382_s0, %s1826_s20  ;;  %s22_s17 = int_to_ptr.vmem [resolvable:$true] %s21_s17 }
  0x18   :  { %p1830_p9 = scmp.lt.u32.totalorder %s1826_s20, %s2382_s0 }
  0x1a   :  { %p1832_p10 = pnand %p1830_p9, %p1827_p8 }
  0x1c   :  { %1835 = shalt.err (!%p1832_p10)
}
  0x1d   :  { %s1836_s25 = scalar_lea.vmem %s22_s17, 256  ;;  %s1840_s1 = scalar_lea.vmem %s22_s17, 2048 }
  0x1e   :  { %p1837_p11 = scmp.ne.s32.totalorder %s22_s17, %s1836_s25  ;;  %p1841_p12 = scmp.lt.s32.totalorder %s22_s17, %s22_s17 }
  0x1f   :  { %p1842_p13 = scmp.lt.s32.totalorder %s1840_s1, %s1836_s25 }
  0x21   :  { %p1843_p0 = por %p1842_p13, %p1841_p12 }
  0x23   :  { %p1844_p1 = pnand %p1843_p0, %p1837_p11 }
  0x25   :  { %1847 = shalt.err (!%p1844_p1)
}
  0x26   :  { %s1878_s26 = smov 128   ;;  %s1879_s27 = smov 8  }
  0x27   :  { %27 = dma.hbm_to_vmem [thread:$0]  %s2382_s0, 256, %s22_s17, [#allocation4], %s1878_s26, %s1878_s26, %s1879_s27  }
  0x28   :  { %s1880_s30 = smov [#allocation7]   ;;  %s1848_s11 = scalar_lea.hbm %s2385_s3, 8192 }
  0x29   :  { %s47_s8 = sshll.u32 %s1880_s30, 4  ;;  %p1849_p2 = scmp.ne.s32.totalorder %s2385_s3, %s1848_s11  ;;  %s48_s8 = int_to_ptr.vmem [resolvable:$true] %s47_s8 }
  0x2a   :  { %p1852_p3 = scmp.lt.u32.totalorder %s1848_s11, %s2385_s3 }
  0x2c   :  { %p1854_p4 = pnand %p1852_p3, %p1849_p2 }
  0x2e   :  { %1857 = shalt.err (!%p1854_p4)
}
  0x2f   :  { %s1858_s15 = scalar_lea.vmem %s48_s8, 8192  ;;  %p1863_p6 = scmp.lt.s32.totalorder %s48_s8, %s48_s8 }
  0x30   :  { %p1859_p5 = scmp.ne.s32.totalorder %s48_s8, %s1858_s15  ;;  %p1864_p7 = scmp.lt.s32.totalorder %s1858_s15, %s1858_s15 }
  0x32   :  { %p1865_p8 = por %p1864_p7, %p1863_p6 }
  0x34   :  { %p1866_p9 = pnand %p1865_p8, %p1859_p5 }
  0x36   :  { %1869 = shalt.err (!%p1866_p9)
}
  0x37   :  { %53 = dma.hbm_to_vmem [thread:$0]  %s2385_s3, 8192, %s48_s8, [#allocation6], %s1878_s26, %s1878_s26, %s1879_s27  }
  0x38   :  { %1870 = dma.done.wait [#allocation4], 2048  }
  0x39   :  { %1871 = vsyncadd [#allocation4], 4294965248 }
  0x3a   :  { %1872 = dma.done.wait [#allocation6], 9216  }
  0x3b   :  { %1873 = vsyncadd [#allocation6], 4294958080  ;;  %v1881_v1 = vmov 0   ;;  %v1696_v2 = vld [vmem:[#allocation5 + $0x4] ss:$16 sps:$4 sm:$0xff]   ;;  %v147_v11 = vld [vmem:[#allocation3 + $0x8] sm:$0xff] }
  0x3c   :  { %288 = vmatprep.mubr.bf16.mxu0 %v1881_v1  ;;  %401 = vmatprep.mubr.bf16.mxu1 %v1881_v1  ;;  %v1698_v3 = vld [vmem:[#allocation5 + $0xc] ss:$16 sps:$4 sm:$0xff]   ;;  %v1700_v4 = vld [vmem:[#allocation5] ss:$16 sps:$4 sm:$0xff]   ;;  %v1701_v5 = vld [vmem:[#allocation5 + $0x8] ss:$16 sps:$4 sm:$0xff]  }
  0x3d   :  { %256 = vmatprep.subr.bf16.mxu0 %v1696_v2  ;;  %369 = vmatprep.subr.bf16.mxu1 %v1698_v3  ;;  %v1702_v6 = vld [vmem:[#allocation5 + $0x24] ss:$16 sps:$4 sm:$0xff]   ;;  %v1704_v7 = vld [vmem:[#allocation5 + $0x2c] ss:$16 sps:$4 sm:$0xff]   ;;  %v1706_v8 = vld [vmem:[#allocation5 + $0x20] ss:$16 sps:$4 sm:$0xff]  }
  0x3e   :  { %257 = vmatpush1.bf16.msra.mxu0 %v1700_v4  ;;  %370 = vmatpush1.bf16.msra.mxu1 %v1701_v5  ;;  %v1707_v9 = vld [vmem:[#allocation5 + $0x28] ss:$16 sps:$4 sm:$0xff]   ;;  %v146_v10 = vld [vmem:[#allocation3] sm:$0xff]  ;;  %vm231_vm0 = vcmask 261120   ;;  %v148_v13 = vld [vmem:[#allocation3 + $0x10] sm:$0xff] }
  0x3f   :  { %258 = vmatprep.subr.bf16.mxu0 %v1702_v6  ;;  %371 = vmatprep.subr.bf16.mxu1 %v1704_v7  ;;  %v162_v12 = vpack.c.bf16 %v147_v11, %v146_v10  ;;  %v149_v14 = vld [vmem:[#allocation3 + $0x18] sm:$0xff]  ;;  %v1708_v15 = vld [vmem:[#allocation7] ss:$8 sps:$4 sm:$0xff]   ;;  %v1710_v16 = vld [vmem:[#allocation7 + $0x4] ss:$8 sps:$4 sm:$0xff]  }
  0x40   :  { %v1711_v17 = vld [vmem:[#allocation7 + $0x100] ss:$8 sps:$4 sm:$0xff]   ;;  %v1713_v18 = vld [vmem:[#allocation7 + $0x104] ss:$8 sps:$4 sm:$0xff]   ;;  %v1714_v19 = vld [vmem:[#allocation7 + $0x10] ss:$8 sps:$4 sm:$0xff]   ;;  %v163_v21 = vpack.c.bf16 %v149_v14, %v148_v13 }
  0x41   :  { %v1716_v20 = vld [vmem:[#allocation7 + $0x14] ss:$8 sps:$4 sm:$0xff]   ;;  %v1717_v23 = vld [vmem:[#allocation7 + $0x110] ss:$8 sps:$4 sm:$0xff]   ;;  %v1722_v24 = vld [vmem:[#allocation7 + $0x24] ss:$8 sps:$4 sm:$0xff]  }
  0x42   :  { %259 = vmatpush1.bf16.msra.mxu0 %v1706_v8  ;;  %372 = vmatpush1.bf16.msra.mxu1 %v1707_v9  ;;  %v1719_v22 = vld [vmem:[#allocation7 + $0x114] ss:$8 sps:$4 sm:$0xff]   ;;  %v1720_v25 = vld [vmem:[#allocation7 + $0x20] ss:$8 sps:$4 sm:$0xff]   ;;  %v1725_v26 = vld [vmem:[#allocation7 + $0x124] ss:$8 sps:$4 sm:$0xff]  }
  0x43   :  { %1037 = vmatprep.subr.bf16.mxu1 %v1710_v16  ;;  %1150 = vmatprep.subr.bf16.mxu0 %v1713_v18  ;;  %v150_v27 = vld [vmem:[#allocation3 + $0x20] sm:$0xff]  ;;  %v1728_v28 = vld [vmem:[#allocation7 + $0x34] ss:$8 sps:$4 sm:$0xff]   ;;  %v151_v29 = vld [vmem:[#allocation3 + $0x28] sm:$0xff] }
  0x44   :  { %v1723_v30 = vld [vmem:[#allocation7 + $0x120] ss:$8 sps:$4 sm:$0xff]   ;;  %v1726_v31 = vld [vmem:[#allocation7 + $0x30] ss:$8 sps:$4 sm:$0xff]   ;;  %v1731_v32 = vld [vmem:[#allocation7 + $0x134] ss:$8 sps:$4 sm:$0xff]   ;;  %v164_v33 = vpack.c.bf16 %v151_v29, %v150_v27 }
  0x45   :  { %1543 = vmatmul.mubr.msk.bf16.vlgmr.msra.gmra.mrb[0].mxu0 %vm231_vm0, %v162_v12  ;;  %1551 = vmatmul.mubr.msk.bf16.vlgmr.msra.gmra.mrb[0].mxu1 %vm231_vm0, %v162_v12  ;;  %v1729_v34 = vld [vmem:[#allocation7 + $0x130] ss:$8 sps:$4 sm:$0xff]   ;;  %v1734_v35 = vld [vmem:[#allocation7 + $0x44] ss:$8 sps:$4 sm:$0xff]   ;;  %v1732_v36 = vld [vmem:[#allocation7 + $0x40] ss:$8 sps:$4 sm:$0xff]  }
  0x46   :  { %298 = vmatprep.mubr.bf16.mxu0 %v1881_v1  ;;  %411 = vmatprep.mubr.bf16.mxu1 %v1881_v1  ;;  %v1737_v37 = vld [vmem:[#allocation7 + $0x144] ss:$8 sps:$4 sm:$0xff]   ;;  %v152_v38 = vld [vmem:[#allocation3 + $0x30] sm:$0xff]  ;;  %v153_v40 = vld [vmem:[#allocation3 + $0x38] sm:$0xff] }
  0x47   :  { %1038 = vmatpush1.bf16.msra.mxu1 %v1708_v15  ;;  %1151 = vmatpush1.bf16.msra.mxu0 %v1711_v17  ;;  %v1740_v39 = vld [vmem:[#allocation7 + $0x54] ss:$8 sps:$4 sm:$0xff]   ;;  %v1735_v41 = vld [vmem:[#allocation7 + $0x140] ss:$8 sps:$4 sm:$0xff]   ;;  %v1738_v42 = vld [vmem:[#allocation7 + $0x50] ss:$8 sps:$4 sm:$0xff]   ;;  %v165_v44 = vpack.c.bf16 %v153_v40, %v152_v38 }
  0x48   :  { %1039 = vmatprep.subr.bf16.mxu1 %v1716_v20  ;;  %1152 = vmatprep.subr.bf16.mxu0 %v1719_v22  ;;  %v1743_v43 = vld [vmem:[#allocation7 + $0x154] ss:$8 sps:$4 sm:$0xff]   ;;  %v1741_v45 = vld [vmem:[#allocation7 + $0x150] ss:$8 sps:$4 sm:$0xff]   ;;  %v1746_v46 = vld [vmem:[#allocation7 + $0x64] ss:$8 sps:$4 sm:$0xff]  }
  0x49   :  { %v1744_v47 = vld [vmem:[#allocation7 + $0x60] ss:$8 sps:$4 sm:$0xff]   ;;  %v1749_v48 = vld [vmem:[#allocation7 + $0x164] ss:$8 sps:$4 sm:$0xff]   ;;  %v1752_v50 = vld [vmem:[#allocation7 + $0x74] ss:$8 sps:$4 sm:$0xff]  }
  0x4a   :  { %v154_v49 = vld [vmem:[#allocation3 + $0x40] sm:$0xff]  ;;  %v155_v51 = vld [vmem:[#allocation3 + $0x48] sm:$0xff]  ;;  %v1750_v53 = vld [vmem:[#allocation7 + $0x70] ss:$8 sps:$4 sm:$0xff]  }
  0x4b   :  { %1040 = vmatpush1.bf16.msra.mxu1 %v1714_v19  ;;  %1153 = vmatpush1.bf16.msra.mxu0 %v1717_v23  ;;  %v1747_v52 = vld [vmem:[#allocation7 + $0x160] ss:$8 sps:$4 sm:$0xff]   ;;  %v1755_v54 = vld [vmem:[#allocation7 + $0x174] ss:$8 sps:$4 sm:$0xff]   ;;  %v166_v55 = vpack.c.bf16 %v155_v51, %v154_v49  ;;  %v1753_v56 = vld [vmem:[#allocation7 + $0x170] ss:$8 sps:$4 sm:$0xff]  }
  0x4c   :  { %1041 = vmatprep.subr.bf16.mxu1 %v1722_v24  ;;  %1154 = vmatprep.subr.bf16.mxu0 %v1725_v26  ;;  %v1758_v57 = vld [vmem:[#allocation7 + $0x84] ss:$8 sps:$4 sm:$0xff]   ;;  %v1756_v58 = vld [vmem:[#allocation7 + $0x80] ss:$8 sps:$4 sm:$0xff]   ;;  %v156_v60 = vld [vmem:[#allocation3 + $0x50] sm:$0xff] }
  0x4d   :  { %1544 = vmatmul.mubr.msk.bf16.gmra.mrb[4].mxu0 %vm231_vm0, %v163_v21  ;;  %1552 = vmatmul.mubr.msk.bf16.gmra.mrb[4].mxu1 %vm231_vm0, %v163_v21  ;;  %v1761_v59 = vld [vmem:[#allocation7 + $0x184] ss:$8 sps:$4 sm:$0xff]   ;;  %v1764_v61 = vld [vmem:[#allocation7 + $0x94] ss:$8 sps:$4 sm:$0xff]   ;;  %v1759_v63 = vld [vmem:[#allocation7 + $0x180] ss:$8 sps:$4 sm:$0xff]  }
  0x4e   :  { %308 = vmatprep.mubr.bf16.mxu0 %v1881_v1  ;;  %421 = vmatprep.mubr.bf16.mxu1 %v1881_v1  ;;  %v157_v62 = vld [vmem:[#allocation3 + $0x58] sm:$0xff]  ;;  %v1770_v5 = vld [vmem:[#allocation7 + $0xa4] ss:$8 sps:$4 sm:$0xff]   ;;  %v1768_v6 = vld [vmem:[#allocation7 + $0xa0] ss:$8 sps:$4 sm:$0xff]  }
  0x4f   :  { %1042 = vmatpush1.bf16.msra.mxu1 %v1720_v25  ;;  %1155 = vmatpush1.bf16.msra.mxu0 %v1723_v30  ;;  %v1762_v0 = vld [vmem:[#allocation7 + $0x90] ss:$8 sps:$4 sm:$0xff]   ;;  %v1767_v2 = vld [vmem:[#allocation7 + $0x194] ss:$8 sps:$4 sm:$0xff]   ;;  %v167_v3 = vpack.c.bf16 %v157_v62, %v156_v60  ;;  %v1773_v7 = vld [vmem:[#allocation7 + $0x1a4] ss:$8 sps:$4 sm:$0xff]  }
  0x50   :  { %1043 = vmatprep.subr.bf16.mxu1 %v1728_v28  ;;  %1156 = vmatprep.subr.bf16.mxu0 %v1731_v32  ;;  %v1765_v4 = vld [vmem:[#allocation7 + $0x190] ss:$8 sps:$4 sm:$0xff]   ;;  %v1776_v8 = vld [vmem:[#allocation7 + $0xb4] ss:$8 sps:$4 sm:$0xff]   ;;  %v158_v9 = vld [vmem:[#allocation3 + $0x60] sm:$0xff] }
  0x51   :  { %v159_v10 = vld [vmem:[#allocation3 + $0x68] sm:$0xff]  ;;  %v1774_v12 = vld [vmem:[#allocation7 + $0xb0] ss:$8 sps:$4 sm:$0xff]   ;;  %v1779_v13 = vld [vmem:[#allocation7 + $0x1b4] ss:$8 sps:$4 sm:$0xff]  }
  0x52   :  { %v1771_v11 = vld [vmem:[#allocation7 + $0x1a0] ss:$8 sps:$4 sm:$0xff]   ;;  %v168_v14 = vpack.c.bf16 %v159_v10, %v158_v9  ;;  %v1777_v15 = vld [vmem:[#allocation7 + $0x1b0] ss:$8 sps:$4 sm:$0xff]   ;;  %v1782_v16 = vld [vmem:[#allocation7 + $0xc4] ss:$8 sps:$4 sm:$0xff]  }
  0x53   :  { %1044 = vmatpush1.bf16.msra.mxu1 %v1726_v31  ;;  %1157 = vmatpush1.bf16.msra.mxu0 %v1729_v34  ;;  %v1780_v17 = vld [vmem:[#allocation7 + $0xc0] ss:$8 sps:$4 sm:$0xff]   ;;  %v1785_v18 = vld [vmem:[#allocation7 + $0x1c4] ss:$8 sps:$4 sm:$0xff]   ;;  %v1788_v19 = vld [vmem:[#allocation7 + $0xd4] ss:$8 sps:$4 sm:$0xff]   ;;  %v171_v34 = vlaneseq }
  0x54   :  { %1045 = vmatprep.subr.bf16.mxu1 %v1734_v35  ;;  %1158 = vmatprep.subr.bf16.mxu0 %v1737_v37  ;;  %v160_v20 = vld [vmem:[#allocation3 + $0x70] sm:$0xff]  ;;  %v161_v21 = vld [vmem:[#allocation3 + $0x78] sm:$0xff]  ;;  %v1783_v22 = vld [vmem:[#allocation7 + $0x1c0] ss:$8 sps:$4 sm:$0xff]  }
  0x55   :  { %1545 = vmatmul.mubr.msk.bf16.gmra.mrb[8].mxu0 %vm231_vm0, %v164_v33  ;;  %1553 = vmatmul.mubr.msk.bf16.gmra.mrb[8].mxu1 %vm231_vm0, %v164_v33  ;;  %v1786_v23 = vld [vmem:[#allocation7 + $0xd0] ss:$8 sps:$4 sm:$0xff]   ;;  %v169_v24 = vpack.c.bf16 %v161_v21, %v160_v20  ;;  %v1791_v25 = vld [vmem:[#allocation7 + $0x1d4] ss:$8 sps:$4 sm:$0xff]   ;;  %v1797_v27 = vld [vmem:[#allocation7 + $0x1e4] ss:$8 sps:$4 sm:$0xff]  }
  0x56   :  { %318 = vmatprep.mubr.bf16.mxu0 %v1881_v1  ;;  %431 = vmatprep.mubr.bf16.mxu1 %v1881_v1  ;;  %v1789_v26 = vld [vmem:[#allocation7 + $0x1d0] ss:$8 sps:$4 sm:$0xff]   ;;  %v1792_v28 = vld [vmem:[#allocation7 + $0xe0] ss:$8 sps:$4 sm:$0xff]   ;;  %v1800_v30 = vld [vmem:[#allocation7 + $0xf4] ss:$8 sps:$4 sm:$0xff]  }
  0x57   :  { %1046 = vmatpush1.bf16.msra.mxu1 %v1732_v36  ;;  %1159 = vmatpush1.bf16.msra.mxu0 %v1735_v41  ;;  %v1795_v29 = vld [vmem:[#allocation7 + $0x1e0] ss:$8 sps:$4 sm:$0xff]   ;;  %v1803_v31 = vld [vmem:[#allocation7 + $0x1f4] ss:$8 sps:$4 sm:$0xff]   ;;  %v1798_v32 = vld [vmem:[#allocation7 + $0xf0] ss:$8 sps:$4 sm:$0xff]  }
  0x58   :  { %1047 = vmatprep.subr.bf16.mxu1 %v1740_v39  ;;  %1160 = vmatprep.subr.bf16.mxu0 %v1743_v43  ;;  %v1801_v33 = vld [vmem:[#allocation7 + $0x1f0] ss:$8 sps:$4 sm:$0xff]   ;;  %v172_v35 = vshrl.u32 %v171_v34, 7  ;;  %v142_v38 = vld [vmem:[%s2384_s2] sm:$0xf] }
  0x5a   :  { %v1993_v36 = vsub.s32 0, %v172_v35  ;;  %v181_v37 = vsub.s32 2, %v172_v35  ;;  %v1998_v39 = vsub.s32 1, %v172_v35  ;;  %v185_v40 = vsub.s32 3, %v172_v35 }
  0x5b   :  { %1048 = vmatpush1.bf16.msra.mxu1 %v1738_v42  ;;  %1161 = vmatpush1.bf16.msra.mxu0 %v1741_v45 }
  0x5c   :  { %1049 = vmatprep.subr.bf16.mxu1 %v1746_v46  ;;  %1162 = vmatprep.subr.bf16.mxu0 %v1749_v48  ;;  %v2001_v41 = vrot.slane %v142_v38, %v1993_v36  ;;  %v2003_v42 = vrot.slane %v142_v38, %v181_v37  ;;  %v2006_v43 = vrot.slane %v142_v38, %v1998_v39 }
  0x5d   :  { %1546 = vmatmul.mubr.msk.bf16.gmra.mrb[12].mxu0 %vm231_vm0, %v165_v44  ;;  %1554 = vmatmul.mubr.msk.bf16.gmra.mrb[12].mxu1 %vm231_vm0, %v165_v44  ;;  %v2008_v44 = vrot.slane %v142_v38, %v185_v40 }
  0x5e   :  { %328 = vmatprep.mubr.bf16.mxu0 %v1881_v1  ;;  %441 = vmatprep.mubr.bf16.mxu1 %v1881_v1 }
  0x5f   :  { %1050 = vmatpush1.bf16.msra.mxu1 %v1744_v47  ;;  %1163 = vmatpush1.bf16.msra.mxu0 %v1747_v52 }
  0x60   :  { %1051 = vmatprep.subr.bf16.mxu1 %v1752_v50  ;;  %1164 = vmatprep.subr.bf16.mxu0 %v1755_v54 }
  0x63   :  { %1052 = vmatpush1.bf16.msra.mxu1 %v1750_v53  ;;  %1165 = vmatpush1.bf16.msra.mxu0 %v1753_v56 }
  0x64   :  { %1053 = vmatprep.subr.bf16.mxu1 %v1758_v57  ;;  %1166 = vmatprep.subr.bf16.mxu0 %v1761_v59 }
  0x65   :  { %1547 = vmatmul.mubr.msk.bf16.gmra.mrb[16].mxu0 %vm231_vm0, %v166_v55  ;;  %1555 = vmatmul.mubr.msk.bf16.gmra.mrb[16].mxu1 %vm231_vm0, %v166_v55 }
  0x66   :  { %338 = vmatprep.mubr.bf16.mxu0 %v1881_v1  ;;  %451 = vmatprep.mubr.bf16.mxu1 %v1881_v1 }
  0x67   :  { %1054 = vmatpush1.bf16.msra.mxu1 %v1756_v58  ;;  %1167 = vmatpush1.bf16.msra.mxu0 %v1759_v63 }
  0x68   :  { %1055 = vmatprep.subr.bf16.mxu1 %v1764_v61  ;;  %1168 = vmatprep.subr.bf16.mxu0 %v1767_v2 }
  0x6b   :  { %1056 = vmatpush1.bf16.msra.mxu1 %v1762_v0  ;;  %1169 = vmatpush1.bf16.msra.mxu0 %v1765_v4 }
  0x6c   :  { %1057 = vmatprep.subr.bf16.mxu1 %v1770_v5  ;;  %1170 = vmatprep.subr.bf16.mxu0 %v1773_v7 }
  0x6d   :  { %1548 = vmatmul.mubr.msk.bf16.gmra.mrb[20].mxu0 %vm231_vm0, %v167_v3  ;;  %1556 = vmatmul.mubr.msk.bf16.gmra.mrb[20].mxu1 %vm231_vm0, %v167_v3 }
  0x6e   :  { %348 = vmatprep.mubr.bf16.mxu0 %v1881_v1  ;;  %461 = vmatprep.mubr.bf16.mxu1 %v1881_v1 }
  0x6f   :  { %1058 = vmatpush1.bf16.msra.mxu1 %v1768_v6  ;;  %1171 = vmatpush1.bf16.msra.mxu0 %v1771_v11 }
  0x70   :  { %1059 = vmatprep.subr.bf16.mxu1 %v1776_v8  ;;  %1172 = vmatprep.subr.bf16.mxu0 %v1779_v13 }
  0x73   :  { %1060 = vmatpush1.bf16.msra.mxu1 %v1774_v12  ;;  %1173 = vmatpush1.bf16.msra.mxu0 %v1777_v15 }
  0x74   :  { %1061 = vmatprep.subr.bf16.mxu1 %v1782_v16  ;;  %1174 = vmatprep.subr.bf16.mxu0 %v1785_v18 }
  0x75   :  { %1549 = vmatmul.mubr.msk.bf16.gmra.mrb[24].mxu0 %vm231_vm0, %v168_v14  ;;  %1557 = vmatmul.mubr.msk.bf16.gmra.mrb[24].mxu1 %vm231_vm0, %v168_v14 }
  0x76   :  { %358 = vmatprep.mubr.bf16.mxu0 %v1881_v1  ;;  %471 = vmatprep.mubr.bf16.mxu1 %v1881_v1  ;;  %v1794_v1 = vld [vmem:[#allocation7 + $0xe4] ss:$8 sps:$4 sm:$0xff]  }
  0x77   :  { %1062 = vmatpush1.bf16.msra.mxu1 %v1780_v17  ;;  %1175 = vmatpush1.bf16.msra.mxu0 %v1783_v22 }
  0x78   :  { %1063 = vmatprep.subr.bf16.mxu1 %v1788_v19  ;;  %1176 = vmatprep.subr.bf16.mxu0 %v1791_v25 }
  0x7b   :  { %1064 = vmatpush1.bf16.msra.mxu1 %v1786_v23  ;;  %1177 = vmatpush1.bf16.msra.mxu0 %v1789_v26 }
  0x7c   :  { %1065 = vmatprep.subr.bf16.mxu1 %v1794_v1  ;;  %1178 = vmatprep.subr.bf16.mxu0 %v1797_v27 }
  0x7d   :  { %1550 = vmatmul.mubr.msk.bf16.gmra.mrb[28].mxu0 %vm231_vm0, %v169_v24  ;;  %1558 = vmatmul.mubr.msk.bf16.gmra.mrb[28].mxu1 %vm231_vm0, %v169_v24 }
  0x7f   :  { %1066 = vmatpush1.bf16.msra.mxu1 %v1792_v28  ;;  %1179 = vmatpush1.bf16.msra.mxu0 %v1795_v29 }
  0x80   :  { %1067 = vmatprep.subr.bf16.mxu1 %v1800_v30  ;;  %1180 = vmatprep.subr.bf16.mxu0 %v1803_v31 }
  0x83   :  { %1068 = vmatpush1.bf16.msra.mxu1 %v1798_v32  ;;  %1181 = vmatpush1.bf16.msra.mxu0 %v1801_v33 }
 0x118   :  { %v290_v45 = vpop.f32.mrb[0].mxu0  ;;  %v403_v46 = vpop.f32.mrb[0].mxu1 }
 0x119   :  { %v291_v47 = vadd.f32 %v290_v45, %v2001_v41  ;;  %v404_v48 = vadd.f32 %v403_v46, %v2003_v42  ;;  %v292_v49 = vpop.f32.mrb[1].mxu0  ;;  %v405_v50 = vpop.f32.mrb[1].mxu1 }
 0x11a   :  { %v293_v51 = vadd.f32 %v292_v49, %v2006_v43  ;;  %v406_v52 = vadd.f32 %v405_v50, %v2008_v44  ;;  %v294_v53 = vpop.f32.mrb[2].mxu0  ;;  %v407_v54 = vpop.f32.mrb[2].mxu1 }
 0x11b   :  { %vm482_vm1 = vcmp.gt.f32.partialorder %v291_v47, 0.0  ;;  %v546_v55 = vmul.f32 0.2, %v291_v47  ;;  %vm484_vm2 = vcmp.gt.f32.partialorder %v404_v48, 0.0  ;;  %v548_v56 = vmul.f32 0.2, %v404_v48 }
 0x11c   :  { %vm483_vm3 = vcmp.gt.f32.partialorder %v293_v51, 0.0  ;;  %v547_v57 = vmul.f32 0.2, %v293_v51  ;;  %v295_v58 = vadd.f32 %v294_v53, %v2001_v41  ;;  %v408_v59 = vadd.f32 %v407_v54, %v2003_v42  ;;  %v296_v60 = vpop.f32.mrb[3].mxu0  ;;  %v409_v61 = vpop.f32.mrb[3].mxu1 }
 0x11d   :  { %vm485_vm4 = vcmp.gt.f32.partialorder %v406_v52, 0.0  ;;  %v549_v62 = vmul.f32 0.2, %v406_v52  ;;  %v297_v63 = vadd.f32 %v296_v60, %v2006_v43  ;;  %v410_v0 = vadd.f32 %v409_v61, %v2008_v44 }
 0x11e   :  { %vm486_vm5 = vcmp.gt.f32.partialorder %v295_v58, 0.0  ;;  %v550_v2 = vmul.f32 0.2, %v295_v58  ;;  %vm488_vm6 = vcmp.gt.f32.partialorder %v408_v59, 0.0  ;;  %v552_v3 = vmul.f32 0.2, %v408_v59 }
 0x11f   :  { %vm487_vm7 = vcmp.gt.f32.partialorder %v297_v63, 0.0  ;;  %v551_v4 = vmul.f32 0.2, %v297_v63  ;;  %vm489_vm8 = vcmp.gt.f32.partialorder %v410_v0, 0.0  ;;  %v553_v5 = vmul.f32 0.2, %v410_v0 }
 0x120   :  { %v610_v6 = vsel %vm482_vm1, %v291_v47, %v546_v55  ;;  %v612_v7 = vsel %vm484_vm2, %v404_v48, %v548_v56  ;;  %v614_v8 = vsel %vm486_vm5, %v295_v58, %v550_v2  ;;  %v616_v9 = vsel %vm488_vm6, %v408_v59, %v552_v3  ;;  %v300_v10 = vpop.f32.mrb[4].mxu0  ;;  %v413_v11 = vpop.f32.mrb[4].mxu1 }
 0x121   :  { %v674_v12 = vpack.c.bf16 %v614_v8, %v610_v6  ;;  %v676_v13 = vpack.c.bf16 %v616_v9, %v612_v7  ;;  %v301_v14 = vadd.f32 %v300_v10, %v2001_v41  ;;  %v414_v15 = vadd.f32 %v413_v11, %v2003_v42  ;;  %v302_v16 = vpop.f32.mrb[5].mxu0  ;;  %v415_v17 = vpop.f32.mrb[5].mxu1 }
 0x122   :  { %v303_v18 = vadd.f32 %v302_v16, %v2006_v43  ;;  %v416_v19 = vadd.f32 %v415_v17, %v2008_v44  ;;  %v304_v20 = vpop.f32.mrb[6].mxu0  ;;  %v417_v21 = vpop.f32.mrb[6].mxu1  ;;  %v615_v22 = vsel %vm487_vm7, %v297_v63, %v551_v4  ;;  %v617_v23 = vsel %vm489_vm8, %v410_v0, %v553_v5 }
 0x123   :  { %v554_v24 = vmul.f32 0.2, %v301_v14  ;;  %v611_v25 = vsel %vm483_vm3, %v293_v51, %v547_v57  ;;  %v613_v26 = vsel %vm485_vm4, %v406_v52, %v549_v62  ;;  %vm490_vm9 = vcmp.gt.f32.partialorder %v301_v14, 0.0  ;;  %v306_v30 = vpop.f32.mrb[7].mxu0  ;;  %v419_v31 = vpop.f32.mrb[7].mxu1 }
 0x124   :  { %vm492_vm10 = vcmp.gt.f32.partialorder %v414_v15, 0.0  ;;  %v555_v1 = vmul.f32 0.2, %v303_v18  ;;  %v557_v27 = vmul.f32 0.2, %v416_v19  ;;  %v305_v28 = vadd.f32 %v304_v20, %v2001_v41 }
 0x125   :  { %v418_v29 = vadd.f32 %v417_v21, %v2003_v42  ;;  %v675_v32 = vpack.c.bf16 %v615_v22, %v611_v25  ;;  %v677_v33 = vpack.c.bf16 %v617_v23, %v613_v26  ;;  %vm491_vm11 = vcmp.gt.f32.partialorder %v303_v18, 0.0 }
 0x126   :  { %vm493_vm12 = vcmp.gt.f32.partialorder %v416_v19, 0.0  ;;  %v307_v34 = vadd.f32 %v306_v30, %v2006_v43  ;;  %v420_v35 = vadd.f32 %v419_v31, %v2008_v44  ;;  %vm494_vm13 = vcmp.gt.f32.partialorder %v305_v28, 0.0 }
 0x127   :  { %v558_v37 = vmul.f32 0.2, %v305_v28  ;;  %vm496_vm14 = vcmp.gt.f32.partialorder %v418_v29, 0.0  ;;  %v560_v38 = vmul.f32 0.2, %v418_v29  ;;  %1069 = vmatprep.mubr.bf16.mxu1 %v675_v32  ;;  %1182 = vmatprep.mubr.bf16.mxu0 %v677_v33  ;;  %v619_v49 = vsel %vm491_vm11, %v303_v18, %v555_v1 }
 0x128   :  { %vm495_vm15 = vcmp.gt.f32.partialorder %v307_v34, 0.0  ;;  %v559_v40 = vmul.f32 0.2, %v307_v34  ;;  %vm497_vm0 = vcmp.gt.f32.partialorder %v420_v35, 0.0  ;;  %v561_v45 = vmul.f32 0.2, %v420_v35  ;;  %1070 = vmatmul.mubr.bf16.vlgmr.msra.gmra.mrb[32].mxu1 %v674_v12  ;;  %1183 = vmatmul.mubr.bf16.vlgmr.msra.gmra.mrb[32].mxu0 %v676_v13 }
 0x129   :  { %v556_v46 = vmul.f32 0.2, %v414_v15  ;;  %v310_v47 = vpop.f32.mrb[8].mxu0  ;;  %v423_v48 = vpop.f32.mrb[8].mxu1  ;;  %v621_v50 = vsel %vm493_vm12, %v416_v19, %v557_v27  ;;  %v622_v51 = vsel %vm494_vm13, %v305_v28, %v558_v37  ;;  %v624_v57 = vsel %vm496_vm14, %v418_v29, %v560_v38 }
 0x12a   :  { %v311_v52 = vadd.f32 %v310_v47, %v2001_v41  ;;  %v312_v53 = vpop.f32.mrb[9].mxu0  ;;  %v425_v54 = vpop.f32.mrb[9].mxu1  ;;  %v623_v55 = vsel %vm495_vm15, %v307_v34, %v559_v40  ;;  %v625_v56 = vsel %vm497_vm0, %v420_v35, %v561_v45  ;;  %v2040_v2 = vadd.f32 %v423_v48, %v2003_v42 }
 0x12b   :  { %v313_v58 = vadd.f32 %v312_v53, %v2006_v43  ;;  %v426_v59 = vadd.f32 %v425_v54, %v2008_v44  ;;  %v314_v60 = vpop.f32.mrb[10].mxu0  ;;  %v427_v61 = vpop.f32.mrb[10].mxu1  ;;  %v679_v62 = vpack.c.bf16 %v623_v55, %v619_v49  ;;  %v681_v63 = vpack.c.bf16 %v625_v56, %v621_v50 }
 0x12c   :  { %v562_v0 = vmul.f32 0.2, %v311_v52  ;;  %v618_v3 = vsel %vm490_vm9, %v301_v14, %v554_v24  ;;  %v620_v4 = vsel %vm492_vm10, %v414_v15, %v556_v46  ;;  %v315_v5 = vadd.f32 %v314_v60, %v2001_v41  ;;  %v316_v6 = vpop.f32.mrb[11].mxu0  ;;  %v429_v7 = vpop.f32.mrb[11].mxu1 }
 0x12d   :  { %1079 = vmatprep.mubr.bf16.mxu1 %v679_v62  ;;  %1192 = vmatprep.mubr.bf16.mxu0 %v681_v63  ;;  %vm499_vm1 = vcmp.gt.f32.partialorder %v313_v58, 0.0  ;;  %v678_v8 = vpack.c.bf16 %v622_v51, %v618_v3  ;;  %v680_v9 = vpack.c.bf16 %v624_v57, %v620_v4  ;;  %v563_v10 = vmul.f32 0.2, %v313_v58 }
 0x12e   :  { %vm501_vm2 = vcmp.gt.f32.partialorder %v426_v59, 0.0  ;;  %v317_v11 = vadd.f32 %v316_v6, %v2006_v43  ;;  %v430_v12 = vadd.f32 %v429_v7, %v2008_v44  ;;  %v565_v17 = vmul.f32 0.2, %v426_v59 }
 0x12f   :  { %vm502_vm3 = vcmp.gt.f32.partialorder %v315_v5, 0.0  ;;  %v566_v14 = vmul.f32 0.2, %v315_v5  ;;  %v428_v15 = vadd.f32 %v427_v61, %v2003_v42  ;;  %vm498_vm6 = vcmp.gt.f32.partialorder %v311_v52, 0.0 }
 0x130   :  { %v320_v13 = vpop.f32.mrb[12].mxu0  ;;  %v433_v16 = vpop.f32.mrb[12].mxu1  ;;  %1080 = vmatmul.mubr.bf16.gmra.mrb[36].mxu1 %v678_v8  ;;  %1193 = vmatmul.mubr.bf16.gmra.mrb[36].mxu0 %v680_v9  ;;  %vm503_vm4 = vcmp.gt.f32.partialorder %v317_v11, 0.0  ;;  %v567_v18 = vmul.f32 0.2, %v317_v11  ;;  %vm505_vm5 = vcmp.gt.f32.partialorder %v430_v12, 0.0  ;;  %v627_v29 = vsel %vm499_vm1, %v313_v58, %v563_v10 }
 0x131   :  { %v569_v19 = vmul.f32 0.2, %v430_v12  ;;  %vm500_vm7 = vcmp.gt.f32.partialorder %v2040_v2, 0.0  ;;  %v2050_v20 = vadd.f32 %v320_v13, %v2001_v41  ;;  %v322_v21 = vpop.f32.mrb[13].mxu0  ;;  %v435_v22 = vpop.f32.mrb[13].mxu1  ;;  %v2054_v24 = vadd.f32 %v433_v16, %v2003_v42 }
 0x132   :  { %v564_v23 = vmul.f32 0.2, %v2040_v2  ;;  %v324_v25 = vpop.f32.mrb[14].mxu0  ;;  %v437_v26 = vpop.f32.mrb[14].mxu1  ;;  %v631_v1 = vsel %vm503_vm4, %v317_v11, %v567_v18  ;;  %v323_v28 = vadd.f32 %v322_v21, %v2006_v43  ;;  %v629_v30 = vsel %vm501_vm2, %v426_v59, %v565_v17 }
 0x133   :  { %v633_v27 = vsel %vm505_vm5, %v430_v12, %v569_v19  ;;  %v630_v31 = vsel %vm502_vm3, %v315_v5, %v566_v14  ;;  %vm504_vm8 = vcmp.gt.f32.partialorder %v428_v15, 0.0  ;;  %v568_v32 = vmul.f32 0.2, %v428_v15  ;;  %v326_v37 = vpop.f32.mrb[15].mxu0  ;;  %v439_v38 = vpop.f32.mrb[15].mxu1 }
 0x134   :  { %v2061_v33 = vadd.f32 %v435_v22, %v2008_v44  ;;  %v626_v34 = vsel %vm498_vm6, %v311_v52, %v562_v0  ;;  %vm506_vm9 = vcmp.gt.f32.partialorder %v2050_v20, 0.0  ;;  %v2066_v35 = vmul.f32 0.2, %v2050_v20 }
 0x135   :  { %v683_v40 = vpack.c.bf16 %v631_v1, %v627_v29  ;;  %v685_v45 = vpack.c.bf16 %v633_v27, %v629_v30  ;;  %vm508_vm10 = vcmp.gt.f32.partialorder %v2054_v24, 0.0  ;;  %v327_v46 = vadd.f32 %v326_v37, %v2006_v43 }
 0x136   :  { %v440_v47 = vadd.f32 %v439_v38, %v2008_v44  ;;  %v682_v48 = vpack.c.bf16 %v630_v31, %v626_v34  ;;  %v572_v51 = vmul.f32 0.2, %v2054_v24  ;;  %vm507_vm11 = vcmp.gt.f32.partialorder %v323_v28, 0.0 }
 0x137   :  { %v571_v52 = vmul.f32 0.2, %v323_v28  ;;  %v325_v53 = vadd.f32 %v324_v25, %v2001_v41  ;;  %1089 = vmatprep.mubr.bf16.mxu1 %v683_v40  ;;  %1202 = vmatprep.mubr.bf16.mxu0 %v685_v45  ;;  %vm509_vm12 = vcmp.gt.f32.partialorder %v2061_v33, 0.0  ;;  %v438_v54 = vadd.f32 %v437_v26, %v2003_v42 }
 0x138   :  { %v330_v49 = vpop.f32.mrb[16].mxu0  ;;  %v443_v50 = vpop.f32.mrb[16].mxu1  ;;  %vm511_vm13 = vcmp.gt.f32.partialorder %v327_v46, 0.0  ;;  %v575_v55 = vmul.f32 0.2, %v327_v46  ;;  %1090 = vmatmul.mubr.bf16.gmra.mrb[40].mxu1 %v682_v48  ;;  %v628_v56 = vsel %vm500_vm7, %v2040_v2, %v564_v23  ;;  %v632_v57 = vsel %vm504_vm8, %v428_v15, %v568_v32 }
 0x139   :  { %v2080_v58 = vadd.f32 %v330_v49, %v2001_v41  ;;  %v2083_v59 = vadd.f32 %v443_v50, %v2003_v42  ;;  %v332_v60 = vpop.f32.mrb[17].mxu0  ;;  %v445_v61 = vpop.f32.mrb[17].mxu1  ;;  %v577_v62 = vmul.f32 0.2, %v440_v47  ;;  %v684_v63 = vpack.c.bf16 %v632_v57, %v628_v56 }
 0x13a   :  { %v2086_v0 = vadd.f32 %v332_v60, %v2006_v43  ;;  %v334_v3 = vpop.f32.mrb[18].mxu0  ;;  %v447_v4 = vpop.f32.mrb[18].mxu1  ;;  %v639_v5 = vsel %vm511_vm13, %v327_v46, %v575_v55  ;;  %v573_v2 = vmul.f32 0.2, %v2061_v33  ;;  %vm510_vm14 = vcmp.gt.f32.partialorder %v325_v53, 0.0 }
 0x13b   :  { %vm513_vm15 = vcmp.gt.f32.partialorder %v440_v47, 0.0  ;;  %v2090_v6 = vadd.f32 %v445_v61, %v2008_v44  ;;  %v574_v7 = vmul.f32 0.2, %v325_v53  ;;  %vm512_vm0 = vcmp.gt.f32.partialorder %v438_v54, 0.0  ;;  %1203 = vmatmul.mubr.bf16.gmra.mrb[40].mxu0 %v684_v63  ;;  %v336_v13 = vpop.f32.mrb[19].mxu0  ;;  %v449_v16 = vpop.f32.mrb[19].mxu1 }
 0x13c   :  { %v576_v8 = vmul.f32 0.2, %v438_v54  ;;  %v635_v9 = vsel %vm507_vm11, %v323_v28, %v571_v52  ;;  %v2094_v10 = vmul.f32 0.2, %v2080_v58  ;;  %v2097_v11 = vmul.f32 0.2, %v2083_v59 }
 0x13d   :  { %v2100_v12 = vadd.f32 %v334_v3, %v2001_v41  ;;  %v687_v17 = vpack.c.bf16 %v639_v5, %v635_v9  ;;  %vm514_vm1 = vcmp.gt.f32.partialorder %v2080_v58, 0.0  ;;  %vm515_vm2 = vcmp.gt.f32.partialorder %v2086_v0, 0.0 }
 0x13e   :  { %v579_v14 = vmul.f32 0.2, %v2086_v0  ;;  %v641_v15 = vsel %vm513_vm15, %v440_v47, %v577_v62  ;;  %vm516_vm3 = vcmp.gt.f32.partialorder %v2083_v59, 0.0  ;;  %vm517_vm4 = vcmp.gt.f32.partialorder %v2090_v6, 0.0 }
 0x13f   :  { %v581_v21 = vmul.f32 0.2, %v2090_v6  ;;  %v2110_v22 = vadd.f32 %v447_v4, %v2003_v42  ;;  %v337_v23 = vadd.f32 %v336_v13, %v2006_v43  ;;  %1099 = vmatprep.mubr.bf16.mxu1 %v687_v17  ;;  %vm518_vm5 = vcmp.gt.f32.partialorder %v2100_v12, 0.0 }
 0x140   :  { %v340_v18 = vpop.f32.mrb[20].mxu0  ;;  %v453_v19 = vpop.f32.mrb[20].mxu1  ;;  %v450_v25 = vadd.f32 %v449_v16, %v2008_v44  ;;  %v637_v26 = vsel %vm509_vm12, %v2061_v33, %v573_v2  ;;  %v634_v1 = vsel %vm506_vm9, %v2050_v20, %v2066_v35  ;;  %v638_v28 = vsel %vm510_vm14, %v325_v53, %v574_v7 }
 0x141   :  { %v689_v27 = vpack.c.bf16 %v641_v15, %v637_v26  ;;  %v636_v29 = vsel %vm508_vm10, %v2054_v24, %v572_v51  ;;  %v640_v30 = vsel %vm512_vm0, %v438_v54, %v576_v8  ;;  %v342_v31 = vpop.f32.mrb[21].mxu0  ;;  %v455_v32 = vpop.f32.mrb[21].mxu1  ;;  %v686_v34 = vpack.c.bf16 %v638_v28, %v634_v1 }
 0x142   :  { %v688_v37 = vpack.c.bf16 %v640_v30, %v636_v29  ;;  %v2128_v33 = vadd.f32 %v340_v18, %v2001_v41  ;;  %v2131_v38 = vadd.f32 %v453_v19, %v2003_v42  ;;  %v344_v20 = vpop.f32.mrb[22].mxu0  ;;  %v457_v35 = vpop.f32.mrb[22].mxu1  ;;  %v582_v40 = vmul.f32 0.2, %v2100_v12 }
 0x143   :  { %v583_v45 = vmul.f32 0.2, %v337_v23  ;;  %1212 = vmatprep.mubr.bf16.mxu0 %v689_v27  ;;  %v2135_v24 = vadd.f32 %v342_v31, %v2006_v43  ;;  %v2138_v46 = vadd.f32 %v455_v32, %v2008_v44  ;;  %v346_v47 = vpop.f32.mrb[23].mxu0  ;;  %v459_v48 = vpop.f32.mrb[23].mxu1  ;;  %vm519_vm6 = vcmp.gt.f32.partialorder %v337_v23, 0.0  ;;  %1100 = vmatmul.mubr.bf16.gmra.mrb[44].mxu1 %v686_v34 }
 0x144   :  { %v585_v49 = vmul.f32 0.2, %v450_v25  ;;  %1213 = vmatmul.mubr.bf16.gmra.mrb[44].mxu0 %v688_v37  ;;  %v2141_v50 = vadd.f32 %v344_v20, %v2001_v41  ;;  %v2144_v51 = vadd.f32 %v457_v35, %v2003_v42  ;;  %vm520_vm7 = vcmp.gt.f32.partialorder %v2110_v22, 0.0 }
 0x145   :  { %v584_v52 = vmul.f32 0.2, %v2110_v22  ;;  %vm521_vm8 = vcmp.gt.f32.partialorder %v450_v25, 0.0  ;;  %v2149_v53 = vmul.f32 0.2, %v2128_v33  ;;  %vm522_vm9 = vcmp.gt.f32.partialorder %v2128_v33, 0.0 }
 0x146   :  { %v2153_v54 = vmul.f32 0.2, %v2131_v38  ;;  %vm523_vm10 = vcmp.gt.f32.partialorder %v2135_v24, 0.0  ;;  %v587_v55 = vmul.f32 0.2, %v2135_v24  ;;  %vm525_vm11 = vcmp.gt.f32.partialorder %v2138_v46, 0.0 }
 0x147   :  { %v589_v56 = vmul.f32 0.2, %v2138_v46  ;;  %v347_v57 = vadd.f32 %v346_v47, %v2006_v43  ;;  %v643_v60 = vsel %vm515_vm2, %v2086_v0, %v579_v14  ;;  %v647_v61 = vsel %vm519_vm6, %v337_v23, %v583_v45 }
 0x148   :  { %v350_v62 = vpop.f32.mrb[24].mxu0  ;;  %v463_v63 = vpop.f32.mrb[24].mxu1  ;;  %vm524_vm12 = vcmp.gt.f32.partialorder %v2131_v38, 0.0  ;;  %vm526_vm13 = vcmp.gt.f32.partialorder %v2141_v50, 0.0  ;;  %v2167_v3 = vmul.f32 0.2, %v2141_v50  ;;  %v691_v5 = vpack.c.bf16 %v647_v61, %v643_v60 }
 0x149   :  { %v2170_v4 = vmul.f32 0.2, %v2144_v51  ;;  %v649_v2 = vsel %vm521_vm8, %v450_v25, %v585_v49  ;;  %v352_v7 = vpop.f32.mrb[25].mxu0  ;;  %v465_v8 = vpop.f32.mrb[25].mxu1  ;;  %v591_v0 = vmul.f32 0.2, %v347_v57  ;;  %v460_v9 = vadd.f32 %v459_v48, %v2008_v44 }
 0x14a   :  { %v645_v13 = vsel %vm517_vm4, %v2090_v6, %v581_v21  ;;  %v642_v16 = vsel %vm514_vm1, %v2080_v58, %v2094_v10  ;;  %1109 = vmatprep.mubr.bf16.mxu1 %v691_v5  ;;  %v646_v14 = vsel %vm518_vm5, %v2100_v12, %v582_v40  ;;  %v644_v15 = vsel %vm516_vm3, %v2083_v59, %v2097_v11  ;;  %v354_v18 = vpop.f32.mrb[26].mxu0  ;;  %v467_v19 = vpop.f32.mrb[26].mxu1 }
 0x14b   :  { %v693_v17 = vpack.c.bf16 %v649_v2, %v645_v13  ;;  %v648_v6 = vsel %vm520_vm7, %v2110_v22, %v584_v52  ;;  %v690_v21 = vpack.c.bf16 %v646_v14, %v642_v16  ;;  %v2192_v58 = vadd.f32 %v350_v62, %v2001_v41  ;;  %v356_v12 = vpop.f32.mrb[27].mxu0  ;;  %v469_v25 = vpop.f32.mrb[27].mxu1 }
 0x14c   :  { %v692_v23 = vpack.c.bf16 %v648_v6, %v644_v15  ;;  %v2195_v10 = vadd.f32 %v463_v63, %v2003_v42  ;;  %v2198_v26 = vadd.f32 %v352_v7, %v2006_v43  ;;  %v2201_v59 = vadd.f32 %v465_v8, %v2008_v44 }
 0x14d   :  { %1222 = vmatprep.mubr.bf16.mxu0 %v693_v17  ;;  %v2204_v11 = vadd.f32 %v354_v18, %v2001_v41  ;;  %v2207_v22 = vadd.f32 %v467_v19, %v2003_v42  ;;  %vm528_vm14 = vcmp.gt.f32.partialorder %v2144_v51, 0.0  ;;  %vm527_vm15 = vcmp.gt.f32.partialorder %v347_v57, 0.0  ;;  %1110 = vmatmul.mubr.bf16.gmra.mrb[48].mxu1 %v690_v21 }
 0x14e   :  { %v593_v1 = vmul.f32 0.2, %v460_v9  ;;  %1223 = vmatmul.mubr.bf16.gmra.mrb[48].mxu0 %v692_v23  ;;  %v2211_v27 = vmul.f32 0.2, %v2192_v58  ;;  %vm529_vm0 = vcmp.gt.f32.partialorder %v460_v9, 0.0  ;;  %vm531_vm1 = vcmp.gt.f32.partialorder %v2198_v26, 0.0 }
 0x14f   :  { %v2214_v28 = vmul.f32 0.2, %v2195_v10  ;;  %v595_v29 = vmul.f32 0.2, %v2198_v26  ;;  %vm530_vm2 = vcmp.gt.f32.partialorder %v2192_v58, 0.0  ;;  %vm533_vm3 = vcmp.gt.f32.partialorder %v2201_v59, 0.0 }
 0x150   :  { %v597_v30 = vmul.f32 0.2, %v2201_v59  ;;  %v2222_v31 = vmul.f32 0.2, %v2204_v11  ;;  %v2225_v32 = vmul.f32 0.2, %v2207_v22  ;;  %v357_v34 = vadd.f32 %v356_v12, %v2006_v43 }
 0x151   :  { %v470_v37 = vadd.f32 %v469_v25, %v2008_v44  ;;  %v651_v20 = vsel %vm523_vm10, %v2135_v24, %v587_v55  ;;  %v655_v35 = vsel %vm527_vm15, %v347_v57, %v591_v0  ;;  %v360_v40 = vpop.f32.mrb[28].mxu0  ;;  %v473_v45 = vpop.f32.mrb[28].mxu1  ;;  %vm532_vm4 = vcmp.gt.f32.partialorder %v2195_v10, 0.0 }
 0x152   :  { %vm534_vm5 = vcmp.gt.f32.partialorder %v2204_v11, 0.0  ;;  %vm536_vm6 = vcmp.gt.f32.partialorder %v2207_v22, 0.0  ;;  %v695_v47 = vpack.c.bf16 %v655_v35, %v651_v20  ;;  %v653_v48 = vsel %vm525_vm11, %v2138_v46, %v589_v56  ;;  %v362_v52 = vpop.f32.mrb[29].mxu0  ;;  %v475_v55 = vpop.f32.mrb[29].mxu1  ;;  %v143_v20 = vld [vmem:[%s2386_s4] sm:$0x3] }
 0x153   :  { %v657_v49 = vsel %vm529_vm0, %v460_v9, %v593_v1  ;;  %v650_v24 = vsel %vm522_vm9, %v2128_v33, %v2149_v53  ;;  %vm535_vm7 = vcmp.gt.f32.partialorder %v357_v34, 0.0  ;;  %v599_v57 = vmul.f32 0.2, %v357_v34  ;;  %v364_v53 = vpop.f32.mrb[30].mxu0  ;;  %v477_v62 = vpop.f32.mrb[30].mxu1 }
 0x154   :  { %vm537_vm8 = vcmp.gt.f32.partialorder %v470_v37, 0.0  ;;  %v601_v60 = vmul.f32 0.2, %v470_v37  ;;  %1119 = vmatprep.mubr.bf16.mxu1 %v695_v47  ;;  %v697_v61 = vpack.c.bf16 %v657_v49, %v653_v48  ;;  %v654_v46 = vsel %vm526_vm13, %v2141_v50, %v2167_v3  ;;  %v366_v8 = vpop.f32.mrb[31].mxu0  ;;  %v479_v50 = vpop.f32.mrb[31].mxu1 }
 0x155   :  { %v652_v56 = vsel %vm524_vm12, %v2131_v38, %v2153_v54  ;;  %v656_v33 = vsel %vm528_vm14, %v2144_v51, %v2170_v4  ;;  %v694_v63 = vpack.c.bf16 %v654_v46, %v650_v24  ;;  %v361_v2 = vadd.f32 %v360_v40, %v2001_v41 }
 0x156   :  { %v696_v5 = vpack.c.bf16 %v656_v33, %v652_v56  ;;  %v474_v7 = vadd.f32 %v473_v45, %v2003_v42  ;;  %1232 = vmatprep.mubr.bf16.mxu0 %v697_v61  ;;  %v363_v3 = vadd.f32 %v362_v52, %v2006_v43  ;;  %v476_v38 = vadd.f32 %v475_v55, %v2008_v44  ;;  %v144_v52 = vld [vmem:[%s2387_s5] sm:$0x3] }
 0x157   :  { %v365_v54 = vadd.f32 %v364_v53, %v2001_v41  ;;  %v478_v0 = vadd.f32 %v477_v62, %v2003_v42  ;;  %1120 = vmatmul.mubr.bf16.gmra.mrb[52].mxu1 %v694_v63  ;;  %vm538_vm9 = vcmp.gt.f32.partialorder %v361_v2, 0.0  ;;  %v602_v51 = vmul.f32 0.2, %v361_v2 }
 0x158   :  { %1233 = vmatmul.mubr.bf16.gmra.mrb[52].mxu0 %v696_v5  ;;  %vm540_vm10 = vcmp.gt.f32.partialorder %v474_v7, 0.0  ;;  %v604_v4 = vmul.f32 0.2, %v474_v7  ;;  %vm539_vm11 = vcmp.gt.f32.partialorder %v363_v3, 0.0  ;;  %v603_v9 = vmul.f32 0.2, %v363_v3 }
 0x159   :  { %vm541_vm12 = vcmp.gt.f32.partialorder %v476_v38, 0.0  ;;  %v605_v13 = vmul.f32 0.2, %v476_v38  ;;  %vm542_vm13 = vcmp.gt.f32.partialorder %v365_v54, 0.0  ;;  %v606_v16 = vmul.f32 0.2, %v365_v54 }
 0x15a   :  { %vm544_vm14 = vcmp.gt.f32.partialorder %v478_v0, 0.0  ;;  %v608_v17 = vmul.f32 0.2, %v478_v0  ;;  %v367_v14 = vadd.f32 %v366_v8, %v2006_v43  ;;  %v480_v41 = vadd.f32 %v479_v50, %v2008_v44 }
 0x15b   :  { %v659_v42 = vsel %vm531_vm1, %v2198_v26, %v595_v29  ;;  %v663_v15 = vsel %vm535_vm7, %v357_v34, %v599_v57  ;;  %v661_v18 = vsel %vm533_vm3, %v2201_v59, %v597_v30  ;;  %v665_v19 = vsel %vm537_vm8, %v470_v37, %v601_v60 }
 0x15c   :  { %v699_v6 = vpack.c.bf16 %v663_v15, %v659_v42  ;;  %v658_v43 = vsel %vm530_vm2, %v2192_v58, %v2211_v27  ;;  %vm543_vm15 = vcmp.gt.f32.partialorder %v367_v14, 0.0  ;;  %v607_v44 = vmul.f32 0.2, %v367_v14 }
 0x15d   :  { %vm545_vm0 = vcmp.gt.f32.partialorder %v480_v41, 0.0  ;;  %v609_v21 = vmul.f32 0.2, %v480_v41  ;;  %v701_v23 = vpack.c.bf16 %v665_v19, %v661_v18  ;;  %v662_v12 = vsel %vm534_vm5, %v2204_v11, %v2222_v31 }
 0x15e   :  { %1129 = vmatprep.mubr.bf16.mxu1 %v699_v6  ;;  %v660_v25 = vsel %vm532_vm4, %v2195_v10, %v2214_v28  ;;  %v664_v58 = vsel %vm536_vm6, %v2207_v22, %v2225_v32  ;;  %v698_v26 = vpack.c.bf16 %v662_v12, %v658_v43  ;;  %v667_v1 = vsel %vm539_vm11, %v363_v3, %v603_v9 }
 0x15f   :  { %v700_v59 = vpack.c.bf16 %v664_v58, %v660_v25  ;;  %v671_v27 = vsel %vm543_vm15, %v367_v14, %v607_v44  ;;  %1242 = vmatprep.mubr.bf16.mxu0 %v701_v23  ;;  %v669_v30 = vsel %vm541_vm12, %v476_v38, %v605_v13  ;;  %v673_v11 = vsel %vm545_vm0, %v480_v41, %v609_v21 }
 0x160   :  { %v703_v29 = vpack.c.bf16 %v671_v27, %v667_v1  ;;  %1130 = vmatmul.mubr.bf16.gmra.mrb[56].mxu1 %v698_v26  ;;  %v705_v31 = vpack.c.bf16 %v673_v11, %v669_v30  ;;  %v666_v10 = vsel %vm538_vm9, %v361_v2, %v602_v51  ;;  %v670_v28 = vsel %vm542_vm13, %v365_v54, %v606_v16 }
 0x161   :  { %1243 = vmatmul.mubr.bf16.gmra.mrb[56].mxu0 %v700_v59  ;;  %v702_v34 = vpack.c.bf16 %v670_v28, %v666_v10  ;;  %v668_v22 = vsel %vm540_vm10, %v474_v7, %v604_v4  ;;  %v672_v32 = vsel %vm544_vm14, %v478_v0, %v608_v17  ;;  %v2298_v35 = vrot.slane %v143_v20, %v1993_v36 }
 0x162   :  { %1139 = vmatprep.mubr.bf16.mxu1 %v703_v29  ;;  %1252 = vmatprep.mubr.bf16.mxu0 %v705_v31  ;;  %v704_v37 = vpack.c.bf16 %v672_v32, %v668_v22  ;;  %v2301_v40 = vrot.slane %v143_v20, %v1998_v39  ;;  %v2311_v63 = vrot.slane %v144_v52, %v1993_v36 }
 0x163   :  { %v2314_v7 = vrot.slane %v144_v52, %v1998_v39 }
 0x168   :  { %1140 = vmatmul.mubr.bf16.gmra.mrb[60].mxu1 %v702_v34 }
 0x169   :  { %1253 = vmatmul.mubr.bf16.gmra.mrb[60].mxu0 %v704_v37 }
 0x1fb   :  { %v1071_v45 = vpop.f32.mrb[32].mxu1  ;;  %v1184_v47 = vpop.f32.mrb[32].mxu0 }
 0x1fc   :  { %v1072_v48 = vadd.f32 %v1071_v45, %v2298_v35  ;;  %v1073_v49 = vpop.f32.mrb[33].mxu1  ;;  %v1186_v24 = vpop.f32.mrb[33].mxu0 }
 0x1fd   :  { %v1074_v55 = vadd.f32 %v1073_v49, %v2301_v40  ;;  %v1075_v57 = vpop.f32.mrb[34].mxu1  ;;  %v1188_v60 = vpop.f32.mrb[34].mxu0 }
 0x1fe   :  { %v1185_v61 = vadd.f32 %v1184_v47, %v1072_v48  ;;  %v1076_v46 = vadd.f32 %v1075_v57, %v2298_v35  ;;  %v1077_v56 = vpop.f32.mrb[35].mxu1  ;;  %v1190_v33 = vpop.f32.mrb[35].mxu0 }
 0x1ff   :  { %v1187_v53 = vadd.f32 %v1186_v24, %v1074_v55  ;;  %v1078_v62 = vadd.f32 %v1077_v56, %v2301_v40 }
 0x200   :  { %vm1263_vm1 = vcmp.gt.f32.partialorder %v1185_v61, 0.0  ;;  %v1295_v5 = vmul.f32 0.2, %v1185_v61  ;;  %v1189_v2 = vadd.f32 %v1188_v60, %v1076_v46 }
 0x201   :  { %vm1264_vm2 = vcmp.gt.f32.partialorder %v1187_v53, 0.0  ;;  %v1296_v8 = vmul.f32 0.2, %v1187_v53  ;;  %v1191_v50 = vadd.f32 %v1190_v33, %v1078_v62 }
 0x202   :  { %vm1265_vm3 = vcmp.gt.f32.partialorder %v1189_v2, 0.0  ;;  %v1297_v3 = vmul.f32 0.2, %v1189_v2  ;;  %v1327_v38 = vsel %vm1263_vm1, %v1185_v61, %v1295_v5 }
 0x203   :  { %vm1266_vm4 = vcmp.gt.f32.partialorder %v1191_v50, 0.0  ;;  %v1298_v54 = vmul.f32 0.2, %v1191_v50  ;;  %v1081_v0 = vpop.f32.mrb[36].mxu1  ;;  %v1194_v51 = vpop.f32.mrb[36].mxu0  ;;  %v1328_v4 = vsel %vm1264_vm2, %v1187_v53, %v1296_v8  ;;  %v1370_v36 = vmul.f32 %v2311_v63, %v1327_v38 }
 0x204   :  { %v1082_v9 = vadd.f32 %v1081_v0, %v2298_v35  ;;  %v1083_v13 = vpop.f32.mrb[37].mxu1  ;;  %v1196_v16 = vpop.f32.mrb[37].mxu0  ;;  %v1371_v39 = vmul.f32 %v2314_v7, %v1328_v4  ;;  %v1329_v17 = vsel %vm1265_vm3, %v1189_v2, %v1297_v3 }
 0x205   :  { %v1084_v14 = vadd.f32 %v1083_v13, %v2301_v40  ;;  %v1085_v41 = vpop.f32.mrb[38].mxu1  ;;  %v1198_v42 = vpop.f32.mrb[38].mxu0  ;;  %v1330_v15 = vsel %vm1266_vm4, %v1191_v50, %v1298_v54  ;;  %v1372_v6 = vmul.f32 %v2311_v63, %v1329_v17 }
 0x206   :  { %v1195_v18 = vadd.f32 %v1194_v51, %v1082_v9  ;;  %v1086_v19 = vadd.f32 %v1085_v41, %v2298_v35  ;;  %v1087_v43 = vpop.f32.mrb[39].mxu1  ;;  %v1200_v44 = vpop.f32.mrb[39].mxu0  ;;  %v1402_v21 = vadd.f32 %v1371_v39, %v1370_v36  ;;  %v1373_v23 = vmul.f32 %v2314_v7, %v1330_v15 }
 0x207   :  { %v1197_v12 = vadd.f32 %v1196_v16, %v1084_v14  ;;  %v1088_v25 = vadd.f32 %v1087_v43, %v2301_v40 }
 0x208   :  { %vm1267_vm5 = vcmp.gt.f32.partialorder %v1195_v18, 0.0  ;;  %v1299_v58 = vmul.f32 0.2, %v1195_v18  ;;  %v1199_v26 = vadd.f32 %v1198_v42, %v1086_v19  ;;  %1403 = vadd.xlane.f32.xlu0 %v1402_v21  ;;  %v1405_v59 = vadd.f32 %v1373_v23, %v1372_v6 }
 0x209   :  { %vm1268_vm6 = vcmp.gt.f32.partialorder %v1197_v12, 0.0  ;;  %v1300_v1 = vmul.f32 0.2, %v1197_v12  ;;  %v1201_v27 = vadd.f32 %v1200_v44, %v1088_v25 }
 0x20a   :  { %vm1269_vm7 = vcmp.gt.f32.partialorder %v1199_v26, 0.0  ;;  %v1301_v29 = vmul.f32 0.2, %v1199_v26  ;;  %v1331_v30 = vsel %vm1267_vm5, %v1195_v18, %v1299_v58 }
 0x20b   :  { %vm1270_vm8 = vcmp.gt.f32.partialorder %v1201_v27, 0.0  ;;  %v1302_v11 = vmul.f32 0.2, %v1201_v27  ;;  %v1332_v31 = vsel %vm1268_vm6, %v1197_v12, %v1300_v1  ;;  %v1374_v10 = vmul.f32 %v2311_v63, %v1331_v30  ;;  %v1091_v28 = vpop.f32.mrb[40].mxu1 }
 0x20c   :  { %1406 = vadd.xlane.f32.xlu0 %v1405_v59  ;;  %v1375_v34 = vmul.f32 %v2314_v7, %v1332_v31  ;;  %v1333_v22 = vsel %vm1269_vm7, %v1199_v26, %v1301_v29  ;;  %v1092_v32 = vadd.f32 %v1091_v28, %v2298_v35  ;;  %v1093_v37 = vpop.f32.mrb[41].mxu1 }
 0x20d   :  { %v1334_v20 = vsel %vm1270_vm8, %v1201_v27, %v1302_v11  ;;  %v1376_v45 = vmul.f32 %v2311_v63, %v1333_v22  ;;  %v1094_v47 = vadd.f32 %v1093_v37, %v2301_v40  ;;  %v1095_v48 = vpop.f32.mrb[42].mxu1 }
 0x20e   :  { %v1408_v49 = vadd.f32 %v1375_v34, %v1374_v10  ;;  %v1377_v24 = vmul.f32 %v2314_v7, %v1334_v20  ;;  %v1096_v52 = vadd.f32 %v1095_v48, %v2298_v35  ;;  %v1097_v55 = vpop.f32.mrb[43].mxu1  ;;  %v1204_v57 = vpop.f32.mrb[40].mxu0 }
 0x20f   :  { %v1098_v60 = vadd.f32 %v1097_v55, %v2301_v40  ;;  %v1205_v46 = vadd.f32 %v1204_v57, %v1092_v32  ;;  %v1206_v56 = vpop.f32.mrb[41].mxu0 }
 0x210   :  { %1409 = vadd.xlane.f32.xlu1 %v1408_v49  ;;  %v1411_v61 = vadd.f32 %v1377_v24, %v1376_v45  ;;  %v1207_v33 = vadd.f32 %v1206_v56, %v1094_v47  ;;  %v1208_v53 = vpop.f32.mrb[42].mxu0 }
 0x211   :  { %vm1271_vm9 = vcmp.gt.f32.partialorder %v1205_v46, 0.0  ;;  %v1303_v62 = vmul.f32 0.2, %v1205_v46  ;;  %v1209_v5 = vadd.f32 %v1208_v53, %v1096_v52  ;;  %v1210_v2 = vpop.f32.mrb[43].mxu0 }
 0x212   :  { %vm1272_vm10 = vcmp.gt.f32.partialorder %v1207_v33, 0.0  ;;  %v1304_v8 = vmul.f32 0.2, %v1207_v33  ;;  %v1211_v50 = vadd.f32 %v1210_v2, %v1098_v60 }
 0x213   :  { %vm1273_vm11 = vcmp.gt.f32.partialorder %v1209_v5, 0.0  ;;  %v1305_v3 = vmul.f32 0.2, %v1209_v5  ;;  %v1335_v38 = vsel %vm1271_vm9, %v1205_v46, %v1303_v62 }
 0x214   :  { %1412 = vadd.xlane.f32.xlu1 %v1411_v61  ;;  %vm1274_vm12 = vcmp.gt.f32.partialorder %v1211_v50, 0.0  ;;  %v1306_v54 = vmul.f32 0.2, %v1211_v50  ;;  %v1336_v0 = vsel %vm1272_vm10, %v1207_v33, %v1304_v8  ;;  %v1378_v51 = vmul.f32 %v2311_v63, %v1335_v38 }
 0x215   :  { %v1379_v4 = vmul.f32 %v2314_v7, %v1336_v0  ;;  %v1337_v36 = vsel %vm1273_vm11, %v1209_v5, %v1305_v3 }
 0x216   :  { %v1101_v9 = vpop.f32.mrb[44].mxu1  ;;  %v1338_v16 = vsel %vm1274_vm12, %v1211_v50, %v1306_v54  ;;  %v1380_v39 = vmul.f32 %v2311_v63, %v1337_v36 }
 0x217   :  { %v1214_v13 = vpop.f32.mrb[44].mxu0  ;;  %v1102_v17 = vadd.f32 %v1101_v9, %v2298_v35  ;;  %v1103_v14 = vpop.f32.mrb[45].mxu1  ;;  %v1414_v42 = vadd.f32 %v1379_v4, %v1378_v51  ;;  %v1381_v15 = vmul.f32 %v2314_v7, %v1338_v16 }
 0x218   :  { %v1216_v41 = vpop.f32.mrb[45].mxu0  ;;  %v1104_v6 = vadd.f32 %v1103_v14, %v2301_v40  ;;  %v1105_v18 = vpop.f32.mrb[46].mxu1 }
 0x219   :  { %v1218_v19 = vpop.f32.mrb[46].mxu0  ;;  %v1215_v43 = vadd.f32 %v1214_v13, %v1102_v17  ;;  %v1106_v44 = vadd.f32 %v1105_v18, %v2298_v35  ;;  %v1107_v21 = vpop.f32.mrb[47].mxu1  ;;  %1415 = vadd.xlane.f32.xlu0 %v1414_v42  ;;  %v1417_v12 = vadd.f32 %v1381_v15, %v1380_v39 }
 0x21a   :  { %v1220_v23 = vpop.f32.mrb[47].mxu0  ;;  %v1217_v25 = vadd.f32 %v1216_v41, %v1104_v6  ;;  %v1108_v58 = vadd.f32 %v1107_v21, %v2301_v40 }
 0x21b   :  { %vm1275_vm13 = vcmp.gt.f32.partialorder %v1215_v43, 0.0  ;;  %v1307_v26 = vmul.f32 0.2, %v1215_v43  ;;  %v1219_v59 = vadd.f32 %v1218_v19, %v1106_v44  ;;  %1418 = vadd.xlane.f32.xlu1 %v1417_v12 }
 0x21c   :  { %vm1276_vm14 = vcmp.gt.f32.partialorder %v1217_v25, 0.0  ;;  %v1308_v1 = vmul.f32 0.2, %v1217_v25  ;;  %v1221_v27 = vadd.f32 %v1220_v23, %v1108_v58 }
 0x21d   :  { %vm1277_vm15 = vcmp.gt.f32.partialorder %v1219_v59, 0.0  ;;  %v1309_v29 = vmul.f32 0.2, %v1219_v59  ;;  %v1339_v30 = vsel %vm1275_vm13, %v1215_v43, %v1307_v26 }
 0x21e   :  { %vm1278_vm0 = vcmp.gt.f32.partialorder %v1221_v27, 0.0  ;;  %v1310_v11 = vmul.f32 0.2, %v1221_v27  ;;  %v1340_v31 = vsel %vm1276_vm14, %v1217_v25, %v1308_v1  ;;  %v1382_v10 = vmul.f32 %v2311_v63, %v1339_v30 }
 0x21f   :  { %v1383_v22 = vmul.f32 %v2314_v7, %v1340_v31  ;;  %v1341_v32 = vsel %vm1277_vm15, %v1219_v59, %v1309_v29 }
 0x220   :  { %v1111_v28 = vpop.f32.mrb[48].mxu1  ;;  %v1342_v47 = vsel %vm1278_vm0, %v1221_v27, %v1310_v11  ;;  %v1384_v48 = vmul.f32 %v2311_v63, %v1341_v32 }
 0x221   :  { %v1224_v34 = vpop.f32.mrb[48].mxu0  ;;  %v1112_v37 = vadd.f32 %v1111_v28, %v2298_v35  ;;  %v1113_v20 = vpop.f32.mrb[49].mxu1  ;;  %v1420_v55 = vadd.f32 %v1383_v22, %v1382_v10  ;;  %v1385_v57 = vmul.f32 %v2314_v7, %v1342_v47 }
 0x222   :  { %v1226_v45 = vpop.f32.mrb[49].mxu0  ;;  %v1114_v49 = vadd.f32 %v1113_v20, %v2301_v40  ;;  %v1115_v24 = vpop.f32.mrb[50].mxu1 }
 0x223   :  { %v1228_v52 = vpop.f32.mrb[50].mxu0  ;;  %v1225_v60 = vadd.f32 %v1224_v34, %v1112_v37  ;;  %v1116_v61 = vadd.f32 %v1115_v24, %v2298_v35  ;;  %v1117_v46 = vpop.f32.mrb[51].mxu1  ;;  %1421 = vadd.xlane.f32.xlu0 %v1420_v55  ;;  %v1423_v62 = vadd.f32 %v1385_v57, %v1384_v48 }
 0x224   :  { %v1230_v56 = vpop.f32.mrb[51].mxu0  ;;  %v1227_v33 = vadd.f32 %v1226_v45, %v1114_v49  ;;  %v1118_v53 = vadd.f32 %v1117_v46, %v2301_v40 }
 0x225   :  { %vm1279_vm1 = vcmp.gt.f32.partialorder %v1225_v60, 0.0  ;;  %v1311_v5 = vmul.f32 0.2, %v1225_v60  ;;  %v1229_v2 = vadd.f32 %v1228_v52, %v1116_v61  ;;  %1424 = vadd.xlane.f32.xlu1 %v1423_v62 }
 0x226   :  { %vm1280_vm2 = vcmp.gt.f32.partialorder %v1227_v33, 0.0  ;;  %v1312_v8 = vmul.f32 0.2, %v1227_v33  ;;  %v1231_v50 = vadd.f32 %v1230_v56, %v1118_v53 }
 0x227   :  { %vm1281_vm3 = vcmp.gt.f32.partialorder %v1229_v2, 0.0  ;;  %v1313_v3 = vmul.f32 0.2, %v1229_v2  ;;  %v1343_v38 = vsel %vm1279_vm1, %v1225_v60, %v1311_v5  ;;  %vm1472_vm1 = vcmask 7168  }
 0x228   :  { %vm1282_vm4 = vcmp.gt.f32.partialorder %v1231_v50, 0.0  ;;  %v1314_v54 = vmul.f32 0.2, %v1231_v50  ;;  %v1344_v0 = vsel %vm1280_vm2, %v1227_v33, %v1312_v8  ;;  %v1386_v51 = vmul.f32 %v2311_v63, %v1343_v38 }
 0x229   :  { %v1387_v9 = vmul.f32 %v2314_v7, %v1344_v0  ;;  %v1345_v13 = vsel %vm1281_vm3, %v1229_v2, %v1313_v3 }
 0x22a   :  { %v1121_v4 = vpop.f32.mrb[52].mxu1  ;;  %v1346_v14 = vsel %vm1282_vm4, %v1231_v50, %v1314_v54  ;;  %v1388_v41 = vmul.f32 %v2311_v63, %v1345_v13 }
 0x22b   :  { %v1234_v36 = vpop.f32.mrb[52].mxu0  ;;  %v1122_v16 = vadd.f32 %v1121_v4, %v2298_v35  ;;  %v1123_v39 = vpop.f32.mrb[53].mxu1  ;;  %v1426_v18 = vadd.f32 %v1387_v9, %v1386_v51  ;;  %v1389_v19 = vmul.f32 %v2314_v7, %v1346_v14 }
 0x22c   :  { %v1236_v17 = vpop.f32.mrb[53].mxu0  ;;  %v1124_v42 = vadd.f32 %v1123_v39, %v2301_v40  ;;  %v1125_v15 = vpop.f32.mrb[54].mxu1 }
 0x22d   :  { %v1238_v6 = vpop.f32.mrb[54].mxu0  ;;  %v1235_v43 = vadd.f32 %v1234_v36, %v1122_v16  ;;  %v1126_v44 = vadd.f32 %v1125_v15, %v2298_v35  ;;  %v1127_v21 = vpop.f32.mrb[55].mxu1  ;;  %1427 = vadd.xlane.f32.xlu0 %v1426_v18  ;;  %v1429_v58 = vadd.f32 %v1389_v19, %v1388_v41 }
 0x22e   :  { %v1240_v23 = vpop.f32.mrb[55].mxu0  ;;  %v1237_v12 = vadd.f32 %v1236_v17, %v1124_v42  ;;  %v1128_v25 = vadd.f32 %v1127_v21, %v2301_v40 }
 0x22f   :  { %vm1283_vm5 = vcmp.gt.f32.partialorder %v1235_v43, 0.0  ;;  %v1315_v26 = vmul.f32 0.2, %v1235_v43  ;;  %v1239_v59 = vadd.f32 %v1238_v6, %v1126_v44  ;;  %1430 = vadd.xlane.f32.xlu1 %v1429_v58 }
 0x230   :  { %vm1284_vm6 = vcmp.gt.f32.partialorder %v1237_v12, 0.0  ;;  %v1316_v1 = vmul.f32 0.2, %v1237_v12  ;;  %v1241_v27 = vadd.f32 %v1240_v23, %v1128_v25 }
 0x231   :  { %vm1285_vm7 = vcmp.gt.f32.partialorder %v1239_v59, 0.0  ;;  %v1317_v29 = vmul.f32 0.2, %v1239_v59  ;;  %v1347_v30 = vsel %vm1283_vm5, %v1235_v43, %v1315_v26 }
 0x232   :  { %vm1286_vm8 = vcmp.gt.f32.partialorder %v1241_v27, 0.0  ;;  %v1318_v11 = vmul.f32 0.2, %v1241_v27  ;;  %v1348_v31 = vsel %vm1284_vm6, %v1237_v12, %v1316_v1  ;;  %v1390_v10 = vmul.f32 %v2311_v63, %v1347_v30 }
 0x233   :  { %v1131_v28 = vpop.f32.mrb[56].mxu1  ;;  %v1391_v22 = vmul.f32 %v2314_v7, %v1348_v31  ;;  %v1349_v32 = vsel %vm1285_vm7, %v1239_v59, %v1317_v29 }
 0x234   :  { %v1244_v34 = vpop.f32.mrb[56].mxu0  ;;  %v1132_v37 = vadd.f32 %v1131_v28, %v2298_v35  ;;  %v1133_v20 = vpop.f32.mrb[57].mxu1  ;;  %v1350_v47 = vsel %vm1286_vm8, %v1241_v27, %v1318_v11  ;;  %v1392_v48 = vmul.f32 %v2311_v63, %v1349_v32 }
 0x235   :  { %v1246_v45 = vpop.f32.mrb[57].mxu0  ;;  %v1134_v49 = vadd.f32 %v1133_v20, %v2301_v40  ;;  %v1135_v24 = vpop.f32.mrb[58].mxu1  ;;  %v1432_v55 = vadd.f32 %v1391_v22, %v1390_v10  ;;  %v1393_v57 = vmul.f32 %v2314_v7, %v1350_v47  ;;  %v1623_v20 = vld [vmem:[#allocation2] ss:$0 sm:$0xff] }
 0x236   :  { %v1248_v52 = vpop.f32.mrb[58].mxu0  ;;  %v1245_v60 = vadd.f32 %v1244_v34, %v1132_v37  ;;  %v1136_v61 = vadd.f32 %v1135_v24, %v2298_v35  ;;  %v1137_v46 = vpop.f32.mrb[59].mxu1 }
 0x237   :  { %v1250_v56 = vpop.f32.mrb[59].mxu0  ;;  %v1247_v33 = vadd.f32 %v1246_v45, %v1134_v49  ;;  %v1138_v53 = vadd.f32 %v1137_v46, %v2301_v40  ;;  %1433 = vadd.xlane.f32.xlu0 %v1432_v55  ;;  %v1435_v62 = vadd.f32 %v1393_v57, %v1392_v48 }
 0x238   :  { %vm1287_vm9 = vcmp.gt.f32.partialorder %v1245_v60, 0.0  ;;  %v1319_v5 = vmul.f32 0.2, %v1245_v60  ;;  %v1249_v2 = vadd.f32 %v1248_v52, %v1136_v61 }
 0x239   :  { %vm1288_vm10 = vcmp.gt.f32.partialorder %v1247_v33, 0.0  ;;  %v1320_v8 = vmul.f32 0.2, %v1247_v33  ;;  %v1251_v50 = vadd.f32 %v1250_v56, %v1138_v53  ;;  %1436 = vadd.xlane.f32.xlu1 %v1435_v62 }
 0x23a   :  { %vm1289_vm11 = vcmp.gt.f32.partialorder %v1249_v2, 0.0  ;;  %v1321_v3 = vmul.f32 0.2, %v1249_v2  ;;  %v1351_v38 = vsel %vm1287_vm9, %v1245_v60, %v1319_v5 }
 0x23b   :  { %vm1290_vm12 = vcmp.gt.f32.partialorder %v1251_v50, 0.0  ;;  %v1322_v54 = vmul.f32 0.2, %v1251_v50  ;;  %v1141_v0 = vpop.f32.mrb[60].mxu1  ;;  %v1352_v4 = vsel %vm1288_vm10, %v1247_v33, %v1320_v8  ;;  %v1394_v36 = vmul.f32 %v2311_v63, %v1351_v38 }
 0x23c   :  { %v1254_v51 = vpop.f32.mrb[60].mxu0  ;;  %v1142_v9 = vadd.f32 %v1141_v0, %v2298_v35  ;;  %v1143_v13 = vpop.f32.mrb[61].mxu1  ;;  %v1395_v39 = vmul.f32 %v2314_v7, %v1352_v4  ;;  %v1353_v17 = vsel %vm1289_vm11, %v1249_v2, %v1321_v3 }
 0x23d   :  { %v1256_v16 = vpop.f32.mrb[61].mxu0  ;;  %v1144_v14 = vadd.f32 %v1143_v13, %v2301_v40  ;;  %v1145_v41 = vpop.f32.mrb[62].mxu1  ;;  %v1354_v15 = vsel %vm1290_vm12, %v1251_v50, %v1322_v54  ;;  %v1396_v6 = vmul.f32 %v2311_v63, %v1353_v17 }
 0x23e   :  { %v1258_v42 = vpop.f32.mrb[62].mxu0  ;;  %v1255_v18 = vadd.f32 %v1254_v51, %v1142_v9  ;;  %v1146_v19 = vadd.f32 %v1145_v41, %v2298_v35  ;;  %v1147_v43 = vpop.f32.mrb[63].mxu1  ;;  %v1438_v21 = vadd.f32 %v1395_v39, %v1394_v36  ;;  %v1397_v23 = vmul.f32 %v2314_v7, %v1354_v15 }
 0x23f   :  { %v1260_v44 = vpop.f32.mrb[63].mxu0  ;;  %v1257_v12 = vadd.f32 %v1256_v16, %v1144_v14  ;;  %v1148_v25 = vadd.f32 %v1147_v43, %v2301_v40 }
 0x240   :  { %vm1291_vm13 = vcmp.gt.f32.partialorder %v1255_v18, 0.0  ;;  %v1323_v58 = vmul.f32 0.2, %v1255_v18  ;;  %v1259_v26 = vadd.f32 %v1258_v42, %v1146_v19  ;;  %1439 = vadd.xlane.f32.xlu0 %v1438_v21  ;;  %v1441_v59 = vadd.f32 %v1397_v23, %v1396_v6 }
 0x241   :  { %vm1292_vm14 = vcmp.gt.f32.partialorder %v1257_v12, 0.0  ;;  %v1324_v1 = vmul.f32 0.2, %v1257_v12  ;;  %v1261_v27 = vadd.f32 %v1260_v44, %v1148_v25 }
 0x242   :  { %vm1293_vm15 = vcmp.gt.f32.partialorder %v1259_v26, 0.0  ;;  %v1325_v29 = vmul.f32 0.2, %v1259_v26  ;;  %1442 = vadd.xlane.f32.xlu1 %v1441_v59  ;;  %v1355_v35 = vsel %vm1291_vm13, %v1255_v18, %v1323_v58 }
 0x243   :  { %vm1294_vm0 = vcmp.gt.f32.partialorder %v1261_v27, 0.0  ;;  %v1326_v30 = vmul.f32 0.2, %v1261_v27  ;;  %v1356_v11 = vsel %vm1292_vm14, %v1257_v12, %v1324_v1  ;;  %v1398_v31 = vmul.f32 %v2311_v63, %v1355_v35 }
 0x244   :  { %v1399_v10 = vmul.f32 %v2314_v7, %v1356_v11  ;;  %v1357_v40 = vsel %vm1293_vm15, %v1259_v26, %v1325_v29 }
 0x245   :  { %v1358_v28 = vsel %vm1294_vm0, %v1261_v27, %v1326_v30  ;;  %v1400_v34 = vmul.f32 %v2311_v63, %v1357_v40 }
 0x246   :  { %v1444_v22 = vadd.f32 %v1399_v10, %v1398_v31  ;;  %v1401_v32 = vmul.f32 %v2314_v7, %v1358_v28 }
 0x248   :  { %1445 = vadd.xlane.f32.xlu0 %v1444_v22  ;;  %v1447_v37 = vadd.f32 %v1401_v32, %v1400_v34 }
 0x24a   :  { %1448 = vadd.xlane.f32.xlu1 %v1447_v37 }
 0x295   :  { %v1404_v45 = vpop.xlane.xlu0 %1403 }
 0x296   :  { %v1456_v47 = vadd.f32 %v1623_v20, %v1404_v45 }
 0x298   :  { %1473 = vst.msk [vmem:[#allocation8] sm:$0xff] %vm1472_vm1, %v1456_v47 }
 0x299   :  { %v1407_v48 = vpop.xlane.xlu0 %1406 }
 0x29a   :  { %v1457_v49 = vadd.f32 %v1623_v20, %v1407_v48 }
 0x29c   :  { %1474 = vst.msk [vmem:[#allocation8 + $0x8] sm:$0xff] %vm1472_vm1, %v1457_v49 }
 0x29d   :  { %v1410_v24 = vpop.xlane.xlu1 %1409 }
 0x29f   :  { %v1520_v52 = vld [vmem:[#allocation8] sm:$0xff] }
 0x2a0   :  { %1521 = vst [vmem:[%s2389_s7] sm:$0xff] %v1520_v52 }
 0x2a1   :  { %v1413_v63 = vpop.xlane.xlu1 %1412 }
 0x2a3   :  { %v1522_v55 = vld [vmem:[#allocation8 + $0x8] sm:$0xff] }
 0x2a4   :  { %1523 = vst [vmem:[%s2389_s7 + $0x8] sm:$0xff] %v1522_v55 }
 0x2a6   :  { %v1416_v7 = vpop.xlane.xlu0 %1415 }
 0x2a8   :  { %v1419_v57 = vpop.xlane.xlu1 %1418 }
 0x2b0   :  { %v1422_v60 = vpop.xlane.xlu0 %1421 }
 0x2b2   :  { %v1425_v61 = vpop.xlane.xlu1 %1424 }
 0x2ba   :  { %v1428_v46 = vpop.xlane.xlu0 %1427 }
 0x2bc   :  { %v1431_v56 = vpop.xlane.xlu1 %1430 }
 0x2c4   :  { %v1434_v33 = vpop.xlane.xlu0 %1433 }
 0x2c6   :  { %v1437_v53 = vpop.xlane.xlu1 %1436 }
 0x2cd   :  { %v1440_v62 = vpop.xlane.xlu0 %1439 }
 0x2cf   :  { %v1443_v5 = vpop.xlane.xlu1 %1442 }
 0x2d5   :  { %v1446_v2 = vpop.xlane.xlu0 %1445 }
 0x2d7   :  { %v1449_v8 = vpop.xlane.xlu1 %1448 }
 0x2d8   :  { %1529 = vsyncpa [#allocation4], 1 }
 0x2d9   :  { %1530 = vsyncpa [#allocation6], 1 }

</bundles_post_ra>
